<compile_context>
chip_gen: v6e
topology: v6e:2x2x1
jax: 0.10.0
libtpu: 0.0.40
codegen_flags: <defaults>
</compile_context>

<pallas_src>
import math
from functools import partial

import jax
import jax.numpy as jnp
from jax.experimental import pallas as pl
from jax.experimental.pallas import tpu as pltpu

NEG_BIG = -1e30  # causal-mask fill value

_M_TILES = (512, 256, 128, 64, 32, 16, 8)          # row tiles
_N_TILES = (1024, 512, 384, 256, 128)              # lane tiles (output / vocab axis)
_HID_TILES = (512, 384, 256, 128)                  # MLP hidden reduction tiles


def _pick_tile(dim, prefs, min_blocks=1):
    """Largest preferred tile dividing dim; prefer tiles giving >= min_blocks blocks."""
    for t in prefs:
        if dim % t == 0 and dim // t >= min_blocks:
            return t
    for t in prefs:
        if dim % t == 0:
            return t
    return dim  # full dim is always a legal block


def _vmem_cap_bytes():
    try:
        cap = int(pltpu.get_tpu_info().vmem_capacity_bytes)
    except Exception:
        cap = 64 << 20  # conservative (v7x per-TC)
    return max(16 << 20, (cap * 3) // 4)  # keep >=25% headroom for the compiler


_VMEM_CAP = _vmem_cap_bytes()


def _cparams(dim_sems, tile_bytes, scratch_bytes=0):
    """dimension_semantics + vmem_limit derived from double-buffered tile bytes."""
    limit = 2 * int(tile_bytes) + int(scratch_bytes) + (8 << 20)  # headroom for temps
    limit = max(16 << 20, min(limit, _VMEM_CAP))
    return pltpu.CompilerParams(dimension_semantics=dim_sems,
                                vmem_limit_bytes=limit)


def _layernorm(x, g, b):
    mu = jnp.mean(x, axis=-1, keepdims=True)
    var = jnp.mean(jnp.square(x - mu), axis=-1, keepdims=True)
    return (x - mu) * jax.lax.rsqrt(var + 1e-5) * g + b


def _gelu_tanh(x):
    c = 0.7978845608028654  # sqrt(2/pi)
    return 0.5 * x * (1.0 + jnp.tanh(c * (x + 0.044715 * x * x * x)))


# ----------------------------- Pallas kernels ------------------------------

def _ln_linear_kernel(x_ref, g_ref, b_ref, w_ref, bias_ref, o_ref, xn_ref):
    # out = LayerNorm(x) @ w + bias ; LN computed once per row tile (j == 0) and
    # cached in a bf16 VMEM scratch reused across the "arbitrary" column axis.
    j = pl.program_id(1)

    @pl.when(j == 0)
    def _():
        xn_ref[...] = _layernorm(x_ref[...], g_ref[...], b_ref[...]).astype(jnp.bfloat16)

    acc = jnp.dot(xn_ref[...], w_ref[...], preferred_element_type=jnp.float32)
    o_ref[...] = (acc + bias_ref[...]).astype(o_ref.dtype)


def _linear_residual_kernel(y_ref, w_ref, bias_ref, res_ref, o_ref):
    # out = res + y @ w + bias  (attention output projection fused with residual add)
    acc = jnp.dot(y_ref[...].astype(jnp.bfloat16), w_ref[...],
                  preferred_element_type=jnp.float32)
    o_ref[...] = (res_ref[...] + acc + bias_ref[...]).astype(o_ref.dtype)


def _mlp_kernel(x_ref, g_ref, b_ref, w1_ref, b1_ref, w2_ref, b2_ref, o_ref,
                acc_ref, xn_ref):
    # out = x + gelu(LayerNorm(x) @ W1 + b1) @ W2 + b2 ; hidden dim F is tiled as a
    # reduction axis; LN result cached in bf16 scratch at f == 0.
    f = pl.program_id(1)

    @pl.when(f == 0)
    def _():
        acc_ref[...] = jnp.zeros_like(acc_ref)
        xn_ref[...] = _layernorm(x_ref[...], g_ref[...], b_ref[...]).astype(jnp.bfloat16)

    h = jnp.dot(xn_ref[...], w1_ref[...], preferred_element_type=jnp.float32) + b1_ref[...]
    h = _gelu_tanh(h)
    acc_ref[...] += jnp.dot(h.astype(jnp.bfloat16), w2_ref[...],
                            preferred_element_type=jnp.float32)

    @pl.when(f == pl.num_programs(1) - 1)
    def _():
        o_ref[...] = (x_ref[...] + acc_ref[...] + b2_ref[...]).astype(o_ref.dtype)


def _ln_lm_head_kernel(x_ref, g_ref, b_ref, w_ref, o_ref, xn_ref):
    # logits = LayerNorm(x) @ wte_t ; wte_t is a pre-transposed (C, V) bf16 copy of
    # the tied embedding, so no per-tile transpose is needed.  LN cached across the
    # (large) vocab axis.
    j = pl.program_id(1)

    @pl.when(j == 0)
    def _():
        xn_ref[...] = _layernorm(x_ref[...], g_ref[...], b_ref[...]).astype(jnp.bfloat16)

    o_ref[...] = jnp.dot(xn_ref[...], w_ref[...],
                         preferred_element_type=jnp.float32).astype(o_ref.dtype)


def _flash_attn_kernel(q_ref, k_ref, v_ref, o_ref, qbf_ref, m_ref, l_ref, acc_ref,
                       *, n_head, d_head, scale):
    # grid = (B, q_tiles, kv_tiles); online softmax over the kv axis; all heads are
    # handled inside so the output store is a single lane-dense (tq, C) slab.
    # q is scaled (1/sqrt(D)) and cast to bf16 once per q tile; only the diagonal
    # kv tile builds/applies the causal mask; tiles above the diagonal are skipped
    # entirely (their DMAs are also skipped via clamped index maps).
    qi = pl.program_id(1)
    ki = pl.program_id(2)
    tq = q_ref.shape[0]
    tk = k_ref.shape[0]

    @pl.when(ki == 0)
    def _():
        m_ref[...] = jnp.full_like(m_ref, -jnp.inf)
        l_ref[...] = jnp.zeros_like(l_ref)
        acc_ref[...] = jnp.zeros_like(acc_ref)
        q_all = q_ref[...]
        for h in range(n_head):
            sl = slice(h * d_head, (h + 1) * d_head)
            qbf_ref[h] = (q_all[:, sl] * scale).astype(jnp.bfloat16)

    def _step(apply_mask):
        k_all = k_ref[...]
        v_all = v_ref[...]
        if apply_mask:
            row = qi * tq + jax.lax.broadcasted_iota(jnp.int32, (tq, tk), 0)
            col = ki * tk + jax.lax.broadcasted_iota(jnp.int32, (tq, tk), 1)
            causal = row >= col
        for h in range(n_head):
            sl = slice(h * d_head, (h + 1) * d_head)
            k = k_all[:, sl].astype(jnp.bfloat16)
            v = v_all[:, sl].astype(jnp.bfloat16)
            s = jax.lax.dot_general(qbf_ref[h], k, (((1,), (1,)), ((), ())),
                                    preferred_element_type=jnp.float32)
            if apply_mask:
                s = jnp.where(causal, s, NEG_BIG)
            m_prev = m_ref[h]                                    # (tq, 1)
            m_new = jnp.maximum(m_prev, jnp.max(s, axis=-1, keepdims=True))
            alpha = jnp.exp(m_prev - m_new)
            p = jnp.exp(s - m_new)
            l_ref[h] = alpha * l_ref[h] + jnp.sum(p, axis=-1, keepdims=True)
            acc_ref[h] = alpha * acc_ref[h] + jnp.dot(
                p.astype(jnp.bfloat16), v, preferred_element_type=jnp.float32)
            m_ref[h] = m_new

    @pl.when(ki == qi)        # diagonal tile (tq == tk): needs the causal mask
    def _():
        _step(True)

    @pl.when(ki < qi)         # fully visible tile: no mask work at all
    def _():
        _step(False)

    @pl.when(ki == pl.num_programs(2) - 1)
    def _():
        for h in range(n_head):
            inv = pl.reciprocal(l_ref[h], approx=True)           # EUP vrcp
            o_ref[:, h * d_head:(h + 1) * d_head] = (acc_ref[h] * inv).astype(o_ref.dtype)


# ----------------------------- wrappers ------------------------------------

def ln_linear(x, g, b, w, bias):
    """(LayerNorm(x) @ w) + bias, w in bf16 (in, out) layout. LN cached per row tile."""
    M, K = x.shape
    N = w.shape[1]
    tm = _pick_tile(M, _M_TILES, min_blocks=2)   # keep >=2 blocks on the parallel axis
    tn = _pick_tile(N, _N_TILES)
    tile_bytes = tm * K * 4 + 2 * K * 4 + K * tn * 2 + tn * 4 + tm * tn * 4
    scratch_bytes = tm * K * 2
    return pl.pallas_call(
        _ln_linear_kernel,
        out_shape=jax.ShapeDtypeStruct((M, N), x.dtype),
        grid=(M // tm, N // tn),
        in_specs=[
            pl.BlockSpec((tm, K), lambda i, j: (i, 0)),
            pl.BlockSpec((1, K), lambda i, j: (0, 0)),
            pl.BlockSpec((1, K), lambda i, j: (0, 0)),
            pl.BlockSpec((K, tn), lambda i, j: (0, j)),
            pl.BlockSpec((1, tn), lambda i, j: (0, j)),
        ],
        out_specs=pl.BlockSpec((tm, tn), lambda i, j: (i, j)),
        scratch_shapes=[pltpu.VMEM((tm, K), jnp.bfloat16)],
        # column axis is "arbitrary": the LN scratch is carried across it
        compiler_params=_cparams(("parallel", "arbitrary"), tile_bytes, scratch_bytes),
    )(x, g, b, w, bias)


def linear_residual(y, w, bias, res):
    """res + (y @ w) + bias, w in bf16 (in, out) layout; output aliased onto res."""
    M, K = y.shape
    N = w.shape[1]
    tm = _pick_tile(M, _M_TILES, min_blocks=2)
    tn = _pick_tile(N, _N_TILES)
    tile_bytes = tm * K * 4 + K * tn * 2 + tn * 4 + 2 * tm * tn * 4
    return pl.pallas_call(
        _linear_residual_kernel,
        out_shape=jax.ShapeDtypeStruct((M, N), y.dtype),
        grid=(M // tm, N // tn),
        in_specs=[
            pl.BlockSpec((tm, K), lambda i, j: (i, 0)),
            pl.BlockSpec((K, tn), lambda i, j: (0, j)),
            pl.BlockSpec((1, tn), lambda i, j: (0, j)),
            pl.BlockSpec((tm, tn), lambda i, j: (i, j)),
        ],
        out_specs=pl.BlockSpec((tm, tn), lambda i, j: (i, j)),
        input_output_aliases={3: 0},   # res buffer is donated / reused for the output
        compiler_params=_cparams(("parallel", "parallel"), tile_bytes),
    )(y, w, bias, res)


def mlp_block(x, g, b, w1, b1, w2, b2):
    """x + c_proj(gelu(c_fc(LayerNorm(x)))) fused; hidden dim tiled as reduction axis."""
    M, C = x.shape
    F = w1.shape[1]
    tm = _pick_tile(M, _M_TILES, min_blocks=2)
    tf = _pick_tile(F, _HID_TILES)
    tile_bytes = (tm * C * 4 + 2 * C * 4 + C * tf * 2 + tf * 4 +
                  tf * C * 2 + C * 4 + tm * C * 4)
    scratch_bytes = tm * C * 4 + tm * C * 2
    return pl.pallas_call(
        _mlp_kernel,
        out_shape=jax.ShapeDtypeStruct((M, C), x.dtype),
        grid=(M // tm, F // tf),
        in_specs=[
            pl.BlockSpec((tm, C), lambda i, f: (i, 0)),
            pl.BlockSpec((1, C), lambda i, f: (0, 0)),
            pl.BlockSpec((1, C), lambda i, f: (0, 0)),
            pl.BlockSpec((C, tf), lambda i, f: (0, f)),
            pl.BlockSpec((1, tf), lambda i, f: (0, f)),
            pl.BlockSpec((tf, C), lambda i, f: (f, 0)),
            pl.BlockSpec((1, C), lambda i, f: (0, 0)),
        ],
        out_specs=pl.BlockSpec((tm, C), lambda i, f: (i, 0)),
        scratch_shapes=[pltpu.VMEM((tm, C), jnp.float32),     # f32 accumulator
                        pltpu.VMEM((tm, C), jnp.bfloat16)],   # cached LN(x) in bf16
        input_output_aliases={0: 0},   # residual x buffer reused for the output
        compiler_params=_cparams(("parallel", "arbitrary"), tile_bytes, scratch_bytes),
    )(x, g, b, w1, b1, w2, b2)


def flash_attention(qkv, n_head):
    """Causal flash attention over packed qkv (B, T, 3C) -> (B, T, C) lane-dense."""
    B, T, C3 = qkv.shape
    C = C3 // 3
    D = C // n_head
    assert C % 128 == 0, "head-packed qkv slicing assumes C is a lane multiple"
    scale = 1.0 / math.sqrt(D)
    tq = _pick_tile(T, (128, 64, 32, 16, 8))
    tk = tq  # causal-skip logic (ki == qi diagonal) assumes equal q/kv tiles
    tile_bytes = (tq * C3 + 2 * tk * C3 + tq * C3) * 4 // 3  # q,k,v,o f32 tiles of width C
    scratch_bytes = n_head * tq * (D * 2 + 4 + 4 + D * 4)
    return pl.pallas_call(
        partial(_flash_attn_kernel, n_head=n_head, d_head=D, scale=scale),
        out_shape=jax.ShapeDtypeStruct((B, T, C), qkv.dtype),
        grid=(B, T // tq, T // tk),
        in_specs=[
            pl.BlockSpec((None, tq, C), lambda b, qi, ki: (b, qi, 0)),               # q
            # k/v block indices are clamped to the causal boundary: fully-masked kv
            # tiles repeat the previous block index, so their DMAs are skipped.
            pl.BlockSpec((None, tk, C), lambda b, qi, ki: (b, jnp.minimum(ki, qi), 1)),  # k
            pl.BlockSpec((None, tk, C), lambda b, qi, ki: (b, jnp.minimum(ki, qi), 2)),  # v
        ],
        out_specs=pl.BlockSpec((None, tq, C), lambda b, qi, ki: (b, qi, 0)),
        scratch_shapes=[
            pltpu.VMEM((n_head, tq, D), jnp.bfloat16),  # q (scaled, bf16) per head
            pltpu.VMEM((n_head, tq, 1), jnp.float32),   # running max m
            pltpu.VMEM((n_head, tq, 1), jnp.float32),   # running sum l
            pltpu.VMEM((n_head, tq, D), jnp.float32),   # output accumulator
        ],
        compiler_params=_cparams(("parallel", "parallel", "arbitrary"),
                                 tile_bytes, scratch_bytes),
    )(qkv, qkv, qkv)


def ln_lm_head(x, g, b, w_t):
    """LayerNorm(x) @ w_t, w_t = pre-transposed (C, V) bf16 tied embedding, no bias."""
    M, K = x.shape
    V = w_t.shape[1]
    tm = _pick_tile(M, _M_TILES, min_blocks=2)
    tn = _pick_tile(V, _N_TILES)
    tile_bytes = tm * K * 4 + 2 * K * 4 + K * tn * 2 + tm * tn * 4
    scratch_bytes = tm * K * 2
    return pl.pallas_call(
        _ln_lm_head_kernel,
        out_shape=jax.ShapeDtypeStruct((M, V), x.dtype),
        grid=(M // tm, V // tn),
        in_specs=[
            pl.BlockSpec((tm, K), lambda i, j: (i, 0)),
            pl.BlockSpec((1, K), lambda i, j: (0, 0)),
            pl.BlockSpec((1, K), lambda i, j: (0, 0)),
            pl.BlockSpec((K, tn), lambda i, j: (0, j)),
        ],
        out_specs=pl.BlockSpec((tm, tn), lambda i, j: (i, j)),
        scratch_shapes=[pltpu.VMEM((tm, K), jnp.bfloat16)],
        # vocab axis is "arbitrary": LN scratch carried across it (biggest LN saving)
        compiler_params=_cparams(("parallel", "arbitrary"), tile_bytes, scratch_bytes),
    )(x, g, b, w_t)


# ----------------------------- model ---------------------------------------

def init_params(cfg, seed=0):
    key = jax.random.PRNGKey(seed)
    C = cfg["n_embd"]
    n_layer = cfg["n_layer"]
    std = 0.01
    proj_std = 0.01 * (2 * n_layer) ** (-0.5)  # SCALE_WEIGHT_INIT_WITH_SQRT_OF_LIN_LAYERS
    keys = iter(jax.random.split(key, 4 + 4 * n_layer))

    def nrm(shape, s):
        return (s * jax.random.normal(next(keys), shape)).astype(jnp.float32)

    params = {}
    # wte is tied to lm_head; in torch the Linear init (std=0.01) runs last and wins.
    wte = nrm((cfg["vocab_size"], C), 0.01).astype(jnp.bfloat16)
    params["wte"] = wte                                  # (V, C) bf16 (embedding gather)
    params["wte_t"] = jnp.asarray(wte.T)                 # (C, V) bf16 (lm_head, no transpose)
    params["wpe"] = nrm((cfg["block_size"], C), 0.02)
    blocks = []
    for _ in range(n_layer):
        # matmul weights stored pre-transposed (in, out) and in bfloat16;
        # biases / LN params as (1, N) float32.
        blocks.append(dict(
            ln1_g=jnp.ones((1, C), jnp.float32), ln1_b=jnp.zeros((1, C), jnp.float32),
            attn_w=nrm((C, 3 * C), std).astype(jnp.bfloat16),
            attn_b=jnp.zeros((1, 3 * C), jnp.float32),
            proj_w=nrm((C, C), proj_std).astype(jnp.bfloat16),
            proj_b=jnp.zeros((1, C), jnp.float32),
            ln2_g=jnp.ones((1, C), jnp.float32), ln2_b=jnp.zeros((1, C), jnp.float32),
            fc_w=nrm((C, 4 * C), std).astype(jnp.bfloat16),
            fc_b=jnp.zeros((1, 4 * C), jnp.float32),
            mlp_proj_w=nrm((4 * C, C), proj_std).astype(jnp.bfloat16),
            mlp_proj_b=jnp.zeros((1, C), jnp.float32),
        ))
    params["blocks"] = blocks
    params["lnf_g"] = jnp.ones((1, C), jnp.float32)
    params["lnf_b"] = jnp.zeros((1, C), jnp.float32)
    return params


def gpt_forward(params, idx, cfg):
    """idx: (B, T) int32 -> logits (B, T, vocab). Loss path (targets) omitted."""
    B, T = idx.shape
    C, H = cfg["n_embd"], cfg["n_head"]
    V = cfg["vocab_size"]
    assert T <= cfg["block_size"]

    # embedding gather + positional add is cheap JAX glue
    x = jnp.take(params["wte"], idx, axis=0).astype(jnp.float32) + params["wpe"][:T][None]
    x = x.reshape(B * T, C)

    for L in params["blocks"]:
        qkv = ln_linear(x, L["ln1_g"], L["ln1_b"], L["attn_w"], L["attn_b"])  # (M, 3C)
        y = flash_attention(qkv.reshape(B, T, 3 * C), n_head=H)               # (B, T, C)
        x = linear_residual(y.reshape(B * T, C), L["proj_w"], L["proj_b"], x)
        x = mlp_block(x, L["ln2_g"], L["ln2_b"], L["fc_w"], L["fc_b"],
                      L["mlp_proj_w"], L["mlp_proj_b"])

    logits = ln_lm_head(x, params["lnf_g"], params["lnf_b"], params["wte_t"])
    return logits.reshape(B, T, V)


# ----------------------------- pure-JAX reference ---------------------------

def ref_forward(params, idx, cfg):
    B, T = idx.shape
    C, H = cfg["n_embd"], cfg["n_head"]
    D = C // H
    f32 = lambda a: a.astype(jnp.float32)

    def ln(x, g, b):
        mu = x.mean(-1, keepdims=True)
        var = jnp.square(x - mu).mean(-1, keepdims=True)
        return (x - mu) / jnp.sqrt(var + 1e-5) * g + b

    def gelu(x):
        c = 0.7978845608028654
        return 0.5 * x * (1.0 + jnp.tanh(c * (x + 0.044715 * x ** 3)))

    x = jnp.take(f32(params["wte"]), idx, axis=0) + params["wpe"][:T][None]
    mask = jnp.tril(jnp.ones((T, T), bool))
    for L in params["blocks"]:
        h = ln(x, L["ln1_g"], L["ln1_b"])
        qkv = h @ f32(L["attn_w"]) + L["attn_b"]
        q, k, v = jnp.split(qkv, 3, axis=-1)
        q = q.reshape(B, T, H, D).transpose(0, 2, 1, 3)
        k = k.reshape(B, T, H, D).transpose(0, 2, 1, 3)
        v = v.reshape(B, T, H, D).transpose(0, 2, 1, 3)
        s = jnp.einsum("bhqd,bhkd->bhqk", q, k) / math.sqrt(D)
        s = jnp.where(mask, s, NEG_BIG)
        p = jax.nn.softmax(s, axis=-1)
        y = jnp.einsum("bhqk,bhkd->bhqd", p, v).transpose(0, 2, 1, 3).reshape(B, T, C)
        x = x + (y @ f32(L["proj_w"]) + L["proj_b"])
        h2 = ln(x, L["ln2_g"], L["ln2_b"])
        m = gelu(h2 @ f32(L["fc_w"]) + L["fc_b"]) @ f32(L["mlp_proj_w"]) + L["mlp_proj_b"]
        x = x + m
    x = ln(x, params["lnf_g"], params["lnf_b"])
    return x @ f32(params["wte"]).T


# ----------------------------- main ------------------------------------------

if __name__ == "__main__":
    cfg = dict(vocab_size=512, block_size=64, n_layer=2, n_head=4, n_embd=128)
    params = init_params(cfg, seed=0)

    B, T = 2, 16
    idx = jax.random.randint(jax.random.PRNGKey(0), (B, T), 0, cfg["vocab_size"],
                             dtype=jnp.int32)

    run = jax.jit(lambda p, i: gpt_forward(p, i, cfg))
    logits = run(params, idx)
    jax.block_until_ready(logits)
    assert logits.shape == (B, T, cfg["vocab_size"]) and logits.dtype == jnp.float32

    ref = ref_forward(params, idx, cfg)
    max_err = float(jnp.max(jnp.abs(logits - ref)))
    # bf16 MXU operands (f32 accumulation) + approx reciprocal => slightly looser tol
    assert max_err < 2e-2, f"mismatch vs reference: {max_err}"

    # TODO(synk): cross-entropy loss path (targets != None) not implemented; forward returns logits only.
    print("KERNEL_OK")
</pallas_src>

<mosaic_0001>
module attributes {stable_mosaic.version = 11 : i64} {
  func.func @_mlp_kernel(%arg0: i32, %arg1: i32, %arg2: memref<16x128xf32, #tpu.memory_space<vmem>>, %arg3: memref<1x128xf32, #tpu.memory_space<vmem>>, %arg4: memref<1x128xf32, #tpu.memory_space<vmem>>, %arg5: memref<128x512xbf16, #tpu.memory_space<vmem>>, %arg6: memref<1x512xf32, #tpu.memory_space<vmem>>, %arg7: memref<512x128xbf16, #tpu.memory_space<vmem>>, %arg8: memref<1x128xf32, #tpu.memory_space<vmem>>, %arg9: memref<16x128xf32, #tpu.memory_space<vmem>>, %arg10: memref<16x128xf32, #tpu.memory_space<vmem>>, %arg11: memref<16x128xbf16, #tpu.memory_space<vmem>>) attributes {dimension_semantics = [#tpu.dimension_semantics<parallel>, #tpu.dimension_semantics<arbitrary>], iteration_bounds = array<i64: 2, 1>, scalar_prefetch = 0 : i64, scratch_operands = 2 : i64, tpu.core_type = #tpu.core_type<tc>, window_params = [{transform_indices = @transform_0, window_bounds = array<i64: 16, 128>}, {pipeline_mode = #tpu.pipeline_mode<synchronous>, transform_indices = @transform_1, window_bounds = array<i64: 1, 128>}, {pipeline_mode = #tpu.pipeline_mode<synchronous>, transform_indices = @transform_2, window_bounds = array<i64: 1, 128>}, {transform_indices = @transform_3, window_bounds = array<i64: 128, 512>}, {transform_indices = @transform_4, window_bounds = array<i64: 1, 512>}, {transform_indices = @transform_5, window_bounds = array<i64: 512, 128>}, {pipeline_mode = #tpu.pipeline_mode<synchronous>, transform_indices = @transform_6, window_bounds = array<i64: 1, 128>}, {transform_indices = @transform_7, window_bounds = array<i64: 16, 128>}]} {
    %c0_i32 = arith.constant 0 : i32
    %0 = arith.cmpi eq, %arg1, %c0_i32 : i32
    %1 = arith.extui %0 : i1 to i32
    %c0_i32_0 = arith.constant 0 : i32
    %2 = arith.cmpi ne, %1, %c0_i32_0 : i32
    scf.if %2 {
      %cst_19 = arith.constant 0.000000e+00 : f32
      %31 = vector.broadcast %cst_19 : f32 to vector<16x128xf32>
      %c0_20 = arith.constant 0 : index
      %c0_21 = arith.constant 0 : index
      %32 = vector.load %arg10[%c0_20, %c0_21] : memref<16x128xf32, #tpu.memory_space<vmem>>, vector<16x128xf32>
      tpu.vector_store %arg10[%c0_20, %c0_21], %31 {strides = array<i32>} : memref<16x128xf32, #tpu.memory_space<vmem>>, vector<16x128xf32>,
      %c0_22 = arith.constant 0 : index
      %c0_23 = arith.constant 0 : index
      %33 = vector.load %arg2[%c0_22, %c0_23] : memref<16x128xf32, #tpu.memory_space<vmem>>, vector<16x128xf32>
      %c0_24 = arith.constant 0 : index
      %c0_25 = arith.constant 0 : index
      %34 = vector.load %arg3[%c0_24, %c0_25] : memref<1x128xf32, #tpu.memory_space<vmem>>, vector<1x128xf32>
      %c0_26 = arith.constant 0 : index
      %c0_27 = arith.constant 0 : index
      %35 = vector.load %arg4[%c0_26, %c0_27] : memref<1x128xf32, #tpu.memory_space<vmem>>, vector<1x128xf32>
      %cst_28 = arith.constant dense<0.000000e+00> : vector<16xf32>
      %36 = vector.multi_reduction <add>, %33, %cst_28 [1] : vector<16x128xf32> to vector<16xf32>
      %37 = vector.shape_cast %36 : vector<16xf32> to vector<16x1xf32>
      %cst_29 = arith.constant 1.280000e+02 : f32
      %38 = vector.broadcast %cst_29 : f32 to vector<16x1xf32>
      %39 = arith.divf %37, %38 : vector<16x1xf32>
      %40 = vector.broadcast %39 : vector<16x1xf32> to vector<16x128xf32>
      %41 = arith.subf %33, %40 : vector<16x128xf32>
      %42 = arith.mulf %41, %41 : vector<16x128xf32>
      %cst_30 = arith.constant dense<0.000000e+00> : vector<16xf32>
      %43 = vector.multi_reduction <add>, %42, %cst_30 [1] : vector<16x128xf32> to vector<16xf32>
      %44 = vector.shape_cast %43 : vector<16xf32> to vector<16x1xf32>
      %cst_31 = arith.constant 1.280000e+02 : f32
      %45 = vector.broadcast %cst_31 : f32 to vector<16x1xf32>
      %46 = arith.divf %44, %45 : vector<16x1xf32>
      %47 = vector.broadcast %39 : vector<16x1xf32> to vector<16x128xf32>
      %48 = arith.subf %33, %47 : vector<16x128xf32>
      %cst_32 = arith.constant 9.99999974E-6 : f32
      %49 = vector.broadcast %cst_32 : f32 to vector<16x1xf32>
      %50 = arith.addf %46, %49 : vector<16x1xf32>
      %51 = math.rsqrt %50 : vector<16x1xf32>
      %52 = vector.broadcast %51 : vector<16x1xf32> to vector<16x128xf32>
      %53 = arith.mulf %48, %52 : vector<16x128xf32>
      %54 = vector.broadcast %34 : vector<1x128xf32> to vector<16x128xf32>
      %55 = arith.mulf %53, %54 : vector<16x128xf32>
      %56 = vector.broadcast %35 : vector<1x128xf32> to vector<16x128xf32>
      %57 = arith.addf %55, %56 : vector<16x128xf32>
      %58 = arith.truncf %57 : vector<16x128xf32> to vector<16x128xbf16>
      %c0_33 = arith.constant 0 : index
      %c0_34 = arith.constant 0 : index
      %59 = vector.load %arg11[%c0_33, %c0_34] : memref<16x128xbf16, #tpu.memory_space<vmem>>, vector<16x128xbf16>
      tpu.vector_store %arg11[%c0_33, %c0_34], %58 {strides = array<i32>} : memref<16x128xbf16, #tpu.memory_space<vmem>>, vector<16x128xbf16>,
    } else {
    }
    %c0 = arith.constant 0 : index
    %c0_1 = arith.constant 0 : index
    %3 = vector.load %arg11[%c0, %c0_1] : memref<16x128xbf16, #tpu.memory_space<vmem>>, vector<16x128xbf16>
    %c0_2 = arith.constant 0 : index
    %c0_3 = arith.constant 0 : index
    %4 = vector.load %arg5[%c0_2, %c0_3] : memref<128x512xbf16, #tpu.memory_space<vmem>>, vector<128x512xbf16>
    %cst = arith.constant dense<0.000000e+00> : vector<16x512xf32>
    %5 = tpu.matmul %3, %4, %cst {dimension_numbers = #tpu.dot_dimension_numbers<[1], [0], [0], [1], [0, 0, 1, 1], [], []>} : vector<16x128xbf16>, vector<128x512xbf16>, vector<16x512xf32> -> vector<16x512xf32>
    %c0_4 = arith.constant 0 : index
    %c0_5 = arith.constant 0 : index
    %6 = vector.load %arg6[%c0_4, %c0_5] : memref<1x512xf32, #tpu.memory_space<vmem>>, vector<1x512xf32>
    %7 = vector.broadcast %6 : vector<1x512xf32> to vector<16x512xf32>
    %8 = arith.addf %5, %7 : vector<16x512xf32>
    %cst_6 = arith.constant 5.000000e-01 : f32
    %9 = vector.broadcast %cst_6 : f32 to vector<16x512xf32>
    %10 = arith.mulf %9, %8 : vector<16x512xf32>
    %cst_7 = arith.constant 4.471500e-02 : f32
    %11 = vector.broadcast %cst_7 : f32 to vector<16x512xf32>
    %12 = arith.mulf %11, %8 : vector<16x512xf32>
    %13 = arith.mulf %12, %8 : vector<16x512xf32>
    %14 = arith.mulf %13, %8 : vector<16x512xf32>
    %15 = arith.addf %8, %14 : vector<16x512xf32>
    %cst_8 = arith.constant 0.797884583 : f32
    %16 = vector.broadcast %cst_8 : f32 to vector<16x512xf32>
    %17 = arith.mulf %16, %15 : vector<16x512xf32>
    %18 = math.tanh %17 : vector<16x512xf32>
    %cst_9 = arith.constant 1.000000e+00 : f32
    %19 = vector.broadcast %cst_9 : f32 to vector<16x512xf32>
    %20 = arith.addf %19, %18 : vector<16x512xf32>
    %21 = arith.mulf %10, %20 : vector<16x512xf32>
    %c0_10 = arith.constant 0 : index
    %c0_11 = arith.constant 0 : index
    %22 = vector.load %arg10[%c0_10, %c0_11] : memref<16x128xf32, #tpu.memory_space<vmem>>, vector<16x128xf32>
    %23 = arith.truncf %21 : vector<16x512xf32> to vector<16x512xbf16>
    %c0_12 = arith.constant 0 : index
    %c0_13 = arith.constant 0 : index
    %24 = vector.load %arg7[%c0_12, %c0_13] : memref<512x128xbf16, #tpu.memory_space<vmem>>, vector<512x128xbf16>
    %cst_14 = arith.constant dense<0.000000e+00> : vector<16x128xf32>
    %25 = tpu.matmul %23, %24, %cst_14 {dimension_numbers = #tpu.dot_dimension_numbers<[1], [0], [0], [1], [0, 0, 1, 1], [], []>} : vector<16x512xbf16>, vector<512x128xbf16>, vector<16x128xf32> -> vector<16x128xf32>
    %26 = arith.addf %22, %25 : vector<16x128xf32>
    %c0_15 = arith.constant 0 : index
    %c0_16 = arith.constant 0 : index
    %27 = vector.load %arg10[%c0_15, %c0_16] : memref<16x128xf32, #tpu.memory_space<vmem>>, vector<16x128xf32>
    tpu.vector_store %arg10[%c0_15, %c0_16], %26 {strides = array<i32>} : memref<16x128xf32, #tpu.memory_space<vmem>>, vector<16x128xf32>,
    %c0_i32_17 = arith.constant 0 : i32
    %28 = arith.cmpi eq, %arg1, %c0_i32_17 : i32
    %29 = arith.extui %28 : i1 to i32
    %c0_i32_18 = arith.constant 0 : i32
    %30 = arith.cmpi ne, %29, %c0_i32_18 : i32
    scf.if %30 {
      %c0_19 = arith.constant 0 : index
      %c0_20 = arith.constant 0 : index
      %31 = vector.load %arg2[%c0_19, %c0_20] : memref<16x128xf32, #tpu.memory_space<vmem>>, vector<16x128xf32>
      %c0_21 = arith.constant 0 : index
      %c0_22 = arith.constant 0 : index
      %32 = vector.load %arg10[%c0_21, %c0_22] : memref<16x128xf32, #tpu.memory_space<vmem>>, vector<16x128xf32>
      %33 = arith.addf %31, %32 : vector<16x128xf32>
      %c0_23 = arith.constant 0 : index
      %c0_24 = arith.constant 0 : index
      %34 = vector.load %arg8[%c0_23, %c0_24] : memref<1x128xf32, #tpu.memory_space<vmem>>, vector<1x128xf32>
      %35 = vector.broadcast %34 : vector<1x128xf32> to vector<16x128xf32>
      %36 = arith.addf %33, %35 : vector<16x128xf32>
      %c0_25 = arith.constant 0 : index
      %c0_26 = arith.constant 0 : index
      %37 = vector.load %arg9[%c0_25, %c0_26] : memref<16x128xf32, #tpu.memory_space<vmem>>, vector<16x128xf32>
      tpu.vector_store %arg9[%c0_25, %c0_26], %36 {strides = array<i32>} : memref<16x128xf32, #tpu.memory_space<vmem>>, vector<16x128xf32>,
    } else {
    }
    return
  }
  func.func @transform_0(%arg0: i32, %arg1: i32) -> (i32, i32) {
    %c0_i32 = arith.constant 0 : i32
    %c0_i32_0 = arith.constant 0 : i32
    return %arg0, %c0_i32 : i32, i32
  }
  func.func @transform_1(%arg0: i32, %arg1: i32) -> (i32, i32) {
    %c0_i32 = arith.constant 0 : i32
    %c0_i32_0 = arith.constant 0 : i32
    %c0_i32_1 = arith.constant 0 : i32
    return %c0_i32, %c0_i32_0 : i32, i32
  }
  func.func @transform_2(%arg0: i32, %arg1: i32) -> (i32, i32) {
    %c0_i32 = arith.constant 0 : i32
    %c0_i32_0 = arith.constant 0 : i32
    %c0_i32_1 = arith.constant 0 : i32
    return %c0_i32, %c0_i32_0 : i32, i32
  }
  func.func @transform_3(%arg0: i32, %arg1: i32) -> (i32, i32) {
    %c0_i32 = arith.constant 0 : i32
    %c0_i32_0 = arith.constant 0 : i32
    return %c0_i32, %arg1 : i32, i32
  }
  func.func @transform_4(%arg0: i32, %arg1: i32) -> (i32, i32) {
    %c0_i32 = arith.constant 0 : i32
    %c0_i32_0 = arith.constant 0 : i32
    return %c0_i32, %arg1 : i32, i32
  }
  func.func @transform_5(%arg0: i32, %arg1: i32) -> (i32, i32) {
    %c0_i32 = arith.constant 0 : i32
    %c0_i32_0 = arith.constant 0 : i32
    return %arg1, %c0_i32 : i32, i32
  }
  func.func @transform_6(%arg0: i32, %arg1: i32) -> (i32, i32) {
    %c0_i32 = arith.constant 0 : i32
    %c0_i32_0 = arith.constant 0 : i32
    %c0_i32_1 = arith.constant 0 : i32
    return %c0_i32, %c0_i32_0 : i32, i32
  }
  func.func @transform_7(%arg0: i32, %arg1: i32) -> (i32, i32) {
    %c0_i32 = arith.constant 0 : i32
    %c0_i32_0 = arith.constant 0 : i32
    return %arg0, %c0_i32 : i32, i32
  }
}

module attributes {stable_mosaic.version = 11 : i64} {
  func.func @_linear_residual_kernel(%arg0: i32, %arg1: i32, %arg2: memref<16x128xf32, #tpu.memory_space<vmem>>, %arg3: memref<128x128xbf16, #tpu.memory_space<vmem>>, %arg4: memref<1x128xf32, #tpu.memory_space<vmem>>, %arg5: memref<16x128xf32, #tpu.memory_space<vmem>>, %arg6: memref<16x128xf32, #tpu.memory_space<vmem>>) attributes {dimension_semantics = [#tpu.dimension_semantics<parallel>, #tpu.dimension_semantics<parallel>], iteration_bounds = array<i64: 2, 1>, scalar_prefetch = 0 : i64, scratch_operands = 0 : i64, tpu.core_type = #tpu.core_type<tc>, window_params = [{transform_indices = @transform_0, window_bounds = array<i64: 16, 128>}, {transform_indices = @transform_1, window_bounds = array<i64: 128, 128>}, {transform_indices = @transform_2, window_bounds = array<i64: 1, 128>}, {transform_indices = @transform_3, window_bounds = array<i64: 16, 128>}, {transform_indices = @transform_4, window_bounds = array<i64: 16, 128>}]} {
    %c0 = arith.constant 0 : index
    %c0_0 = arith.constant 0 : index
    %0 = vector.load %arg2[%c0, %c0_0] : memref<16x128xf32, #tpu.memory_space<vmem>>, vector<16x128xf32>
    %1 = arith.truncf %0 : vector<16x128xf32> to vector<16x128xbf16>
    %c0_1 = arith.constant 0 : index
    %c0_2 = arith.constant 0 : index
    %2 = vector.load %arg3[%c0_1, %c0_2] : memref<128x128xbf16, #tpu.memory_space<vmem>>, vector<128x128xbf16>
    %cst = arith.constant dense<0.000000e+00> : vector<16x128xf32>
    %3 = tpu.matmul %1, %2, %cst {dimension_numbers = #tpu.dot_dimension_numbers<[1], [0], [0], [1], [0, 0, 1, 1], [], []>} : vector<16x128xbf16>, vector<128x128xbf16>, vector<16x128xf32> -> vector<16x128xf32>
    %c0_3 = arith.constant 0 : index
    %c0_4 = arith.constant 0 : index
    %4 = vector.load %arg5[%c0_3, %c0_4] : memref<16x128xf32, #tpu.memory_space<vmem>>, vector<16x128xf32>
    %5 = arith.addf %4, %3 : vector<16x128xf32>
    %c0_5 = arith.constant 0 : index
    %c0_6 = arith.constant 0 : index
    %6 = vector.load %arg4[%c0_5, %c0_6] : memref<1x128xf32, #tpu.memory_space<vmem>>, vector<1x128xf32>
    %7 = vector.broadcast %6 : vector<1x128xf32> to vector<16x128xf32>
    %8 = arith.addf %5, %7 : vector<16x128xf32>
    %c0_7 = arith.constant 0 : index
    %c0_8 = arith.constant 0 : index
    %9 = vector.load %arg6[%c0_7, %c0_8] : memref<16x128xf32, #tpu.memory_space<vmem>>, vector<16x128xf32>
    tpu.vector_store %arg6[%c0_7, %c0_8], %8 {strides = array<i32>} : memref<16x128xf32, #tpu.memory_space<vmem>>, vector<16x128xf32>,
    return
  }
  func.func @transform_0(%arg0: i32, %arg1: i32) -> (i32, i32) {
    %c0_i32 = arith.constant 0 : i32
    %c0_i32_0 = arith.constant 0 : i32
    return %arg0, %c0_i32 : i32, i32
  }
  func.func @transform_1(%arg0: i32, %arg1: i32) -> (i32, i32) {
    %c0_i32 = arith.constant 0 : i32
    %c0_i32_0 = arith.constant 0 : i32
    return %c0_i32, %arg1 : i32, i32
  }
  func.func @transform_2(%arg0: i32, %arg1: i32) -> (i32, i32) {
    %c0_i32 = arith.constant 0 : i32
    %c0_i32_0 = arith.constant 0 : i32
    return %c0_i32, %arg1 : i32, i32
  }
  func.func @transform_3(%arg0: i32, %arg1: i32) -> (i32, i32) {
    %c0_i32 = arith.constant 0 : i32
    return %arg0, %arg1 : i32, i32
  }
  func.func @transform_4(%arg0: i32, %arg1: i32) -> (i32, i32) {
    %c0_i32 = arith.constant 0 : i32
    return %arg0, %arg1 : i32, i32
  }
}

module attributes {stable_mosaic.version = 11 : i64} {
  func.func @_ln_linear_kernel(%arg0: i32, %arg1: i32, %arg2: memref<16x128xf32, #tpu.memory_space<vmem>>, %arg3: memref<1x128xf32, #tpu.memory_space<vmem>>, %arg4: memref<1x128xf32, #tpu.memory_space<vmem>>, %arg5: memref<128x384xbf16, #tpu.memory_space<vmem>>, %arg6: memref<1x384xf32, #tpu.memory_space<vmem>>, %arg7: memref<16x384xf32, #tpu.memory_space<vmem>>, %arg8: memref<16x128xbf16, #tpu.memory_space<vmem>>) attributes {dimension_semantics = [#tpu.dimension_semantics<parallel>, #tpu.dimension_semantics<arbitrary>], iteration_bounds = array<i64: 2, 1>, scalar_prefetch = 0 : i64, scratch_operands = 1 : i64, tpu.core_type = #tpu.core_type<tc>, window_params = [{transform_indices = @transform_0, window_bounds = array<i64: 16, 128>}, {pipeline_mode = #tpu.pipeline_mode<synchronous>, transform_indices = @transform_1, window_bounds = array<i64: 1, 128>}, {pipeline_mode = #tpu.pipeline_mode<synchronous>, transform_indices = @transform_2, window_bounds = array<i64: 1, 128>}, {transform_indices = @transform_3, window_bounds = array<i64: 128, 384>}, {transform_indices = @transform_4, window_bounds = array<i64: 1, 384>}, {transform_indices = @transform_5, window_bounds = array<i64: 16, 384>}]} {
    %c0_i32 = arith.constant 0 : i32
    %0 = arith.cmpi eq, %arg1, %c0_i32 : i32
    %1 = arith.extui %0 : i1 to i32
    %c0_i32_0 = arith.constant 0 : i32
    %2 = arith.cmpi ne, %1, %c0_i32_0 : i32
    scf.if %2 {
      %c0_8 = arith.constant 0 : index
      %c0_9 = arith.constant 0 : index
      %10 = vector.load %arg2[%c0_8, %c0_9] : memref<16x128xf32, #tpu.memory_space<vmem>>, vector<16x128xf32>
      %c0_10 = arith.constant 0 : index
      %c0_11 = arith.constant 0 : index
      %11 = vector.load %arg3[%c0_10, %c0_11] : memref<1x128xf32, #tpu.memory_space<vmem>>, vector<1x128xf32>
      %c0_12 = arith.constant 0 : index
      %c0_13 = arith.constant 0 : index
      %12 = vector.load %arg4[%c0_12, %c0_13] : memref<1x128xf32, #tpu.memory_space<vmem>>, vector<1x128xf32>
      %cst_14 = arith.constant dense<0.000000e+00> : vector<16xf32>
      %13 = vector.multi_reduction <add>, %10, %cst_14 [1] : vector<16x128xf32> to vector<16xf32>
      %14 = vector.shape_cast %13 : vector<16xf32> to vector<16x1xf32>
      %cst_15 = arith.constant 1.280000e+02 : f32
      %15 = vector.broadcast %cst_15 : f32 to vector<16x1xf32>
      %16 = arith.divf %14, %15 : vector<16x1xf32>
      %17 = vector.broadcast %16 : vector<16x1xf32> to vector<16x128xf32>
      %18 = arith.subf %10, %17 : vector<16x128xf32>
      %19 = arith.mulf %18, %18 : vector<16x128xf32>
      %cst_16 = arith.constant dense<0.000000e+00> : vector<16xf32>
      %20 = vector.multi_reduction <add>, %19, %cst_16 [1] : vector<16x128xf32> to vector<16xf32>
      %21 = vector.shape_cast %20 : vector<16xf32> to vector<16x1xf32>
      %cst_17 = arith.constant 1.280000e+02 : f32
      %22 = vector.broadcast %cst_17 : f32 to vector<16x1xf32>
      %23 = arith.divf %21, %22 : vector<16x1xf32>
      %24 = vector.broadcast %16 : vector<16x1xf32> to vector<16x128xf32>
      %25 = arith.subf %10, %24 : vector<16x128xf32>
      %cst_18 = arith.constant 9.99999974E-6 : f32
      %26 = vector.broadcast %cst_18 : f32 to vector<16x1xf32>
      %27 = arith.addf %23, %26 : vector<16x1xf32>
      %28 = math.rsqrt %27 : vector<16x1xf32>
      %29 = vector.broadcast %28 : vector<16x1xf32> to vector<16x128xf32>
      %30 = arith.mulf %25, %29 : vector<16x128xf32>
      %31 = vector.broadcast %11 : vector<1x128xf32> to vector<16x128xf32>
      %32 = arith.mulf %30, %31 : vector<16x128xf32>
      %33 = vector.broadcast %12 : vector<1x128xf32> to vector<16x128xf32>
      %34 = arith.addf %32, %33 : vector<16x128xf32>
      %35 = arith.truncf %34 : vector<16x128xf32> to vector<16x128xbf16>
      %c0_19 = arith.constant 0 : index
      %c0_20 = arith.constant 0 : index
      %36 = vector.load %arg8[%c0_19, %c0_20] : memref<16x128xbf16, #tpu.memory_space<vmem>>, vector<16x128xbf16>
      tpu.vector_store %arg8[%c0_19, %c0_20], %35 {strides = array<i32>} : memref<16x128xbf16, #tpu.memory_space<vmem>>, vector<16x128xbf16>,
    } else {
    }
    %c0 = arith.constant 0 : index
    %c0_1 = arith.constant 0 : index
    %3 = vector.load %arg8[%c0, %c0_1] : memref<16x128xbf16, #tpu.memory_space<vmem>>, vector<16x128xbf16>
    %c0_2 = arith.constant 0 : index
    %c0_3 = arith.constant 0 : index
    %4 = vector.load %arg5[%c0_2, %c0_3] : memref<128x384xbf16, #tpu.memory_space<vmem>>, vector<128x384xbf16>
    %cst = arith.constant dense<0.000000e+00> : vector<16x384xf32>
    %5 = tpu.matmul %3, %4, %cst {dimension_numbers = #tpu.dot_dimension_numbers<[1], [0], [0], [1], [0, 0, 1, 1], [], []>} : vector<16x128xbf16>, vector<128x384xbf16>, vector<16x384xf32> -> vector<16x384xf32>
    %c0_4 = arith.constant 0 : index
    %c0_5 = arith.constant 0 : index
    %6 = vector.load %arg6[%c0_4, %c0_5] : memref<1x384xf32, #tpu.memory_space<vmem>>, vector<1x384xf32>
    %7 = vector.broadcast %6 : vector<1x384xf32> to vector<16x384xf32>
    %8 = arith.addf %5, %7 : vector<16x384xf32>
    %c0_6 = arith.constant 0 : index
    %c0_7 = arith.constant 0 : index
    %9 = vector.load %arg7[%c0_6, %c0_7] : memref<16x384xf32, #tpu.memory_space<vmem>>, vector<16x384xf32>
    tpu.vector_store %arg7[%c0_6, %c0_7], %8 {strides = array<i32>} : memref<16x384xf32, #tpu.memory_space<vmem>>, vector<16x384xf32>,
    return
  }
  func.func @transform_0(%arg0: i32, %arg1: i32) -> (i32, i32) {
    %c0_i32 = arith.constant 0 : i32
    %c0_i32_0 = arith.constant 0 : i32
    return %arg0, %c0_i32 : i32, i32
  }
  func.func @transform_1(%arg0: i32, %arg1: i32) -> (i32, i32) {
    %c0_i32 = arith.constant 0 : i32
    %c0_i32_0 = arith.constant 0 : i32
    %c0_i32_1 = arith.constant 0 : i32
    return %c0_i32, %c0_i32_0 : i32, i32
  }
  func.func @transform_2(%arg0: i32, %arg1: i32) -> (i32, i32) {
    %c0_i32 = arith.constant 0 : i32
    %c0_i32_0 = arith.constant 0 : i32
    %c0_i32_1 = arith.constant 0 : i32
    return %c0_i32, %c0_i32_0 : i32, i32
  }
  func.func @transform_3(%arg0: i32, %arg1: i32) -> (i32, i32) {
    %c0_i32 = arith.constant 0 : i32
    %c0_i32_0 = arith.constant 0 : i32
    return %c0_i32, %arg1 : i32, i32
  }
  func.func @transform_4(%arg0: i32, %arg1: i32) -> (i32, i32) {
    %c0_i32 = arith.constant 0 : i32
    %c0_i32_0 = arith.constant 0 : i32
    return %c0_i32, %arg1 : i32, i32
  }
  func.func @transform_5(%arg0: i32, %arg1: i32) -> (i32, i32) {
    %c0_i32 = arith.constant 0 : i32
    return %arg0, %arg1 : i32, i32
  }
}

module attributes {stable_mosaic.version = 11 : i64} {
  func.func @_flash_attn_kernel(%arg0: i32, %arg1: i32, %arg2: i32, %arg3: memref<1x16x128xf32, #tpu.memory_space<vmem>>, %arg4: memref<1x16x128xf32, #tpu.memory_space<vmem>>, %arg5: memref<1x16x128xf32, #tpu.memory_space<vmem>>, %arg6: memref<1x16x128xf32, #tpu.memory_space<vmem>>, %arg7: memref<4x16x32xbf16, #tpu.memory_space<vmem>>, %arg8: memref<4x16x1xf32, #tpu.memory_space<vmem>>, %arg9: memref<4x16x1xf32, #tpu.memory_space<vmem>>, %arg10: memref<4x16x32xf32, #tpu.memory_space<vmem>>) attributes {dimension_semantics = [#tpu.dimension_semantics<parallel>, #tpu.dimension_semantics<parallel>, #tpu.dimension_semantics<arbitrary>], iteration_bounds = array<i64: 2, 1, 1>, scalar_prefetch = 0 : i64, scratch_operands = 4 : i64, tpu.core_type = #tpu.core_type<tc>, window_params = [{transform_indices = @transform_0, window_bounds = array<i64: 1, 16, 128>}, {transform_indices = @transform_1, window_bounds = array<i64: 1, 16, 128>}, {transform_indices = @transform_2, window_bounds = array<i64: 1, 16, 128>}, {transform_indices = @transform_3, window_bounds = array<i64: 1, 16, 128>}]} {
    %c0_i32 = arith.constant 0 : i32
    %0 = arith.cmpi eq, %arg2, %c0_i32 : i32
    %1 = arith.extui %0 : i1 to i32
    %c0_i32_0 = arith.constant 0 : i32
    %2 = arith.cmpi ne, %1, %c0_i32_0 : i32
    scf.if %2 {
      %cst = arith.constant 0xFF800000 : f32
      %12 = vector.broadcast %cst : f32 to vector<4x16x1xf32>
      %c0 = arith.constant 0 : index
      %c0_5 = arith.constant 0 : index
      %c0_6 = arith.constant 0 : index
      %13 = vector.load %arg8[%c0, %c0_5, %c0_6] : memref<4x16x1xf32, #tpu.memory_space<vmem>>, vector<4x16x1xf32>
      tpu.vector_store %arg8[%c0, %c0_5, %c0_6], %12 {strides = array<i32>} : memref<4x16x1xf32, #tpu.memory_space<vmem>>, vector<4x16x1xf32>,
      %cst_7 = arith.constant 0.000000e+00 : f32
      %14 = vector.broadcast %cst_7 : f32 to vector<4x16x1xf32>
      %c0_8 = arith.constant 0 : index
      %c0_9 = arith.constant 0 : index
      %c0_10 = arith.constant 0 : index
      %15 = vector.load %arg9[%c0_8, %c0_9, %c0_10] : memref<4x16x1xf32, #tpu.memory_space<vmem>>, vector<4x16x1xf32>
      tpu.vector_store %arg9[%c0_8, %c0_9, %c0_10], %14 {strides = array<i32>} : memref<4x16x1xf32, #tpu.memory_space<vmem>>, vector<4x16x1xf32>,
      %cst_11 = arith.constant 0.000000e+00 : f32
      %16 = vector.broadcast %cst_11 : f32 to vector<4x16x32xf32>
      %c0_12 = arith.constant 0 : index
      %c0_13 = arith.constant 0 : index
      %c0_14 = arith.constant 0 : index
      %17 = vector.load %arg10[%c0_12, %c0_13, %c0_14] : memref<4x16x32xf32, #tpu.memory_space<vmem>>, vector<4x16x32xf32>
      tpu.vector_store %arg10[%c0_12, %c0_13, %c0_14], %16 {strides = array<i32>} : memref<4x16x32xf32, #tpu.memory_space<vmem>>, vector<4x16x32xf32>,
      %c0_15 = arith.constant 0 : index
      %c0_16 = arith.constant 0 : index
      %c0_17 = arith.constant 0 : index
      %18 = vector.load %arg3[%c0_15, %c0_16, %c0_17] : memref<1x16x128xf32, #tpu.memory_space<vmem>>, vector<1x16x128xf32>
      %19 = vector.shape_cast %18 : vector<1x16x128xf32> to vector<16x128xf32>
      %20 = vector.extract_strided_slice %19 {offsets = [0, 0], sizes = [16, 32], strides = [1, 1]} : vector<16x128xf32> to vector<16x32xf32>
      %cst_18 = arith.constant 0.176776692 : f32
      %21 = vector.broadcast %cst_18 : f32 to vector<16x32xf32>
      %22 = arith.mulf %20, %21 : vector<16x32xf32>
      %23 = arith.truncf %22 : vector<16x32xf32> to vector<16x32xbf16>
      %c0_19 = arith.constant 0 : index
      %c0_20 = arith.constant 0 : index
      %c0_21 = arith.constant 0 : index
      %24 = vector.load %arg7[%c0_19, %c0_20, %c0_21] : memref<4x16x32xbf16, #tpu.memory_space<vmem>>, vector<1x16x32xbf16>
      %25 = vector.shape_cast %24 : vector<1x16x32xbf16> to vector<16x32xbf16>
      %26 = vector.shape_cast %23 : vector<16x32xbf16> to vector<1x16x32xbf16>
      tpu.vector_store %arg7[%c0_19, %c0_20, %c0_21], %26 {strides = array<i32>} : memref<4x16x32xbf16, #tpu.memory_space<vmem>>, vector<1x16x32xbf16>,
      %27 = vector.extract_strided_slice %19 {offsets = [0, 32], sizes = [16, 32], strides = [1, 1]} : vector<16x128xf32> to vector<16x32xf32>
      %cst_22 = arith.constant 0.176776692 : f32
      %28 = vector.broadcast %cst_22 : f32 to vector<16x32xf32>
      %29 = arith.mulf %27, %28 : vector<16x32xf32>
      %30 = arith.truncf %29 : vector<16x32xf32> to vector<16x32xbf16>
      %c1 = arith.constant 1 : index
      %c0_23 = arith.constant 0 : index
      %c0_24 = arith.constant 0 : index
      %31 = vector.load %arg7[%c1, %c0_23, %c0_24] : memref<4x16x32xbf16, #tpu.memory_space<vmem>>, vector<1x16x32xbf16>
      %32 = vector.shape_cast %31 : vector<1x16x32xbf16> to vector<16x32xbf16>
      %33 = vector.shape_cast %30 : vector<16x32xbf16> to vector<1x16x32xbf16>
      tpu.vector_store %arg7[%c1, %c0_23, %c0_24], %33 {strides = array<i32>} : memref<4x16x32xbf16, #tpu.memory_space<vmem>>, vector<1x16x32xbf16>,
      %34 = vector.extract_strided_slice %19 {offsets = [0, 64], sizes = [16, 32], strides = [1, 1]} : vector<16x128xf32> to vector<16x32xf32>
      %cst_25 = arith.constant 0.176776692 : f32
      %35 = vector.broadcast %cst_25 : f32 to vector<16x32xf32>
      %36 = arith.mulf %34, %35 : vector<16x32xf32>
      %37 = arith.truncf %36 : vector<16x32xf32> to vector<16x32xbf16>
      %c2 = arith.constant 2 : index
      %c0_26 = arith.constant 0 : index
      %c0_27 = arith.constant 0 : index
      %38 = vector.load %arg7[%c2, %c0_26, %c0_27] : memref<4x16x32xbf16, #tpu.memory_space<vmem>>, vector<1x16x32xbf16>
      %39 = vector.shape_cast %38 : vector<1x16x32xbf16> to vector<16x32xbf16>
      %40 = vector.shape_cast %37 : vector<16x32xbf16> to vector<1x16x32xbf16>
      tpu.vector_store %arg7[%c2, %c0_26, %c0_27], %40 {strides = array<i32>} : memref<4x16x32xbf16, #tpu.memory_space<vmem>>, vector<1x16x32xbf16>,
      %41 = vector.extract_strided_slice %19 {offsets = [0, 96], sizes = [16, 32], strides = [1, 1]} : vector<16x128xf32> to vector<16x32xf32>
      %cst_28 = arith.constant 0.176776692 : f32
      %42 = vector.broadcast %cst_28 : f32 to vector<16x32xf32>
      %43 = arith.mulf %41, %42 : vector<16x32xf32>
      %44 = arith.truncf %43 : vector<16x32xf32> to vector<16x32xbf16>
      %c3 = arith.constant 3 : index
      %c0_29 = arith.constant 0 : index
      %c0_30 = arith.constant 0 : index
      %45 = vector.load %arg7[%c3, %c0_29, %c0_30] : memref<4x16x32xbf16, #tpu.memory_space<vmem>>, vector<1x16x32xbf16>
      %46 = vector.shape_cast %45 : vector<1x16x32xbf16> to vector<16x32xbf16>
      %47 = vector.shape_cast %44 : vector<16x32xbf16> to vector<1x16x32xbf16>
      tpu.vector_store %arg7[%c3, %c0_29, %c0_30], %47 {strides = array<i32>} : memref<4x16x32xbf16, #tpu.memory_space<vmem>>, vector<1x16x32xbf16>,
    } else {
    }
    %3 = arith.cmpi eq, %arg2, %arg1 : i32
    %4 = arith.extui %3 : i1 to i32
    %c0_i32_1 = arith.constant 0 : i32
    %5 = arith.cmpi ne, %4, %c0_i32_1 : i32
    scf.if %5 {
      %c0 = arith.constant 0 : index
      %c0_5 = arith.constant 0 : index
      %c0_6 = arith.constant 0 : index
      %12 = vector.load %arg4[%c0, %c0_5, %c0_6] : memref<1x16x128xf32, #tpu.memory_space<vmem>>, vector<1x16x128xf32>
      %13 = vector.shape_cast %12 : vector<1x16x128xf32> to vector<16x128xf32>
      %c0_7 = arith.constant 0 : index
      %c0_8 = arith.constant 0 : index
      %c0_9 = arith.constant 0 : index
      %14 = vector.load %arg5[%c0_7, %c0_8, %c0_9] : memref<1x16x128xf32, #tpu.memory_space<vmem>>, vector<1x16x128xf32>
      %15 = vector.shape_cast %14 : vector<1x16x128xf32> to vector<16x128xf32>
      %c16_i32 = arith.constant 16 : i32
      %16 = arith.muli %arg1, %c16_i32 : i32
      %17 = tpu.iota {dimensions = array<i32: 0>} : vector<16x16xi32>
      %18 = vector.broadcast %16 : i32 to vector<16x16xi32>
      %19 = arith.addi %18, %17 : vector<16x16xi32>
      %c16_i32_10 = arith.constant 16 : i32
      %20 = arith.muli %arg2, %c16_i32_10 : i32
      %21 = tpu.iota {dimensions = array<i32: 1>} : vector<16x16xi32>
      %22 = vector.broadcast %20 : i32 to vector<16x16xi32>
      %23 = arith.addi %22, %21 : vector<16x16xi32>
      %24 = arith.cmpi sge, %19, %23 : vector<16x16xi32>
      %25 = vector.extract_strided_slice %13 {offsets = [0, 0], sizes = [16, 32], strides = [1, 1]} : vector<16x128xf32> to vector<16x32xf32>
      %26 = arith.truncf %25 : vector<16x32xf32> to vector<16x32xbf16>
      %27 = vector.extract_strided_slice %15 {offsets = [0, 0], sizes = [16, 32], strides = [1, 1]} : vector<16x128xf32> to vector<16x32xf32>
      %28 = arith.truncf %27 : vector<16x32xf32> to vector<16x32xbf16>
      %c0_11 = arith.constant 0 : index
      %c0_12 = arith.constant 0 : index
      %c0_13 = arith.constant 0 : index
      %29 = vector.load %arg7[%c0_11, %c0_12, %c0_13] : memref<4x16x32xbf16, #tpu.memory_space<vmem>>, vector<1x16x32xbf16>
      %30 = vector.shape_cast %29 : vector<1x16x32xbf16> to vector<16x32xbf16>
      %cst = arith.constant dense<0.000000e+00> : vector<16x16xf32>
      %31 = tpu.matmul %30, %26, %cst {dimension_numbers = #tpu.dot_dimension_numbers<[1], [1], [0], [0], [0, 0, 1, 0], [], []>} : vector<16x32xbf16>, vector<16x32xbf16>, vector<16x16xf32> -> vector<16x16xf32>
      %cst_14 = arith.constant -1.000000e+30 : f32
      %32 = vector.broadcast %cst_14 : f32 to vector<16x16xf32>
      %33 = arith.select %24, %31, %32 : vector<16x16xi1>, vector<16x16xf32>
      %c0_15 = arith.constant 0 : index
      %c0_16 = arith.constant 0 : index
      %c0_17 = arith.constant 0 : index
      %34 = vector.load %arg8[%c0_15, %c0_16, %c0_17] : memref<4x16x1xf32, #tpu.memory_space<vmem>>, vector<1x16x1xf32>
      %35 = vector.shape_cast %34 : vector<1x16x1xf32> to vector<16x1xf32>
      %cst_18 = arith.constant dense<0xFF800000> : vector<16xf32>
      %36 = vector.multi_reduction <maximumf>, %33, %cst_18 [1] : vector<16x16xf32> to vector<16xf32>
      %37 = vector.shape_cast %36 : vector<16xf32> to vector<16x1xf32>
      %38 = arith.maximumf %35, %37 : vector<16x1xf32>
      %39 = arith.subf %35, %38 : vector<16x1xf32>
      %40 = math.exp %39 : vector<16x1xf32>
      %41 = vector.broadcast %38 : vector<16x1xf32> to vector<16x16xf32>
      %42 = arith.subf %33, %41 : vector<16x16xf32>
      %43 = math.exp %42 : vector<16x16xf32>
      %c0_19 = arith.constant 0 : index
      %c0_20 = arith.constant 0 : index
      %c0_21 = arith.constant 0 : index
      %44 = vector.load %arg9[%c0_19, %c0_20, %c0_21] : memref<4x16x1xf32, #tpu.memory_space<vmem>>, vector<1x16x1xf32>
      %45 = vector.shape_cast %44 : vector<1x16x1xf32> to vector<16x1xf32>
      %46 = arith.mulf %40, %45 : vector<16x1xf32>
      %cst_22 = arith.constant dense<0.000000e+00> : vector<16xf32>
      %47 = vector.multi_reduction <add>, %43, %cst_22 [1] : vector<16x16xf32> to vector<16xf32>
      %48 = vector.shape_cast %47 : vector<16xf32> to vector<16x1xf32>
      %49 = arith.addf %46, %48 : vector<16x1xf32>
      %c0_23 = arith.constant 0 : index
      %c0_24 = arith.constant 0 : index
      %c0_25 = arith.constant 0 : index
      %50 = vector.load %arg9[%c0_23, %c0_24, %c0_25] : memref<4x16x1xf32, #tpu.memory_space<vmem>>, vector<1x16x1xf32>
      %51 = vector.shape_cast %50 : vector<1x16x1xf32> to vector<16x1xf32>
      %52 = vector.shape_cast %49 : vector<16x1xf32> to vector<1x16x1xf32>
      tpu.vector_store %arg9[%c0_23, %c0_24, %c0_25], %52 {strides = array<i32>} : memref<4x16x1xf32, #tpu.memory_space<vmem>>, vector<1x16x1xf32>,
      %c0_26 = arith.constant 0 : index
      %c0_27 = arith.constant 0 : index
      %c0_28 = arith.constant 0 : index
      %53 = vector.load %arg10[%c0_26, %c0_27, %c0_28] : memref<4x16x32xf32, #tpu.memory_space<vmem>>, vector<1x16x32xf32>
      %54 = vector.shape_cast %53 : vector<1x16x32xf32> to vector<16x32xf32>
      %55 = vector.broadcast %40 : vector<16x1xf32> to vector<16x32xf32>
      %56 = arith.mulf %55, %54 : vector<16x32xf32>
      %57 = arith.truncf %43 : vector<16x16xf32> to vector<16x16xbf16>
      %cst_29 = arith.constant dense<0.000000e+00> : vector<16x32xf32>
      %58 = tpu.matmul %57, %28, %cst_29 {dimension_numbers = #tpu.dot_dimension_numbers<[1], [0], [0], [1], [0, 0, 1, 1], [], []>} : vector<16x16xbf16>, vector<16x32xbf16>, vector<16x32xf32> -> vector<16x32xf32>
      %59 = arith.addf %56, %58 : vector<16x32xf32>
      %c0_30 = arith.constant 0 : index
      %c0_31 = arith.constant 0 : index
      %c0_32 = arith.constant 0 : index
      %60 = vector.load %arg10[%c0_30, %c0_31, %c0_32] : memref<4x16x32xf32, #tpu.memory_space<vmem>>, vector<1x16x32xf32>
      %61 = vector.shape_cast %60 : vector<1x16x32xf32> to vector<16x32xf32>
      %62 = vector.shape_cast %59 : vector<16x32xf32> to vector<1x16x32xf32>
      tpu.vector_store %arg10[%c0_30, %c0_31, %c0_32], %62 {strides = array<i32>} : memref<4x16x32xf32, #tpu.memory_space<vmem>>, vector<1x16x32xf32>,
      %c0_33 = arith.constant 0 : index
      %c0_34 = arith.constant 0 : index
      %c0_35 = arith.constant 0 : index
      %63 = vector.load %arg8[%c0_33, %c0_34, %c0_35] : memref<4x16x1xf32, #tpu.memory_space<vmem>>, vector<1x16x1xf32>
      %64 = vector.shape_cast %63 : vector<1x16x1xf32> to vector<16x1xf32>
      %65 = vector.shape_cast %38 : vector<16x1xf32> to vector<1x16x1xf32>
      tpu.vector_store %arg8[%c0_33, %c0_34, %c0_35], %65 {strides = array<i32>} : memref<4x16x1xf32, #tpu.memory_space<vmem>>, vector<1x16x1xf32>,
      %66 = vector.extract_strided_slice %13 {offsets = [0, 32], sizes = [16, 32], strides = [1, 1]} : vector<16x128xf32> to vector<16x32xf32>
      %67 = arith.truncf %66 : vector<16x32xf32> to vector<16x32xbf16>
      %68 = vector.extract_strided_slice %15 {offsets = [0, 32], sizes = [16, 32], strides = [1, 1]} : vector<16x128xf32> to vector<16x32xf32>
      %69 = arith.truncf %68 : vector<16x32xf32> to vector<16x32xbf16>
      %c1 = arith.constant 1 : index
      %c0_36 = arith.constant 0 : index
      %c0_37 = arith.constant 0 : index
      %70 = vector.load %arg7[%c1, %c0_36, %c0_37] : memref<4x16x32xbf16, #tpu.memory_space<vmem>>, vector<1x16x32xbf16>
      %71 = vector.shape_cast %70 : vector<1x16x32xbf16> to vector<16x32xbf16>
      %cst_38 = arith.constant dense<0.000000e+00> : vector<16x16xf32>
      %72 = tpu.matmul %71, %67, %cst_38 {dimension_numbers = #tpu.dot_dimension_numbers<[1], [1], [0], [0], [0, 0, 1, 0], [], []>} : vector<16x32xbf16>, vector<16x32xbf16>, vector<16x16xf32> -> vector<16x16xf32>
      %cst_39 = arith.constant -1.000000e+30 : f32
      %73 = vector.broadcast %cst_39 : f32 to vector<16x16xf32>
      %74 = arith.select %24, %72, %73 : vector<16x16xi1>, vector<16x16xf32>
      %c1_40 = arith.constant 1 : index
      %c0_41 = arith.constant 0 : index
      %c0_42 = arith.constant 0 : index
      %75 = vector.load %arg8[%c1_40, %c0_41, %c0_42] : memref<4x16x1xf32, #tpu.memory_space<vmem>>, vector<1x16x1xf32>
      %76 = vector.shape_cast %75 : vector<1x16x1xf32> to vector<16x1xf32>
      %cst_43 = arith.constant dense<0xFF800000> : vector<16xf32>
      %77 = vector.multi_reduction <maximumf>, %74, %cst_43 [1] : vector<16x16xf32> to vector<16xf32>
      %78 = vector.shape_cast %77 : vector<16xf32> to vector<16x1xf32>
      %79 = arith.maximumf %76, %78 : vector<16x1xf32>
      %80 = arith.subf %76, %79 : vector<16x1xf32>
      %81 = math.exp %80 : vector<16x1xf32>
      %82 = vector.broadcast %79 : vector<16x1xf32> to vector<16x16xf32>
      %83 = arith.subf %74, %82 : vector<16x16xf32>
      %84 = math.exp %83 : vector<16x16xf32>
      %c1_44 = arith.constant 1 : index
      %c0_45 = arith.constant 0 : index
      %c0_46 = arith.constant 0 : index
      %85 = vector.load %arg9[%c1_44, %c0_45, %c0_46] : memref<4x16x1xf32, #tpu.memory_space<vmem>>, vector<1x16x1xf32>
      %86 = vector.shape_cast %85 : vector<1x16x1xf32> to vector<16x1xf32>
      %87 = arith.mulf %81, %86 : vector<16x1xf32>
      %cst_47 = arith.constant dense<0.000000e+00> : vector<16xf32>
      %88 = vector.multi_reduction <add>, %84, %cst_47 [1] : vector<16x16xf32> to vector<16xf32>
      %89 = vector.shape_cast %88 : vector<16xf32> to vector<16x1xf32>
      %90 = arith.addf %87, %89 : vector<16x1xf32>
      %c1_48 = arith.constant 1 : index
      %c0_49 = arith.constant 0 : index
      %c0_50 = arith.constant 0 : index
      %91 = vector.load %arg9[%c1_48, %c0_49, %c0_50] : memref<4x16x1xf32, #tpu.memory_space<vmem>>, vector<1x16x1xf32>
      %92 = vector.shape_cast %91 : vector<1x16x1xf32> to vector<16x1xf32>
      %93 = vector.shape_cast %90 : vector<16x1xf32> to vector<1x16x1xf32>
      tpu.vector_store %arg9[%c1_48, %c0_49, %c0_50], %93 {strides = array<i32>} : memref<4x16x1xf32, #tpu.memory_space<vmem>>, vector<1x16x1xf32>,
      %c1_51 = arith.constant 1 : index
      %c0_52 = arith.constant 0 : index
      %c0_53 = arith.constant 0 : index
      %94 = vector.load %arg10[%c1_51, %c0_52, %c0_53] : memref<4x16x32xf32, #tpu.memory_space<vmem>>, vector<1x16x32xf32>
      %95 = vector.shape_cast %94 : vector<1x16x32xf32> to vector<16x32xf32>
      %96 = vector.broadcast %81 : vector<16x1xf32> to vector<16x32xf32>
      %97 = arith.mulf %96, %95 : vector<16x32xf32>
      %98 = arith.truncf %84 : vector<16x16xf32> to vector<16x16xbf16>
      %cst_54 = arith.constant dense<0.000000e+00> : vector<16x32xf32>
      %99 = tpu.matmul %98, %69, %cst_54 {dimension_numbers = #tpu.dot_dimension_numbers<[1], [0], [0], [1], [0, 0, 1, 1], [], []>} : vector<16x16xbf16>, vector<16x32xbf16>, vector<16x32xf32> -> vector<16x32xf32>
      %100 = arith.addf %97, %99 : vector<16x32xf32>
      %c1_55 = arith.constant 1 : index
      %c0_56 = arith.constant 0 : index
      %c0_57 = arith.constant 0 : index
      %101 = vector.load %arg10[%c1_55, %c0_56, %c0_57] : memref<4x16x32xf32, #tpu.memory_space<vmem>>, vector<1x16x32xf32>
      %102 = vector.shape_cast %101 : vector<1x16x32xf32> to vector<16x32xf32>
      %103 = vector.shape_cast %100 : vector<16x32xf32> to vector<1x16x32xf32>
      tpu.vector_store %arg10[%c1_55, %c0_56, %c0_57], %103 {strides = array<i32>} : memref<4x16x32xf32, #tpu.memory_space<vmem>>, vector<1x16x32xf32>,
      %c1_58 = arith.constant 1 : index
      %c0_59 = arith.constant 0 : index
      %c0_60 = arith.constant 0 : index
      %104 = vector.load %arg8[%c1_58, %c0_59, %c0_60] : memref<4x16x1xf32, #tpu.memory_space<vmem>>, vector<1x16x1xf32>
      %105 = vector.shape_cast %104 : vector<1x16x1xf32> to vector<16x1xf32>
      %106 = vector.shape_cast %79 : vector<16x1xf32> to vector<1x16x1xf32>
      tpu.vector_store %arg8[%c1_58, %c0_59, %c0_60], %106 {strides = array<i32>} : memref<4x16x1xf32, #tpu.memory_space<vmem>>, vector<1x16x1xf32>,
      %107 = vector.extract_strided_slice %13 {offsets = [0, 64], sizes = [16, 32], strides = [1, 1]} : vector<16x128xf32> to vector<16x32xf32>
      %108 = arith.truncf %107 : vector<16x32xf32> to vector<16x32xbf16>
      %109 = vector.extract_strided_slice %15 {offsets = [0, 64], sizes = [16, 32], strides = [1, 1]} : vector<16x128xf32> to vector<16x32xf32>
      %110 = arith.truncf %109 : vector<16x32xf32> to vector<16x32xbf16>
      %c2 = arith.constant 2 : index
      %c0_61 = arith.constant 0 : index
      %c0_62 = arith.constant 0 : index
      %111 = vector.load %arg7[%c2, %c0_61, %c0_62] : memref<4x16x32xbf16, #tpu.memory_space<vmem>>, vector<1x16x32xbf16>
      %112 = vector.shape_cast %111 : vector<1x16x32xbf16> to vector<16x32xbf16>
      %cst_63 = arith.constant dense<0.000000e+00> : vector<16x16xf32>
      %113 = tpu.matmul %112, %108, %cst_63 {dimension_numbers = #tpu.dot_dimension_numbers<[1], [1], [0], [0], [0, 0, 1, 0], [], []>} : vector<16x32xbf16>, vector<16x32xbf16>, vector<16x16xf32> -> vector<16x16xf32>
      %cst_64 = arith.constant -1.000000e+30 : f32
      %114 = vector.broadcast %cst_64 : f32 to vector<16x16xf32>
      %115 = arith.select %24, %113, %114 : vector<16x16xi1>, vector<16x16xf32>
      %c2_65 = arith.constant 2 : index
      %c0_66 = arith.constant 0 : index
      %c0_67 = arith.constant 0 : index
      %116 = vector.load %arg8[%c2_65, %c0_66, %c0_67] : memref<4x16x1xf32, #tpu.memory_space<vmem>>, vector<1x16x1xf32>
      %117 = vector.shape_cast %116 : vector<1x16x1xf32> to vector<16x1xf32>
      %cst_68 = arith.constant dense<0xFF800000> : vector<16xf32>
      %118 = vector.multi_reduction <maximumf>, %115, %cst_68 [1] : vector<16x16xf32> to vector<16xf32>
      %119 = vector.shape_cast %118 : vector<16xf32> to vector<16x1xf32>
      %120 = arith.maximumf %117, %119 : vector<16x1xf32>
      %121 = arith.subf %117, %120 : vector<16x1xf32>
      %122 = math.exp %121 : vector<16x1xf32>
      %123 = vector.broadcast %120 : vector<16x1xf32> to vector<16x16xf32>
      %124 = arith.subf %115, %123 : vector<16x16xf32>
      %125 = math.exp %124 : vector<16x16xf32>
      %c2_69 = arith.constant 2 : index
      %c0_70 = arith.constant 0 : index
      %c0_71 = arith.constant 0 : index
      %126 = vector.load %arg9[%c2_69, %c0_70, %c0_71] : memref<4x16x1xf32, #tpu.memory_space<vmem>>, vector<1x16x1xf32>
      %127 = vector.shape_cast %126 : vector<1x16x1xf32> to vector<16x1xf32>
      %128 = arith.mulf %122, %127 : vector<16x1xf32>
      %cst_72 = arith.constant dense<0.000000e+00> : vector<16xf32>
      %129 = vector.multi_reduction <add>, %125, %cst_72 [1] : vector<16x16xf32> to vector<16xf32>
      %130 = vector.shape_cast %129 : vector<16xf32> to vector<16x1xf32>
      %131 = arith.addf %128, %130 : vector<16x1xf32>
      %c2_73 = arith.constant 2 : index
      %c0_74 = arith.constant 0 : index
      %c0_75 = arith.constant 0 : index
      %132 = vector.load %arg9[%c2_73, %c0_74, %c0_75] : memref<4x16x1xf32, #tpu.memory_space<vmem>>, vector<1x16x1xf32>
      %133 = vector.shape_cast %132 : vector<1x16x1xf32> to vector<16x1xf32>
      %134 = vector.shape_cast %131 : vector<16x1xf32> to vector<1x16x1xf32>
      tpu.vector_store %arg9[%c2_73, %c0_74, %c0_75], %134 {strides = array<i32>} : memref<4x16x1xf32, #tpu.memory_space<vmem>>, vector<1x16x1xf32>,
      %c2_76 = arith.constant 2 : index
      %c0_77 = arith.constant 0 : index
      %c0_78 = arith.constant 0 : index
      %135 = vector.load %arg10[%c2_76, %c0_77, %c0_78] : memref<4x16x32xf32, #tpu.memory_space<vmem>>, vector<1x16x32xf32>
      %136 = vector.shape_cast %135 : vector<1x16x32xf32> to vector<16x32xf32>
      %137 = vector.broadcast %122 : vector<16x1xf32> to vector<16x32xf32>
      %138 = arith.mulf %137, %136 : vector<16x32xf32>
      %139 = arith.truncf %125 : vector<16x16xf32> to vector<16x16xbf16>
      %cst_79 = arith.constant dense<0.000000e+00> : vector<16x32xf32>
      %140 = tpu.matmul %139, %110, %cst_79 {dimension_numbers = #tpu.dot_dimension_numbers<[1], [0], [0], [1], [0, 0, 1, 1], [], []>} : vector<16x16xbf16>, vector<16x32xbf16>, vector<16x32xf32> -> vector<16x32xf32>
      %141 = arith.addf %138, %140 : vector<16x32xf32>
      %c2_80 = arith.constant 2 : index
      %c0_81 = arith.constant 0 : index
      %c0_82 = arith.constant 0 : index
      %142 = vector.load %arg10[%c2_80, %c0_81, %c0_82] : memref<4x16x32xf32, #tpu.memory_space<vmem>>, vector<1x16x32xf32>
      %143 = vector.shape_cast %142 : vector<1x16x32xf32> to vector<16x32xf32>
      %144 = vector.shape_cast %141 : vector<16x32xf32> to vector<1x16x32xf32>
      tpu.vector_store %arg10[%c2_80, %c0_81, %c0_82], %144 {strides = array<i32>} : memref<4x16x32xf32, #tpu.memory_space<vmem>>, vector<1x16x32xf32>,
      %c2_83 = arith.constant 2 : index
      %c0_84 = arith.constant 0 : index
      %c0_85 = arith.constant 0 : index
      %145 = vector.load %arg8[%c2_83, %c0_84, %c0_85] : memref<4x16x1xf32, #tpu.memory_space<vmem>>, vector<1x16x1xf32>
      %146 = vector.shape_cast %145 : vector<1x16x1xf32> to vector<16x1xf32>
      %147 = vector.shape_cast %120 : vector<16x1xf32> to vector<1x16x1xf32>
      tpu.vector_store %arg8[%c2_83, %c0_84, %c0_85], %147 {strides = array<i32>} : memref<4x16x1xf32, #tpu.memory_space<vmem>>, vector<1x16x1xf32>,
      %148 = vector.extract_strided_slice %13 {offsets = [0, 96], sizes = [16, 32], strides = [1, 1]} : vector<16x128xf32> to vector<16x32xf32>
      %149 = arith.truncf %148 : vector<16x32xf32> to vector<16x32xbf16>
      %150 = vector.extract_strided_slice %15 {offsets = [0, 96], sizes = [16, 32], strides = [1, 1]} : vector<16x128xf32> to vector<16x32xf32>
      %151 = arith.truncf %150 : vector<16x32xf32> to vector<16x32xbf16>
      %c3 = arith.constant 3 : index
      %c0_86 = arith.constant 0 : index
      %c0_87 = arith.constant 0 : index
      %152 = vector.load %arg7[%c3, %c0_86, %c0_87] : memref<4x16x32xbf16, #tpu.memory_space<vmem>>, vector<1x16x32xbf16>
      %153 = vector.shape_cast %152 : vector<1x16x32xbf16> to vector<16x32xbf16>
      %cst_88 = arith.constant dense<0.000000e+00> : vector<16x16xf32>
      %154 = tpu.matmul %153, %149, %cst_88 {dimension_numbers = #tpu.dot_dimension_numbers<[1], [1], [0], [0], [0, 0, 1, 0], [], []>} : vector<16x32xbf16>, vector<16x32xbf16>, vector<16x16xf32> -> vector<16x16xf32>
      %cst_89 = arith.constant -1.000000e+30 : f32
      %155 = vector.broadcast %cst_89 : f32 to vector<16x16xf32>
      %156 = arith.select %24, %154, %155 : vector<16x16xi1>, vector<16x16xf32>
      %c3_90 = arith.constant 3 : index
      %c0_91 = arith.constant 0 : index
      %c0_92 = arith.constant 0 : index
      %157 = vector.load %arg8[%c3_90, %c0_91, %c0_92] : memref<4x16x1xf32, #tpu.memory_space<vmem>>, vector<1x16x1xf32>
      %158 = vector.shape_cast %157 : vector<1x16x1xf32> to vector<16x1xf32>
      %cst_93 = arith.constant dense<0xFF800000> : vector<16xf32>
      %159 = vector.multi_reduction <maximumf>, %156, %cst_93 [1] : vector<16x16xf32> to vector<16xf32>
      %160 = vector.shape_cast %159 : vector<16xf32> to vector<16x1xf32>
      %161 = arith.maximumf %158, %160 : vector<16x1xf32>
      %162 = arith.subf %158, %161 : vector<16x1xf32>
      %163 = math.exp %162 : vector<16x1xf32>
      %164 = vector.broadcast %161 : vector<16x1xf32> to vector<16x16xf32>
      %165 = arith.subf %156, %164 : vector<16x16xf32>
      %166 = math.exp %165 : vector<16x16xf32>
      %c3_94 = arith.constant 3 : index
      %c0_95 = arith.constant 0 : index
      %c0_96 = arith.constant 0 : index
      %167 = vector.load %arg9[%c3_94, %c0_95, %c0_96] : memref<4x16x1xf32, #tpu.memory_space<vmem>>, vector<1x16x1xf32>
      %168 = vector.shape_cast %167 : vector<1x16x1xf32> to vector<16x1xf32>
      %169 = arith.mulf %163, %168 : vector<16x1xf32>
      %cst_97 = arith.constant dense<0.000000e+00> : vector<16xf32>
      %170 = vector.multi_reduction <add>, %166, %cst_97 [1] : vector<16x16xf32> to vector<16xf32>
      %171 = vector.shape_cast %170 : vector<16xf32> to vector<16x1xf32>
      %172 = arith.addf %169, %171 : vector<16x1xf32>
      %c3_98 = arith.constant 3 : index
      %c0_99 = arith.constant 0 : index
      %c0_100 = arith.constant 0 : index
      %173 = vector.load %arg9[%c3_98, %c0_99, %c0_100] : memref<4x16x1xf32, #tpu.memory_space<vmem>>, vector<1x16x1xf32>
      %174 = vector.shape_cast %173 : vector<1x16x1xf32> to vector<16x1xf32>
      %175 = vector.shape_cast %172 : vector<16x1xf32> to vector<1x16x1xf32>
      tpu.vector_store %arg9[%c3_98, %c0_99, %c0_100], %175 {strides = array<i32>} : memref<4x16x1xf32, #tpu.memory_space<vmem>>, vector<1x16x1xf32>,
      %c3_101 = arith.constant 3 : index
      %c0_102 = arith.constant 0 : index
      %c0_103 = arith.constant 0 : index
      %176 = vector.load %arg10[%c3_101, %c0_102, %c0_103] : memref<4x16x32xf32, #tpu.memory_space<vmem>>, vector<1x16x32xf32>
      %177 = vector.shape_cast %176 : vector<1x16x32xf32> to vector<16x32xf32>
      %178 = vector.broadcast %163 : vector<16x1xf32> to vector<16x32xf32>
      %179 = arith.mulf %178, %177 : vector<16x32xf32>
      %180 = arith.truncf %166 : vector<16x16xf32> to vector<16x16xbf16>
      %cst_104 = arith.constant dense<0.000000e+00> : vector<16x32xf32>
      %181 = tpu.matmul %180, %151, %cst_104 {dimension_numbers = #tpu.dot_dimension_numbers<[1], [0], [0], [1], [0, 0, 1, 1], [], []>} : vector<16x16xbf16>, vector<16x32xbf16>, vector<16x32xf32> -> vector<16x32xf32>
      %182 = arith.addf %179, %181 : vector<16x32xf32>
      %c3_105 = arith.constant 3 : index
      %c0_106 = arith.constant 0 : index
      %c0_107 = arith.constant 0 : index
      %183 = vector.load %arg10[%c3_105, %c0_106, %c0_107] : memref<4x16x32xf32, #tpu.memory_space<vmem>>, vector<1x16x32xf32>
      %184 = vector.shape_cast %183 : vector<1x16x32xf32> to vector<16x32xf32>
      %185 = vector.shape_cast %182 : vector<16x32xf32> to vector<1x16x32xf32>
      tpu.vector_store %arg10[%c3_105, %c0_106, %c0_107], %185 {strides = array<i32>} : memref<4x16x32xf32, #tpu.memory_space<vmem>>, vector<1x16x32xf32>,
      %c3_108 = arith.constant 3 : index
      %c0_109 = arith.constant 0 : index
      %c0_110 = arith.constant 0 : index
      %186 = vector.load %arg8[%c3_108, %c0_109, %c0_110] : memref<4x16x1xf32, #tpu.memory_space<vmem>>, vector<1x16x1xf32>
      %187 = vector.shape_cast %186 : vector<1x16x1xf32> to vector<16x1xf32>
      %188 = vector.shape_cast %161 : vector<16x1xf32> to vector<1x16x1xf32>
      tpu.vector_store %arg8[%c3_108, %c0_109, %c0_110], %188 {strides = array<i32>} : memref<4x16x1xf32, #tpu.memory_space<vmem>>, vector<1x16x1xf32>,
    } else {
    }
    %6 = arith.cmpi slt, %arg2, %arg1 : i32
    %7 = arith.extui %6 : i1 to i32
    %c0_i32_2 = arith.constant 0 : i32
    %8 = arith.cmpi ne, %7, %c0_i32_2 : i32
    scf.if %8 {
      %c0 = arith.constant 0 : index
      %c0_5 = arith.constant 0 : index
      %c0_6 = arith.constant 0 : index
      %12 = vector.load %arg4[%c0, %c0_5, %c0_6] : memref<1x16x128xf32, #tpu.memory_space<vmem>>, vector<1x16x128xf32>
      %13 = vector.shape_cast %12 : vector<1x16x128xf32> to vector<16x128xf32>
      %c0_7 = arith.constant 0 : index
      %c0_8 = arith.constant 0 : index
      %c0_9 = arith.constant 0 : index
      %14 = vector.load %arg5[%c0_7, %c0_8, %c0_9] : memref<1x16x128xf32, #tpu.memory_space<vmem>>, vector<1x16x128xf32>
      %15 = vector.shape_cast %14 : vector<1x16x128xf32> to vector<16x128xf32>
      %16 = vector.extract_strided_slice %13 {offsets = [0, 0], sizes = [16, 32], strides = [1, 1]} : vector<16x128xf32> to vector<16x32xf32>
      %17 = arith.truncf %16 : vector<16x32xf32> to vector<16x32xbf16>
      %18 = vector.extract_strided_slice %15 {offsets = [0, 0], sizes = [16, 32], strides = [1, 1]} : vector<16x128xf32> to vector<16x32xf32>
      %19 = arith.truncf %18 : vector<16x32xf32> to vector<16x32xbf16>
      %c0_10 = arith.constant 0 : index
      %c0_11 = arith.constant 0 : index
      %c0_12 = arith.constant 0 : index
      %20 = vector.load %arg7[%c0_10, %c0_11, %c0_12] : memref<4x16x32xbf16, #tpu.memory_space<vmem>>, vector<1x16x32xbf16>
      %21 = vector.shape_cast %20 : vector<1x16x32xbf16> to vector<16x32xbf16>
      %cst = arith.constant dense<0.000000e+00> : vector<16x16xf32>
      %22 = tpu.matmul %21, %17, %cst {dimension_numbers = #tpu.dot_dimension_numbers<[1], [1], [0], [0], [0, 0, 1, 0], [], []>} : vector<16x32xbf16>, vector<16x32xbf16>, vector<16x16xf32> -> vector<16x16xf32>
      %c0_13 = arith.constant 0 : index
      %c0_14 = arith.constant 0 : index
      %c0_15 = arith.constant 0 : index
      %23 = vector.load %arg8[%c0_13, %c0_14, %c0_15] : memref<4x16x1xf32, #tpu.memory_space<vmem>>, vector<1x16x1xf32>
      %24 = vector.shape_cast %23 : vector<1x16x1xf32> to vector<16x1xf32>
      %cst_16 = arith.constant dense<0xFF800000> : vector<16xf32>
      %25 = vector.multi_reduction <maximumf>, %22, %cst_16 [1] : vector<16x16xf32> to vector<16xf32>
      %26 = vector.shape_cast %25 : vector<16xf32> to vector<16x1xf32>
      %27 = arith.maximumf %24, %26 : vector<16x1xf32>
      %28 = arith.subf %24, %27 : vector<16x1xf32>
      %29 = math.exp %28 : vector<16x1xf32>
      %30 = vector.broadcast %27 : vector<16x1xf32> to vector<16x16xf32>
      %31 = arith.subf %22, %30 : vector<16x16xf32>
      %32 = math.exp %31 : vector<16x16xf32>
      %c0_17 = arith.constant 0 : index
      %c0_18 = arith.constant 0 : index
      %c0_19 = arith.constant 0 : index
      %33 = vector.load %arg9[%c0_17, %c0_18, %c0_19] : memref<4x16x1xf32, #tpu.memory_space<vmem>>, vector<1x16x1xf32>
      %34 = vector.shape_cast %33 : vector<1x16x1xf32> to vector<16x1xf32>
      %35 = arith.mulf %29, %34 : vector<16x1xf32>
      %cst_20 = arith.constant dense<0.000000e+00> : vector<16xf32>
      %36 = vector.multi_reduction <add>, %32, %cst_20 [1] : vector<16x16xf32> to vector<16xf32>
      %37 = vector.shape_cast %36 : vector<16xf32> to vector<16x1xf32>
      %38 = arith.addf %35, %37 : vector<16x1xf32>
      %c0_21 = arith.constant 0 : index
      %c0_22 = arith.constant 0 : index
      %c0_23 = arith.constant 0 : index
      %39 = vector.load %arg9[%c0_21, %c0_22, %c0_23] : memref<4x16x1xf32, #tpu.memory_space<vmem>>, vector<1x16x1xf32>
      %40 = vector.shape_cast %39 : vector<1x16x1xf32> to vector<16x1xf32>
      %41 = vector.shape_cast %38 : vector<16x1xf32> to vector<1x16x1xf32>
      tpu.vector_store %arg9[%c0_21, %c0_22, %c0_23], %41 {strides = array<i32>} : memref<4x16x1xf32, #tpu.memory_space<vmem>>, vector<1x16x1xf32>,
      %c0_24 = arith.constant 0 : index
      %c0_25 = arith.constant 0 : index
      %c0_26 = arith.constant 0 : index
      %42 = vector.load %arg10[%c0_24, %c0_25, %c0_26] : memref<4x16x32xf32, #tpu.memory_space<vmem>>, vector<1x16x32xf32>
      %43 = vector.shape_cast %42 : vector<1x16x32xf32> to vector<16x32xf32>
      %44 = vector.broadcast %29 : vector<16x1xf32> to vector<16x32xf32>
      %45 = arith.mulf %44, %43 : vector<16x32xf32>
      %46 = arith.truncf %32 : vector<16x16xf32> to vector<16x16xbf16>
      %cst_27 = arith.constant dense<0.000000e+00> : vector<16x32xf32>
      %47 = tpu.matmul %46, %19, %cst_27 {dimension_numbers = #tpu.dot_dimension_numbers<[1], [0], [0], [1], [0, 0, 1, 1], [], []>} : vector<16x16xbf16>, vector<16x32xbf16>, vector<16x32xf32> -> vector<16x32xf32>
      %48 = arith.addf %45, %47 : vector<16x32xf32>
      %c0_28 = arith.constant 0 : index
      %c0_29 = arith.constant 0 : index
      %c0_30 = arith.constant 0 : index
      %49 = vector.load %arg10[%c0_28, %c0_29, %c0_30] : memref<4x16x32xf32, #tpu.memory_space<vmem>>, vector<1x16x32xf32>
      %50 = vector.shape_cast %49 : vector<1x16x32xf32> to vector<16x32xf32>
      %51 = vector.shape_cast %48 : vector<16x32xf32> to vector<1x16x32xf32>
      tpu.vector_store %arg10[%c0_28, %c0_29, %c0_30], %51 {strides = array<i32>} : memref<4x16x32xf32, #tpu.memory_space<vmem>>, vector<1x16x32xf32>,
      %c0_31 = arith.constant 0 : index
      %c0_32 = arith.constant 0 : index
      %c0_33 = arith.constant 0 : index
      %52 = vector.load %arg8[%c0_31, %c0_32, %c0_33] : memref<4x16x1xf32, #tpu.memory_space<vmem>>, vector<1x16x1xf32>
      %53 = vector.shape_cast %52 : vector<1x16x1xf32> to vector<16x1xf32>
      %54 = vector.shape_cast %27 : vector<16x1xf32> to vector<1x16x1xf32>
      tpu.vector_store %arg8[%c0_31, %c0_32, %c0_33], %54 {strides = array<i32>} : memref<4x16x1xf32, #tpu.memory_space<vmem>>, vector<1x16x1xf32>,
      %55 = vector.extract_strided_slice %13 {offsets = [0, 32], sizes = [16, 32], strides = [1, 1]} : vector<16x128xf32> to vector<16x32xf32>
      %56 = arith.truncf %55 : vector<16x32xf32> to vector<16x32xbf16>
      %57 = vector.extract_strided_slice %15 {offsets = [0, 32], sizes = [16, 32], strides = [1, 1]} : vector<16x128xf32> to vector<16x32xf32>
      %58 = arith.truncf %57 : vector<16x32xf32> to vector<16x32xbf16>
      %c1 = arith.constant 1 : index
      %c0_34 = arith.constant 0 : index
      %c0_35 = arith.constant 0 : index
      %59 = vector.load %arg7[%c1, %c0_34, %c0_35] : memref<4x16x32xbf16, #tpu.memory_space<vmem>>, vector<1x16x32xbf16>
      %60 = vector.shape_cast %59 : vector<1x16x32xbf16> to vector<16x32xbf16>
      %cst_36 = arith.constant dense<0.000000e+00> : vector<16x16xf32>
      %61 = tpu.matmul %60, %56, %cst_36 {dimension_numbers = #tpu.dot_dimension_numbers<[1], [1], [0], [0], [0, 0, 1, 0], [], []>} : vector<16x32xbf16>, vector<16x32xbf16>, vector<16x16xf32> -> vector<16x16xf32>
      %c1_37 = arith.constant 1 : index
      %c0_38 = arith.constant 0 : index
      %c0_39 = arith.constant 0 : index
      %62 = vector.load %arg8[%c1_37, %c0_38, %c0_39] : memref<4x16x1xf32, #tpu.memory_space<vmem>>, vector<1x16x1xf32>
      %63 = vector.shape_cast %62 : vector<1x16x1xf32> to vector<16x1xf32>
      %cst_40 = arith.constant dense<0xFF800000> : vector<16xf32>
      %64 = vector.multi_reduction <maximumf>, %61, %cst_40 [1] : vector<16x16xf32> to vector<16xf32>
      %65 = vector.shape_cast %64 : vector<16xf32> to vector<16x1xf32>
      %66 = arith.maximumf %63, %65 : vector<16x1xf32>
      %67 = arith.subf %63, %66 : vector<16x1xf32>
      %68 = math.exp %67 : vector<16x1xf32>
      %69 = vector.broadcast %66 : vector<16x1xf32> to vector<16x16xf32>
      %70 = arith.subf %61, %69 : vector<16x16xf32>
      %71 = math.exp %70 : vector<16x16xf32>
      %c1_41 = arith.constant 1 : index
      %c0_42 = arith.constant 0 : index
      %c0_43 = arith.constant 0 : index
      %72 = vector.load %arg9[%c1_41, %c0_42, %c0_43] : memref<4x16x1xf32, #tpu.memory_space<vmem>>, vector<1x16x1xf32>
      %73 = vector.shape_cast %72 : vector<1x16x1xf32> to vector<16x1xf32>
      %74 = arith.mulf %68, %73 : vector<16x1xf32>
      %cst_44 = arith.constant dense<0.000000e+00> : vector<16xf32>
      %75 = vector.multi_reduction <add>, %71, %cst_44 [1] : vector<16x16xf32> to vector<16xf32>
      %76 = vector.shape_cast %75 : vector<16xf32> to vector<16x1xf32>
      %77 = arith.addf %74, %76 : vector<16x1xf32>
      %c1_45 = arith.constant 1 : index
      %c0_46 = arith.constant 0 : index
      %c0_47 = arith.constant 0 : index
      %78 = vector.load %arg9[%c1_45, %c0_46, %c0_47] : memref<4x16x1xf32, #tpu.memory_space<vmem>>, vector<1x16x1xf32>
      %79 = vector.shape_cast %78 : vector<1x16x1xf32> to vector<16x1xf32>
      %80 = vector.shape_cast %77 : vector<16x1xf32> to vector<1x16x1xf32>
      tpu.vector_store %arg9[%c1_45, %c0_46, %c0_47], %80 {strides = array<i32>} : memref<4x16x1xf32, #tpu.memory_space<vmem>>, vector<1x16x1xf32>,
      %c1_48 = arith.constant 1 : index
      %c0_49 = arith.constant 0 : index
      %c0_50 = arith.constant 0 : index
      %81 = vector.load %arg10[%c1_48, %c0_49, %c0_50] : memref<4x16x32xf32, #tpu.memory_space<vmem>>, vector<1x16x32xf32>
      %82 = vector.shape_cast %81 : vector<1x16x32xf32> to vector<16x32xf32>
      %83 = vector.broadcast %68 : vector<16x1xf32> to vector<16x32xf32>
      %84 = arith.mulf %83, %82 : vector<16x32xf32>
      %85 = arith.truncf %71 : vector<16x16xf32> to vector<16x16xbf16>
      %cst_51 = arith.constant dense<0.000000e+00> : vector<16x32xf32>
      %86 = tpu.matmul %85, %58, %cst_51 {dimension_numbers = #tpu.dot_dimension_numbers<[1], [0], [0], [1], [0, 0, 1, 1], [], []>} : vector<16x16xbf16>, vector<16x32xbf16>, vector<16x32xf32> -> vector<16x32xf32>
      %87 = arith.addf %84, %86 : vector<16x32xf32>
      %c1_52 = arith.constant 1 : index
      %c0_53 = arith.constant 0 : index
      %c0_54 = arith.constant 0 : index
      %88 = vector.load %arg10[%c1_52, %c0_53, %c0_54] : memref<4x16x32xf32, #tpu.memory_space<vmem>>, vector<1x16x32xf32>
      %89 = vector.shape_cast %88 : vector<1x16x32xf32> to vector<16x32xf32>
      %90 = vector.shape_cast %87 : vector<16x32xf32> to vector<1x16x32xf32>
      tpu.vector_store %arg10[%c1_52, %c0_53, %c0_54], %90 {strides = array<i32>} : memref<4x16x32xf32, #tpu.memory_space<vmem>>, vector<1x16x32xf32>,
      %c1_55 = arith.constant 1 : index
      %c0_56 = arith.constant 0 : index
      %c0_57 = arith.constant 0 : index
      %91 = vector.load %arg8[%c1_55, %c0_56, %c0_57] : memref<4x16x1xf32, #tpu.memory_space<vmem>>, vector<1x16x1xf32>
      %92 = vector.shape_cast %91 : vector<1x16x1xf32> to vector<16x1xf32>
      %93 = vector.shape_cast %66 : vector<16x1xf32> to vector<1x16x1xf32>
      tpu.vector_store %arg8[%c1_55, %c0_56, %c0_57], %93 {strides = array<i32>} : memref<4x16x1xf32, #tpu.memory_space<vmem>>, vector<1x16x1xf32>,
      %94 = vector.extract_strided_slice %13 {offsets = [0, 64], sizes = [16, 32], strides = [1, 1]} : vector<16x128xf32> to vector<16x32xf32>
      %95 = arith.truncf %94 : vector<16x32xf32> to vector<16x32xbf16>
      %96 = vector.extract_strided_slice %15 {offsets = [0, 64], sizes = [16, 32], strides = [1, 1]} : vector<16x128xf32> to vector<16x32xf32>
      %97 = arith.truncf %96 : vector<16x32xf32> to vector<16x32xbf16>
      %c2 = arith.constant 2 : index
      %c0_58 = arith.constant 0 : index
      %c0_59 = arith.constant 0 : index
      %98 = vector.load %arg7[%c2, %c0_58, %c0_59] : memref<4x16x32xbf16, #tpu.memory_space<vmem>>, vector<1x16x32xbf16>
      %99 = vector.shape_cast %98 : vector<1x16x32xbf16> to vector<16x32xbf16>
      %cst_60 = arith.constant dense<0.000000e+00> : vector<16x16xf32>
      %100 = tpu.matmul %99, %95, %cst_60 {dimension_numbers = #tpu.dot_dimension_numbers<[1], [1], [0], [0], [0, 0, 1, 0], [], []>} : vector<16x32xbf16>, vector<16x32xbf16>, vector<16x16xf32> -> vector<16x16xf32>
      %c2_61 = arith.constant 2 : index
      %c0_62 = arith.constant 0 : index
      %c0_63 = arith.constant 0 : index
      %101 = vector.load %arg8[%c2_61, %c0_62, %c0_63] : memref<4x16x1xf32, #tpu.memory_space<vmem>>, vector<1x16x1xf32>
      %102 = vector.shape_cast %101 : vector<1x16x1xf32> to vector<16x1xf32>
      %cst_64 = arith.constant dense<0xFF800000> : vector<16xf32>
      %103 = vector.multi_reduction <maximumf>, %100, %cst_64 [1] : vector<16x16xf32> to vector<16xf32>
      %104 = vector.shape_cast %103 : vector<16xf32> to vector<16x1xf32>
      %105 = arith.maximumf %102, %104 : vector<16x1xf32>
      %106 = arith.subf %102, %105 : vector<16x1xf32>
      %107 = math.exp %106 : vector<16x1xf32>
      %108 = vector.broadcast %105 : vector<16x1xf32> to vector<16x16xf32>
      %109 = arith.subf %100, %108 : vector<16x16xf32>
      %110 = math.exp %109 : vector<16x16xf32>
      %c2_65 = arith.constant 2 : index
      %c0_66 = arith.constant 0 : index
      %c0_67 = arith.constant 0 : index
      %111 = vector.load %arg9[%c2_65, %c0_66, %c0_67] : memref<4x16x1xf32, #tpu.memory_space<vmem>>, vector<1x16x1xf32>
      %112 = vector.shape_cast %111 : vector<1x16x1xf32> to vector<16x1xf32>
      %113 = arith.mulf %107, %112 : vector<16x1xf32>
      %cst_68 = arith.constant dense<0.000000e+00> : vector<16xf32>
      %114 = vector.multi_reduction <add>, %110, %cst_68 [1] : vector<16x16xf32> to vector<16xf32>
      %115 = vector.shape_cast %114 : vector<16xf32> to vector<16x1xf32>
      %116 = arith.addf %113, %115 : vector<16x1xf32>
      %c2_69 = arith.constant 2 : index
      %c0_70 = arith.constant 0 : index
      %c0_71 = arith.constant 0 : index
      %117 = vector.load %arg9[%c2_69, %c0_70, %c0_71] : memref<4x16x1xf32, #tpu.memory_space<vmem>>, vector<1x16x1xf32>
      %118 = vector.shape_cast %117 : vector<1x16x1xf32> to vector<16x1xf32>
      %119 = vector.shape_cast %116 : vector<16x1xf32> to vector<1x16x1xf32>
      tpu.vector_store %arg9[%c2_69, %c0_70, %c0_71], %119 {strides = array<i32>} : memref<4x16x1xf32, #tpu.memory_space<vmem>>, vector<1x16x1xf32>,
      %c2_72 = arith.constant 2 : index
      %c0_73 = arith.constant 0 : index
      %c0_74 = arith.constant 0 : index
      %120 = vector.load %arg10[%c2_72, %c0_73, %c0_74] : memref<4x16x32xf32, #tpu.memory_space<vmem>>, vector<1x16x32xf32>
      %121 = vector.shape_cast %120 : vector<1x16x32xf32> to vector<16x32xf32>
      %122 = vector.broadcast %107 : vector<16x1xf32> to vector<16x32xf32>
      %123 = arith.mulf %122, %121 : vector<16x32xf32>
      %124 = arith.truncf %110 : vector<16x16xf32> to vector<16x16xbf16>
      %cst_75 = arith.constant dense<0.000000e+00> : vector<16x32xf32>
      %125 = tpu.matmul %124, %97, %cst_75 {dimension_numbers = #tpu.dot_dimension_numbers<[1], [0], [0], [1], [0, 0, 1, 1], [], []>} : vector<16x16xbf16>, vector<16x32xbf16>, vector<16x32xf32> -> vector<16x32xf32>
      %126 = arith.addf %123, %125 : vector<16x32xf32>
      %c2_76 = arith.constant 2 : index
      %c0_77 = arith.constant 0 : index
      %c0_78 = arith.constant 0 : index
      %127 = vector.load %arg10[%c2_76, %c0_77, %c0_78] : memref<4x16x32xf32, #tpu.memory_space<vmem>>, vector<1x16x32xf32>
      %128 = vector.shape_cast %127 : vector<1x16x32xf32> to vector<16x32xf32>
      %129 = vector.shape_cast %126 : vector<16x32xf32> to vector<1x16x32xf32>
      tpu.vector_store %arg10[%c2_76, %c0_77, %c0_78], %129 {strides = array<i32>} : memref<4x16x32xf32, #tpu.memory_space<vmem>>, vector<1x16x32xf32>,
      %c2_79 = arith.constant 2 : index
      %c0_80 = arith.constant 0 : index
      %c0_81 = arith.constant 0 : index
      %130 = vector.load %arg8[%c2_79, %c0_80, %c0_81] : memref<4x16x1xf32, #tpu.memory_space<vmem>>, vector<1x16x1xf32>
      %131 = vector.shape_cast %130 : vector<1x16x1xf32> to vector<16x1xf32>
      %132 = vector.shape_cast %105 : vector<16x1xf32> to vector<1x16x1xf32>
      tpu.vector_store %arg8[%c2_79, %c0_80, %c0_81], %132 {strides = array<i32>} : memref<4x16x1xf32, #tpu.memory_space<vmem>>, vector<1x16x1xf32>,
      %133 = vector.extract_strided_slice %13 {offsets = [0, 96], sizes = [16, 32], strides = [1, 1]} : vector<16x128xf32> to vector<16x32xf32>
      %134 = arith.truncf %133 : vector<16x32xf32> to vector<16x32xbf16>
      %135 = vector.extract_strided_slice %15 {offsets = [0, 96], sizes = [16, 32], strides = [1, 1]} : vector<16x128xf32> to vector<16x32xf32>
      %136 = arith.truncf %135 : vector<16x32xf32> to vector<16x32xbf16>
      %c3 = arith.constant 3 : index
      %c0_82 = arith.constant 0 : index
      %c0_83 = arith.constant 0 : index
      %137 = vector.load %arg7[%c3, %c0_82, %c0_83] : memref<4x16x32xbf16, #tpu.memory_space<vmem>>, vector<1x16x32xbf16>
      %138 = vector.shape_cast %137 : vector<1x16x32xbf16> to vector<16x32xbf16>
      %cst_84 = arith.constant dense<0.000000e+00> : vector<16x16xf32>
      %139 = tpu.matmul %138, %134, %cst_84 {dimension_numbers = #tpu.dot_dimension_numbers<[1], [1], [0], [0], [0, 0, 1, 0], [], []>} : vector<16x32xbf16>, vector<16x32xbf16>, vector<16x16xf32> -> vector<16x16xf32>
      %c3_85 = arith.constant 3 : index
      %c0_86 = arith.constant 0 : index
      %c0_87 = arith.constant 0 : index
      %140 = vector.load %arg8[%c3_85, %c0_86, %c0_87] : memref<4x16x1xf32, #tpu.memory_space<vmem>>, vector<1x16x1xf32>
      %141 = vector.shape_cast %140 : vector<1x16x1xf32> to vector<16x1xf32>
      %cst_88 = arith.constant dense<0xFF800000> : vector<16xf32>
      %142 = vector.multi_reduction <maximumf>, %139, %cst_88 [1] : vector<16x16xf32> to vector<16xf32>
      %143 = vector.shape_cast %142 : vector<16xf32> to vector<16x1xf32>
      %144 = arith.maximumf %141, %143 : vector<16x1xf32>
      %145 = arith.subf %141, %144 : vector<16x1xf32>
      %146 = math.exp %145 : vector<16x1xf32>
      %147 = vector.broadcast %144 : vector<16x1xf32> to vector<16x16xf32>
      %148 = arith.subf %139, %147 : vector<16x16xf32>
      %149 = math.exp %148 : vector<16x16xf32>
      %c3_89 = arith.constant 3 : index
      %c0_90 = arith.constant 0 : index
      %c0_91 = arith.constant 0 : index
      %150 = vector.load %arg9[%c3_89, %c0_90, %c0_91] : memref<4x16x1xf32, #tpu.memory_space<vmem>>, vector<1x16x1xf32>
      %151 = vector.shape_cast %150 : vector<1x16x1xf32> to vector<16x1xf32>
      %152 = arith.mulf %146, %151 : vector<16x1xf32>
      %cst_92 = arith.constant dense<0.000000e+00> : vector<16xf32>
      %153 = vector.multi_reduction <add>, %149, %cst_92 [1] : vector<16x16xf32> to vector<16xf32>
      %154 = vector.shape_cast %153 : vector<16xf32> to vector<16x1xf32>
      %155 = arith.addf %152, %154 : vector<16x1xf32>
      %c3_93 = arith.constant 3 : index
      %c0_94 = arith.constant 0 : index
      %c0_95 = arith.constant 0 : index
      %156 = vector.load %arg9[%c3_93, %c0_94, %c0_95] : memref<4x16x1xf32, #tpu.memory_space<vmem>>, vector<1x16x1xf32>
      %157 = vector.shape_cast %156 : vector<1x16x1xf32> to vector<16x1xf32>
      %158 = vector.shape_cast %155 : vector<16x1xf32> to vector<1x16x1xf32>
      tpu.vector_store %arg9[%c3_93, %c0_94, %c0_95], %158 {strides = array<i32>} : memref<4x16x1xf32, #tpu.memory_space<vmem>>, vector<1x16x1xf32>,
      %c3_96 = arith.constant 3 : index
      %c0_97 = arith.constant 0 : index
      %c0_98 = arith.constant 0 : index
      %159 = vector.load %arg10[%c3_96, %c0_97, %c0_98] : memref<4x16x32xf32, #tpu.memory_space<vmem>>, vector<1x16x32xf32>
      %160 = vector.shape_cast %159 : vector<1x16x32xf32> to vector<16x32xf32>
      %161 = vector.broadcast %146 : vector<16x1xf32> to vector<16x32xf32>
      %162 = arith.mulf %161, %160 : vector<16x32xf32>
      %163 = arith.truncf %149 : vector<16x16xf32> to vector<16x16xbf16>
      %cst_99 = arith.constant dense<0.000000e+00> : vector<16x32xf32>
      %164 = tpu.matmul %163, %136, %cst_99 {dimension_numbers = #tpu.dot_dimension_numbers<[1], [0], [0], [1], [0, 0, 1, 1], [], []>} : vector<16x16xbf16>, vector<16x32xbf16>, vector<16x32xf32> -> vector<16x32xf32>
      %165 = arith.addf %162, %164 : vector<16x32xf32>
      %c3_100 = arith.constant 3 : index
      %c0_101 = arith.constant 0 : index
      %c0_102 = arith.constant 0 : index
      %166 = vector.load %arg10[%c3_100, %c0_101, %c0_102] : memref<4x16x32xf32, #tpu.memory_space<vmem>>, vector<1x16x32xf32>
      %167 = vector.shape_cast %166 : vector<1x16x32xf32> to vector<16x32xf32>
      %168 = vector.shape_cast %165 : vector<16x32xf32> to vector<1x16x32xf32>
      tpu.vector_store %arg10[%c3_100, %c0_101, %c0_102], %168 {strides = array<i32>} : memref<4x16x32xf32, #tpu.memory_space<vmem>>, vector<1x16x32xf32>,
      %c3_103 = arith.constant 3 : index
      %c0_104 = arith.constant 0 : index
      %c0_105 = arith.constant 0 : index
      %169 = vector.load %arg8[%c3_103, %c0_104, %c0_105] : memref<4x16x1xf32, #tpu.memory_space<vmem>>, vector<1x16x1xf32>
      %170 = vector.shape_cast %169 : vector<1x16x1xf32> to vector<16x1xf32>
      %171 = vector.shape_cast %144 : vector<16x1xf32> to vector<1x16x1xf32>
      tpu.vector_store %arg8[%c3_103, %c0_104, %c0_105], %171 {strides = array<i32>} : memref<4x16x1xf32, #tpu.memory_space<vmem>>, vector<1x16x1xf32>,
    } else {
    }
    %c0_i32_3 = arith.constant 0 : i32
    %9 = arith.cmpi eq, %arg2, %c0_i32_3 : i32
    %10 = arith.extui %9 : i1 to i32
    %c0_i32_4 = arith.constant 0 : i32
    %11 = arith.cmpi ne, %10, %c0_i32_4 : i32
    scf.if %11 {
      %c0 = arith.constant 0 : index
      %c0_5 = arith.constant 0 : index
      %c0_6 = arith.constant 0 : index
      %12 = vector.load %arg9[%c0, %c0_5, %c0_6] : memref<4x16x1xf32, #tpu.memory_space<vmem>>, vector<1x16x1xf32>
      %13 = vector.shape_cast %12 : vector<1x16x1xf32> to vector<16x1xf32>
      %14 = tpu.reciprocal %13 {approx = true} : vector<16x1xf32> -> vector<16x1xf32>
      %c0_7 = arith.constant 0 : index
      %c0_8 = arith.constant 0 : index
      %c0_9 = arith.constant 0 : index
      %15 = vector.load %arg10[%c0_7, %c0_8, %c0_9] : memref<4x16x32xf32, #tpu.memory_space<vmem>>, vector<1x16x32xf32>
      %16 = vector.shape_cast %15 : vector<1x16x32xf32> to vector<16x32xf32>
      %17 = vector.broadcast %14 : vector<16x1xf32> to vector<16x32xf32>
      %18 = arith.mulf %16, %17 : vector<16x32xf32>
      %c0_10 = arith.constant 0 : index
      %c0_11 = arith.constant 0 : index
      %c0_12 = arith.constant 0 : index
      %19 = vector.load %arg6[%c0_10, %c0_11, %c0_12] : memref<1x16x128xf32, #tpu.memory_space<vmem>>, vector<1x16x32xf32>
      %20 = vector.shape_cast %19 : vector<1x16x32xf32> to vector<16x32xf32>
      %21 = vector.shape_cast %18 : vector<16x32xf32> to vector<1x16x32xf32>
      tpu.vector_store %arg6[%c0_10, %c0_11, %c0_12], %21 {strides = array<i32>} : memref<1x16x128xf32, #tpu.memory_space<vmem>>, vector<1x16x32xf32>,
      %c1 = arith.constant 1 : index
      %c0_13 = arith.constant 0 : index
      %c0_14 = arith.constant 0 : index
      %22 = vector.load %arg9[%c1, %c0_13, %c0_14] : memref<4x16x1xf32, #tpu.memory_space<vmem>>, vector<1x16x1xf32>
      %23 = vector.shape_cast %22 : vector<1x16x1xf32> to vector<16x1xf32>
      %24 = tpu.reciprocal %23 {approx = true} : vector<16x1xf32> -> vector<16x1xf32>
      %c1_15 = arith.constant 1 : index
      %c0_16 = arith.constant 0 : index
      %c0_17 = arith.constant 0 : index
      %25 = vector.load %arg10[%c1_15, %c0_16, %c0_17] : memref<4x16x32xf32, #tpu.memory_space<vmem>>, vector<1x16x32xf32>
      %26 = vector.shape_cast %25 : vector<1x16x32xf32> to vector<16x32xf32>
      %27 = vector.broadcast %24 : vector<16x1xf32> to vector<16x32xf32>
      %28 = arith.mulf %26, %27 : vector<16x32xf32>
      %c0_18 = arith.constant 0 : index
      %c0_19 = arith.constant 0 : index
      %c32 = arith.constant 32 : index
      %29 = vector.load %arg6[%c0_18, %c0_19, %c32] : memref<1x16x128xf32, #tpu.memory_space<vmem>>, vector<1x16x32xf32>
      %30 = vector.shape_cast %29 : vector<1x16x32xf32> to vector<16x32xf32>
      %31 = vector.shape_cast %28 : vector<16x32xf32> to vector<1x16x32xf32>
      tpu.vector_store %arg6[%c0_18, %c0_19, %c32], %31 {strides = array<i32>} : memref<1x16x128xf32, #tpu.memory_space<vmem>>, vector<1x16x32xf32>,
      %c2 = arith.constant 2 : index
      %c0_20 = arith.constant 0 : index
      %c0_21 = arith.constant 0 : index
      %32 = vector.load %arg9[%c2, %c0_20, %c0_21] : memref<4x16x1xf32, #tpu.memory_space<vmem>>, vector<1x16x1xf32>
      %33 = vector.shape_cast %32 : vector<1x16x1xf32> to vector<16x1xf32>
      %34 = tpu.reciprocal %33 {approx = true} : vector<16x1xf32> -> vector<16x1xf32>
      %c2_22 = arith.constant 2 : index
      %c0_23 = arith.constant 0 : index
      %c0_24 = arith.constant 0 : index
      %35 = vector.load %arg10[%c2_22, %c0_23, %c0_24] : memref<4x16x32xf32, #tpu.memory_space<vmem>>, vector<1x16x32xf32>
      %36 = vector.shape_cast %35 : vector<1x16x32xf32> to vector<16x32xf32>
      %37 = vector.broadcast %34 : vector<16x1xf32> to vector<16x32xf32>
      %38 = arith.mulf %36, %37 : vector<16x32xf32>
      %c0_25 = arith.constant 0 : index
      %c0_26 = arith.constant 0 : index
      %c64 = arith.constant 64 : index
      %39 = vector.load %arg6[%c0_25, %c0_26, %c64] : memref<1x16x128xf32, #tpu.memory_space<vmem>>, vector<1x16x32xf32>
      %40 = vector.shape_cast %39 : vector<1x16x32xf32> to vector<16x32xf32>
      %41 = vector.shape_cast %38 : vector<16x32xf32> to vector<1x16x32xf32>
      tpu.vector_store %arg6[%c0_25, %c0_26, %c64], %41 {strides = array<i32>} : memref<1x16x128xf32, #tpu.memory_space<vmem>>, vector<1x16x32xf32>,
      %c3 = arith.constant 3 : index
      %c0_27 = arith.constant 0 : index
      %c0_28 = arith.constant 0 : index
      %42 = vector.load %arg9[%c3, %c0_27, %c0_28] : memref<4x16x1xf32, #tpu.memory_space<vmem>>, vector<1x16x1xf32>
      %43 = vector.shape_cast %42 : vector<1x16x1xf32> to vector<16x1xf32>
      %44 = tpu.reciprocal %43 {approx = true} : vector<16x1xf32> -> vector<16x1xf32>
      %c3_29 = arith.constant 3 : index
      %c0_30 = arith.constant 0 : index
      %c0_31 = arith.constant 0 : index
      %45 = vector.load %arg10[%c3_29, %c0_30, %c0_31] : memref<4x16x32xf32, #tpu.memory_space<vmem>>, vector<1x16x32xf32>
      %46 = vector.shape_cast %45 : vector<1x16x32xf32> to vector<16x32xf32>
      %47 = vector.broadcast %44 : vector<16x1xf32> to vector<16x32xf32>
      %48 = arith.mulf %46, %47 : vector<16x32xf32>
      %c0_32 = arith.constant 0 : index
      %c0_33 = arith.constant 0 : index
      %c96 = arith.constant 96 : index
      %49 = vector.load %arg6[%c0_32, %c0_33, %c96] : memref<1x16x128xf32, #tpu.memory_space<vmem>>, vector<1x16x32xf32>
      %50 = vector.shape_cast %49 : vector<1x16x32xf32> to vector<16x32xf32>
      %51 = vector.shape_cast %48 : vector<16x32xf32> to vector<1x16x32xf32>
      tpu.vector_store %arg6[%c0_32, %c0_33, %c96], %51 {strides = array<i32>} : memref<1x16x128xf32, #tpu.memory_space<vmem>>, vector<1x16x32xf32>,
    } else {
    }
    return
  }
  func.func @transform_0(%arg0: i32, %arg1: i32, %arg2: i32) -> (i32, i32, i32) {
    %c0_i32 = arith.constant 0 : i32
    %c0_i32_0 = arith.constant 0 : i32
    return %arg0, %arg1, %c0_i32 : i32, i32, i32
  }
  func.func @transform_1(%arg0: i32, %arg1: i32, %arg2: i32) -> (i32, i32, i32) {
    %0 = arith.minsi %arg2, %arg1 : i32
    %c1_i32 = arith.constant 1 : i32
    %c0_i32 = arith.constant 0 : i32
    return %arg0, %0, %c1_i32 : i32, i32, i32
  }
  func.func @transform_2(%arg0: i32, %arg1: i32, %arg2: i32) -> (i32, i32, i32) {
    %0 = arith.minsi %arg2, %arg1 : i32
    %c2_i32 = arith.constant 2 : i32
    %c0_i32 = arith.constant 0 : i32
    return %arg0, %0, %c2_i32 : i32, i32, i32
  }
  func.func @transform_3(%arg0: i32, %arg1: i32, %arg2: i32) -> (i32, i32, i32) {
    %c0_i32 = arith.constant 0 : i32
    %c0_i32_0 = arith.constant 0 : i32
    return %arg0, %arg1, %c0_i32 : i32, i32, i32
  }
}

module attributes {stable_mosaic.version = 11 : i64} {
  func.func @_ln_lm_head_kernel(%arg0: i32, %arg1: i32, %arg2: memref<16x128xf32, #tpu.memory_space<vmem>>, %arg3: memref<1x128xf32, #tpu.memory_space<vmem>>, %arg4: memref<1x128xf32, #tpu.memory_space<vmem>>, %arg5: memref<128x512xbf16, #tpu.memory_space<vmem>>, %arg6: memref<16x512xf32, #tpu.memory_space<vmem>>, %arg7: memref<16x128xbf16, #tpu.memory_space<vmem>>) attributes {dimension_semantics = [#tpu.dimension_semantics<parallel>, #tpu.dimension_semantics<arbitrary>], iteration_bounds = array<i64: 2, 1>, scalar_prefetch = 0 : i64, scratch_operands = 1 : i64, tpu.core_type = #tpu.core_type<tc>, window_params = [{transform_indices = @transform_0, window_bounds = array<i64: 16, 128>}, {pipeline_mode = #tpu.pipeline_mode<synchronous>, transform_indices = @transform_1, window_bounds = array<i64: 1, 128>}, {pipeline_mode = #tpu.pipeline_mode<synchronous>, transform_indices = @transform_2, window_bounds = array<i64: 1, 128>}, {transform_indices = @transform_3, window_bounds = array<i64: 128, 512>}, {transform_indices = @transform_4, window_bounds = array<i64: 16, 512>}]} {
    %c0_i32 = arith.constant 0 : i32
    %0 = arith.cmpi eq, %arg1, %c0_i32 : i32
    %1 = arith.extui %0 : i1 to i32
    %c0_i32_0 = arith.constant 0 : i32
    %2 = arith.cmpi ne, %1, %c0_i32_0 : i32
    scf.if %2 {
      %c0_6 = arith.constant 0 : index
      %c0_7 = arith.constant 0 : index
      %7 = vector.load %arg2[%c0_6, %c0_7] : memref<16x128xf32, #tpu.memory_space<vmem>>, vector<16x128xf32>
      %c0_8 = arith.constant 0 : index
      %c0_9 = arith.constant 0 : index
      %8 = vector.load %arg3[%c0_8, %c0_9] : memref<1x128xf32, #tpu.memory_space<vmem>>, vector<1x128xf32>
      %c0_10 = arith.constant 0 : index
      %c0_11 = arith.constant 0 : index
      %9 = vector.load %arg4[%c0_10, %c0_11] : memref<1x128xf32, #tpu.memory_space<vmem>>, vector<1x128xf32>
      %cst_12 = arith.constant dense<0.000000e+00> : vector<16xf32>
      %10 = vector.multi_reduction <add>, %7, %cst_12 [1] : vector<16x128xf32> to vector<16xf32>
      %11 = vector.shape_cast %10 : vector<16xf32> to vector<16x1xf32>
      %cst_13 = arith.constant 1.280000e+02 : f32
      %12 = vector.broadcast %cst_13 : f32 to vector<16x1xf32>
      %13 = arith.divf %11, %12 : vector<16x1xf32>
      %14 = vector.broadcast %13 : vector<16x1xf32> to vector<16x128xf32>
      %15 = arith.subf %7, %14 : vector<16x128xf32>
      %16 = arith.mulf %15, %15 : vector<16x128xf32>
      %cst_14 = arith.constant dense<0.000000e+00> : vector<16xf32>
      %17 = vector.multi_reduction <add>, %16, %cst_14 [1] : vector<16x128xf32> to vector<16xf32>
      %18 = vector.shape_cast %17 : vector<16xf32> to vector<16x1xf32>
      %cst_15 = arith.constant 1.280000e+02 : f32
      %19 = vector.broadcast %cst_15 : f32 to vector<16x1xf32>
      %20 = arith.divf %18, %19 : vector<16x1xf32>
      %21 = vector.broadcast %13 : vector<16x1xf32> to vector<16x128xf32>
      %22 = arith.subf %7, %21 : vector<16x128xf32>
      %cst_16 = arith.constant 9.99999974E-6 : f32
      %23 = vector.broadcast %cst_16 : f32 to vector<16x1xf32>
      %24 = arith.addf %20, %23 : vector<16x1xf32>
      %25 = math.rsqrt %24 : vector<16x1xf32>
      %26 = vector.broadcast %25 : vector<16x1xf32> to vector<16x128xf32>
      %27 = arith.mulf %22, %26 : vector<16x128xf32>
      %28 = vector.broadcast %8 : vector<1x128xf32> to vector<16x128xf32>
      %29 = arith.mulf %27, %28 : vector<16x128xf32>
      %30 = vector.broadcast %9 : vector<1x128xf32> to vector<16x128xf32>
      %31 = arith.addf %29, %30 : vector<16x128xf32>
      %32 = arith.truncf %31 : vector<16x128xf32> to vector<16x128xbf16>
      %c0_17 = arith.constant 0 : index
      %c0_18 = arith.constant 0 : index
      %33 = vector.load %arg7[%c0_17, %c0_18] : memref<16x128xbf16, #tpu.memory_space<vmem>>, vector<16x128xbf16>
      tpu.vector_store %arg7[%c0_17, %c0_18], %32 {strides = array<i32>} : memref<16x128xbf16, #tpu.memory_space<vmem>>, vector<16x128xbf16>,
    } else {
    }
    %c0 = arith.constant 0 : index
    %c0_1 = arith.constant 0 : index
    %3 = vector.load %arg7[%c0, %c0_1] : memref<16x128xbf16, #tpu.memory_space<vmem>>, vector<16x128xbf16>
    %c0_2 = arith.constant 0 : index
    %c0_3 = arith.constant 0 : index
    %4 = vector.load %arg5[%c0_2, %c0_3] : memref<128x512xbf16, #tpu.memory_space<vmem>>, vector<128x512xbf16>
    %cst = arith.constant dense<0.000000e+00> : vector<16x512xf32>
    %5 = tpu.matmul %3, %4, %cst {dimension_numbers = #tpu.dot_dimension_numbers<[1], [0], [0], [1], [0, 0, 1, 1], [], []>} : vector<16x128xbf16>, vector<128x512xbf16>, vector<16x512xf32> -> vector<16x512xf32>
    %c0_4 = arith.constant 0 : index
    %c0_5 = arith.constant 0 : index
    %6 = vector.load %arg6[%c0_4, %c0_5] : memref<16x512xf32, #tpu.memory_space<vmem>>, vector<16x512xf32>
    tpu.vector_store %arg6[%c0_4, %c0_5], %5 {strides = array<i32>} : memref<16x512xf32, #tpu.memory_space<vmem>>, vector<16x512xf32>,
    return
  }
  func.func @transform_0(%arg0: i32, %arg1: i32) -> (i32, i32) {
    %c0_i32 = arith.constant 0 : i32
    %c0_i32_0 = arith.constant 0 : i32
    return %arg0, %c0_i32 : i32, i32
  }
  func.func @transform_1(%arg0: i32, %arg1: i32) -> (i32, i32) {
    %c0_i32 = arith.constant 0 : i32
    %c0_i32_0 = arith.constant 0 : i32
    %c0_i32_1 = arith.constant 0 : i32
    return %c0_i32, %c0_i32_0 : i32, i32
  }
  func.func @transform_2(%arg0: i32, %arg1: i32) -> (i32, i32) {
    %c0_i32 = arith.constant 0 : i32
    %c0_i32_0 = arith.constant 0 : i32
    %c0_i32_1 = arith.constant 0 : i32
    return %c0_i32, %c0_i32_0 : i32, i32
  }
  func.func @transform_3(%arg0: i32, %arg1: i32) -> (i32, i32) {
    %c0_i32 = arith.constant 0 : i32
    %c0_i32_0 = arith.constant 0 : i32
    return %c0_i32, %arg1 : i32, i32
  }
  func.func @transform_4(%arg0: i32, %arg1: i32) -> (i32, i32) {
    %c0_i32 = arith.constant 0 : i32
    return %arg0, %arg1 : i32, i32
  }
}

</mosaic_0001>

<bundles_post_ra>
// kernel: _lambda_.11
= control target key start
LH: loop header
LB: loop body
LE: loop exit
PB: predicated region body
PF: predicated region fallthrough
CT: control target
= control target key end

     0   :  { %s664_s15 = smov 0   ;;  %s666_s16 = smov 0   ;;  %s730_s0 = inlined_call_operand.vmem [shape: f32[32,128], index: 0, kind: input, shape index: {}]   ;;  %s731_s1 = inlined_call_operand.vmem [shape: bf16[128,128], index: 1, kind: input, shape index: {}]   ;;  %s732_s2 = inlined_call_operand.vmem [shape: f32[1,128], index: 2, kind: input, shape index: {}]   ;;  %s733_s3 = inlined_call_operand.vmem [shape: f32[32,128], index: 3, kind: input, shape index: {}, may-alias: {3,4}]   ;;  %s734_s4 = inlined_call_operand.vmem [shape: f32[32,128], index: 4, kind: output, shape index: {}, may-alias: {3,4}]  }
   0x1   :  { %s668_s17 = smov 0  }
   0x2 LB: > { %s26_s18 = sadd.s32 1, %s631_s16  ;;  %p532_p0 = scmp.ge.s32.totalorder %s635_s17, 1  ;;  %s635_s17 = sphi %s668_s17, %s14_s17   ;;  %s631_s16 = sphi %s666_s16, %s736_s16   ;;  %s627_s15 = sphi %s664_s15, %s735_s15  }
   0x3   : > { %p28_p1 = scmp.ge.s32.totalorder %s26_s18, 2  ;;  %p210_p2 = scmp.lt.s32.totalorder %s635_s17, 3 }
   0x5   : > { %s738_s18 = smov (%p28_p1, %s26_s18), 0  ;;  %p211_p3 = pnand %p532_p0, %p210_p2 }
   0x6   : > { %s533_s25 = sshll.u32 (!%p211_p3), %s627_s15, 1 }
   0x7   : > { %214 = sbr.rel (%p211_p3) target bundleno = 247 (0xf7), region = 36  ;;  %p255_p4 = scmp.lt.s32.totalorder (!%p211_p3), %s533_s25, 3 }
   0xc   : > { %v605_v0 = vld [vmem:[%s731_s1 + $0x38] sm:$0xff]   ;;  %v637_v1 = vmov 0.0   ;;  %v606_v2 = vld [vmem:[%s731_s1 + $0x30] sm:$0xff]   ;;  %vm638_vm0 = vmmov 0   ;;  %v607_v3 = vld [vmem:[%s731_s1 + $0x28] sm:$0xff]   ;;  %s740_s25 = smov (!%p255_p4, %s533_s25), 3 }
   0xd   : > { %559 = vmatprep.subr.bf16.mxu0 %v637_v1  ;;  %575 = vmatprep.mubr.msk.bf16.mxu0 %vm638_vm0, %v637_v1  ;;  %v608_v4 = vld [vmem:[%s731_s1 + $0x20] sm:$0xff]   ;;  %v609_v5 = vld [vmem:[%s731_s1 + $0x18] sm:$0xff]   ;;  %v610_v6 = vld [vmem:[%s731_s1 + $0x10] sm:$0xff]   ;;  %s534_s6 = sshll.u32 %s740_s25, 3 }
   0xe   : > { %560 = vmatpush3.bf16.msra.mxu0 %v605_v0  ;;  %v611_v7 = vld [vmem:[%s731_s1 + $0x8] sm:$0xff]   ;;  %s258_s11 = scalar_lea.vmem %s730_s0, %s534_s6  ;;  %v612_v8 = vld [vmem:[%s731_s1] sm:$0xff]   ;;  %s274_s19 = scalar_lea.vmem %s733_s3, %s534_s6 }
   0xf   : > { %561 = vmatprep.subr.bf16.mxu0 %v637_v1  ;;  %v286_v9 = vld [vmem:[%s258_s11] sm:$0xff]  ;;  %v287_v10 = vld [vmem:[%s258_s11 + $0x8] sm:$0xff]  ;;  %s283_s24 = scalar_lea.vmem %s734_s4, %s534_s6 }
  0x10   : > { %v288_v11 = vpack.c.bf16 %v287_v10, %v286_v9  ;;  %v394_v12 = vld [vmem:[%s274_s19] sm:$0xff]  ;;  %v395_v17 = vld [vmem:[%s274_s19 + $0x8] sm:$0xff] }
  0x11   : > { %v547_v14 = vld [vmem:[%s732_s2] ss:$0 sm:$0xff] }
  0x12   : > { %562 = vmatpush3.bf16.msra.mxu0 %v606_v2 }
  0x13   : > { %563 = vmatprep.subr.bf16.mxu0 %v637_v1 }
  0x16   : > { %564 = vmatpush3.bf16.msra.mxu0 %v607_v3 }
  0x17   : > { %565 = vmatprep.subr.bf16.mxu0 %v637_v1 }
  0x1a   : > { %566 = vmatpush3.bf16.msra.mxu0 %v608_v4 }
  0x1b   : > { %567 = vmatprep.subr.bf16.mxu0 %v637_v1 }
  0x1e   : > { %568 = vmatpush3.bf16.msra.mxu0 %v609_v5 }
  0x1f   : > { %569 = vmatprep.subr.bf16.mxu0 %v637_v1 }
  0x22   : > { %570 = vmatpush3.bf16.msra.mxu0 %v610_v6 }
  0x23   : > { %571 = vmatprep.subr.bf16.mxu0 %v637_v1 }
  0x26   : > { %572 = vmatpush3.bf16.msra.mxu0 %v611_v7 }
  0x27   : > { %573 = vmatprep.subr.bf16.mxu0 %v637_v1 }
  0x2a   : > { %574 = vmatpush3.bf16.msra.mxu0 %v612_v8 }
  0x2d   : > { %576 = vmatmul.mubr.bf16.vlgmr.msra.gmra.mxu0 %v288_v11 }
  0xed   : > { %v387_v13 = vpop.f32.mrf.mxu0 }
  0xee   : > { %v396_v15 = vadd.f32 %v394_v12, %v387_v13 }
  0xef   : > { %v577_v16 = vpop.f32.mrf.mxu0 }
  0xf0   : > { %v405_v18 = vadd.f32 %v547_v14, %v396_v15 }
  0xf1   : > { %v390_v19 = vpop.f32.mrf.mxu0 }
  0xf2   : > { %v397_v20 = vadd.f32 %v395_v17, %v390_v19  ;;  %407 = vst [vmem:[%s283_s24] sm:$0xff] %v405_v18 }
  0xf3   : > { %v578_v21 = vpop.f32.mrf.mxu0 }
  0xf4   : > { %v406_v22 = vadd.f32 %v547_v14, %v397_v20 }
  0xf6   : > { %408 = vst [vmem:[%s283_s24 + $0x8] sm:$0xff] %v406_v22 }
  0xf7 PF: > { %s14_s17 = sadd.s32 1, %s635_s17   ;;  %s735_s15 = smov %s631_s16 }
  0xf8   : > { %p11_p5 = scmp.ge.s32.totalorder %s14_s17, 4   ;;  %s736_s16 = smov %s738_s18 }
  0xfa   :  { %13 = sbr.rel (!%p11_p5) target bundleno = 2 (0x2), region = 75 }

// kernel: _lambda_.9
= control target key start
LH: loop header
LB: loop body
LE: loop exit
PB: predicated region body
PF: predicated region fallthrough
CT: control target
= control target key end

     0   :  { %s938_s18 = smov 0   ;;  %s940_s19 = smov 0   ;;  %s1066_s0 = inlined_call_operand.vmem [shape: f32[32,128], index: 0, kind: input, shape index: {}]   ;;  %s1067_s1 = inlined_call_operand.vmem [shape: f32[1,128], index: 1, kind: input, shape index: {}]   ;;  %s1068_s2 = inlined_call_operand.vmem [shape: f32[1,128], index: 2, kind: input, shape index: {}]   ;;  %s1069_s3 = inlined_call_operand.vmem [shape: bf16[128,384], index: 3, kind: input, shape index: {}]   ;;  %s1070_s4 = inlined_call_operand.vmem [shape: f32[1,384], index: 4, kind: input, shape index: {}]   ;;  %s1071_s5 = inlined_call_operand.vmem [shape: f32[32,384], index: 5, kind: output, shape index: {}]  }
   0x1   :  { %s942_s20 = smov 0  }
   0x2 LB: > { %s27_s21 = sadd.s32 1, %s899_s19  ;;  %p744_p0 = scmp.ge.s32.totalorder %s903_s20, 1  ;;  %s903_s20 = sphi %s942_s20, %s15_s20   ;;  %s899_s19 = sphi %s940_s19, %s1073_s19   ;;  %s895_s18 = sphi %s938_s18, %s1072_s18  }
   0x3   : > { %p29_p1 = scmp.ge.s32.totalorder %s27_s21, 2  ;;  %p223_p2 = scmp.lt.s32.totalorder %s903_s20, 3 }
   0x5   : > { %s1075_s21 = smov (%p29_p1, %s27_s21), 0  ;;  %p224_p3 = pnand %p744_p0, %p223_p2 }
   0x6   : > { %s745_s22 = sshll.u32 (!%p224_p3), %s895_s18, 1 }
   0x7   : > { %227 = sbr.rel (%p224_p3) target bundleno = 538 (0x21a), region = 40  ;;  %p266_p4 = scmp.lt.s32.totalorder (!%p224_p3), %s745_s22, 3 }
   0xc   : > { %s1077_s22 = smov (!%p266_p4, %s745_s22), 3  ;;  %v844_v10 = vld [vmem:[%s1069_s3 + $0xac] ss:$12 sps:$4 sm:$0xff]   ;;  %v846_v11 = vld [vmem:[%s1069_s3 + $0xa8] ss:$12 sps:$4 sm:$0xff]   ;;  %v905_v13 = vmov 0.0   ;;  %v388_v54 = vlaneseq }
   0xd   : > { %s746_s23 = sshll.u32 %s1077_s22, 3  ;;  %v847_v12 = vld [vmem:[%s1069_s3 + $0xb0] ss:$12 sps:$4 sm:$0xff]   ;;  %537 = vmatprep.subr.bf16.mxu0 %v844_v10  ;;  %796 = vmatprep.subr.bf16.mxu1 %v905_v13  ;;  %v848_v14 = vld [vmem:[%s1069_s3 + $0x94] ss:$12 sps:$4 sm:$0xff]   ;;  %v906_v35 = vmov 0  }
   0xe   : > { %s269_s26 = scalar_lea.vmem %s1066_s0, %s746_s23  ;;  %538 = vmatpush1.bf16.msra.mxu0 %v846_v11  ;;  %797 = vmatpush3.bf16.msra.mxu1 %v847_v12  ;;  %v850_v15 = vld [vmem:[%s1069_s3 + $0x90] ss:$12 sps:$4 sm:$0xff]   ;;  %v851_v16 = vld [vmem:[%s1069_s3 + $0x98] ss:$12 sps:$4 sm:$0xff]   ;;  %v855_v19 = vld [vmem:[%s1069_s3 + $0x80] ss:$12 sps:$4 sm:$0xff]  }
   0xf   : > { %v299_v0 = vld [vmem:[%s269_s26] sm:$0xff]  ;;  %v300_v1 = vld [vmem:[%s269_s26 + $0x8] sm:$0xff]  ;;  %798 = vmatprep.subr.bf16.mxu1 %v905_v13  ;;  %539 = vmatprep.subr.bf16.mxu0 %v848_v14  ;;  %v863_v25 = vld [vmem:[%s1069_s3 + $0x50] ss:$12 sps:$4 sm:$0xff]   ;;  %vm907_vm0 = vmmov 0   ;;  %v389_v55 = vshrl.u32 %v388_v54, 7 }
  0x10   : > { %303 = vadd.xlane.f32.xlu0 %v299_v0  ;;  %v852_v17 = vld [vmem:[%s1069_s3 + $0x7c] ss:$12 sps:$4 sm:$0xff]   ;;  %v854_v18 = vld [vmem:[%s1069_s3 + $0x78] ss:$12 sps:$4 sm:$0xff]   ;;  %v858_v21 = vld [vmem:[%s1069_s3 + $0x60] ss:$12 sps:$4 sm:$0xff]   ;;  %569 = vmatprep.mubr.bf16.mxu0 %v906_v35 }
  0x11   : > { %v856_v20 = vld [vmem:[%s1069_s3 + $0x64] ss:$12 sps:$4 sm:$0xff]   ;;  %v859_v22 = vld [vmem:[%s1069_s3 + $0x68] ss:$12 sps:$4 sm:$0xff]   ;;  %v860_v23 = vld [vmem:[%s1069_s3 + $0x4c] ss:$12 sps:$4 sm:$0xff]   ;;  %812 = vmatprep.mubr.msk.bf16.mxu1 %vm907_vm0, %v905_v13 }
  0x12   : > { %540 = vmatpush1.bf16.msra.mxu0 %v850_v15  ;;  %799 = vmatpush3.bf16.msra.mxu1 %v851_v16  ;;  %v862_v24 = vld [vmem:[%s1069_s3 + $0x48] ss:$12 sps:$4 sm:$0xff]   ;;  %v866_v27 = vld [vmem:[%s1069_s3 + $0x30] ss:$12 sps:$4 sm:$0xff]   ;;  %v867_v28 = vld [vmem:[%s1069_s3 + $0x38] ss:$12 sps:$4 sm:$0xff]  }
  0x13   : > { %800 = vmatprep.subr.bf16.mxu1 %v905_v13  ;;  %541 = vmatprep.subr.bf16.mxu0 %v852_v17  ;;  %v864_v26 = vld [vmem:[%s1069_s3 + $0x34] ss:$12 sps:$4 sm:$0xff]   ;;  %v868_v29 = vld [vmem:[%s1069_s3 + $0x1c] ss:$12 sps:$4 sm:$0xff]   ;;  %v870_v30 = vld [vmem:[%s1069_s3 + $0x18] ss:$12 sps:$4 sm:$0xff]  }
  0x14   : > { %305 = vadd.xlane.f32.xlu0 %v300_v1  ;;  %v871_v31 = vld [vmem:[%s1069_s3 + $0x20] ss:$12 sps:$4 sm:$0xff]   ;;  %v872_v32 = vld [vmem:[%s1069_s3 + $0x4] ss:$12 sps:$4 sm:$0xff]   ;;  %v875_v34 = vld [vmem:[%s1069_s3 + $0x8] ss:$12 sps:$4 sm:$0xff]  }
  0x15   : > { %v874_v33 = vld [vmem:[%s1069_s3] ss:$12 sps:$4 sm:$0xff]   ;;  %v390_v56 = vsub.s32 0, %v389_v55  ;;  %v398_v57 = vsub.s32 2, %v389_v55  ;;  %v394_v59 = vsub.s32 1, %v389_v55  ;;  %s816_s14 = smul.u32 24, %s1077_s22 }
  0x16   : > { %542 = vmatpush1.bf16.msra.mxu0 %v854_v18  ;;  %801 = vmatpush3.bf16.msra.mxu1 %v855_v19  ;;  %v749_v44 = vld [vmem:[%s1067_s1] ss:$0 sm:$0xff] }
  0x17   : > { %802 = vmatprep.subr.bf16.mxu1 %v905_v13  ;;  %543 = vmatprep.subr.bf16.mxu0 %v856_v20  ;;  %v750_v48 = vld [vmem:[%s1068_s2] ss:$0 sm:$0xff]  ;;  %s291_s17 = scalar_lea.vmem %s1071_s5, %s816_s14 }
  0x18   : > { %v386_v58 = vld [vmem:[%s1070_s4] sm:$0x7] }
  0x19   : > { %v391_v60 = vrot.slane %v386_v58, %v390_v56  ;;  %v399_v61 = vrot.slane %v386_v58, %v398_v57  ;;  %v395_v62 = vrot.slane %v386_v58, %v394_v59 }
  0x1a   : > { %544 = vmatpush1.bf16.msra.mxu0 %v858_v21  ;;  %803 = vmatpush3.bf16.msra.mxu1 %v859_v22 }
  0x1b   : > { %804 = vmatprep.subr.bf16.mxu1 %v905_v13  ;;  %545 = vmatprep.subr.bf16.mxu0 %v860_v23 }
  0x1e   : > { %546 = vmatpush1.bf16.msra.mxu0 %v862_v24  ;;  %805 = vmatpush3.bf16.msra.mxu1 %v863_v25 }
  0x1f   : > { %806 = vmatprep.subr.bf16.mxu1 %v905_v13  ;;  %547 = vmatprep.subr.bf16.mxu0 %v864_v26 }
  0x22   : > { %548 = vmatpush1.bf16.msra.mxu0 %v866_v27  ;;  %807 = vmatpush3.bf16.msra.mxu1 %v867_v28 }
  0x23   : > { %808 = vmatprep.subr.bf16.mxu1 %v905_v13  ;;  %549 = vmatprep.subr.bf16.mxu0 %v868_v29 }
  0x26   : > { %550 = vmatpush1.bf16.msra.mxu0 %v870_v30  ;;  %809 = vmatpush3.bf16.msra.mxu1 %v871_v31 }
  0x27   : > { %551 = vmatprep.subr.bf16.mxu0 %v872_v32  ;;  %810 = vmatprep.subr.bf16.mxu1 %v905_v13 }
  0x2a   : > { %552 = vmatpush1.bf16.msra.mxu0 %v874_v33  ;;  %811 = vmatpush3.bf16.msra.mxu1 %v875_v34 }
  0x99   : > { %v304_v2 = vpop.xlane.xlu0 %303 }
  0x9a   : > { %v308_v3 = vmul.f32 0.0078125, %v304_v2 }
  0x9c   : > { %v962_v4 = vsub.f32 %v299_v0, %v308_v3 }
  0x9d   : > { %v306_v5 = vpop.xlane.xlu0 %305 }
  0x9e   : > { %v309_v6 = vmul.f32 0.0078125, %v306_v5  ;;  %v312_v7 = vmul.f32 %v962_v4, %v962_v4 }
  0xa0   : > { %v966_v8 = vsub.f32 %v300_v1, %v309_v6  ;;  %314 = vadd.xlane.f32.xlu1 %v312_v7 }
  0xa2   : > { %v313_v9 = vmul.f32 %v966_v8, %v966_v8 }
  0xa4   : > { %316 = vadd.xlane.f32.xlu1 %v313_v9 }
 0x129   : > { %v315_v36 = vpop.xlane.xlu1 %314 }
 0x12a   : > { %v318_v37 = vmul.f32 0.0078125, %v315_v36 }
 0x12c   : > { %v320_v38 = vadd.f32 1e-05, %v318_v37 }
 0x12d   : > { %v317_v39 = vpop.xlane.xlu1 %316 }
 0x12e   : > { %877 = vrsqrt.f32 %v320_v38  ;;  %v319_v40 = vmul.f32 0.0078125, %v317_v39 }
 0x130   : > { %v321_v41 = vadd.f32 1e-05, %v319_v40 }
 0x132   : > { %879 = vrsqrt.f32 %v321_v41 }
 0x13b   : > { %v878_v42 = vpop.eup %877 }
 0x13c   : > { %v324_v43 = vmul.f32 %v878_v42, %v962_v4 }
 0x13e   : > { %v332_v46 = vmul.f32 %v749_v44, %v324_v43 }
 0x13f   : > { %v880_v45 = vpop.eup %879 }
 0x140   : > { %v325_v47 = vmul.f32 %v880_v45, %v966_v8  ;;  %v340_v50 = vadd.f32 %v750_v48, %v332_v46 }
 0x142   : > { %v333_v49 = vmul.f32 %v749_v44, %v325_v47 }
 0x144   : > { %v341_v51 = vadd.f32 %v750_v48, %v333_v49 }
 0x146   : > { %v785_v52 = vpack.c.bf16 %v341_v51, %v340_v50 }
 0x148   : > { %786 = vst [vmem:[#allocation2] sm:$0xff] %v785_v52  }
 0x14f   : > { %v876_v53 = vld [vmem:[#allocation2] sm:$0xff]  }
 0x150   : > { %570 = vmatmul.mubr.bf16.vlgmr.msra.gmra.mxu0 %v876_v53  ;;  %813 = vmatmul.mubr.bf16.vlgmr.msra.gmra.mxu1 %v876_v53 }
 0x210   : > { %v571_v63 = vpop.f32.mrf.mxu0  ;;  %v614_v0 = vpop.f32.mrf.mxu1 }
 0x211   : > { %v572_v1 = vadd.f32 %v571_v63, %v391_v60  ;;  %v615_v2 = vadd.f32 %v614_v0, %v399_v61 }
 0x212   : > { %v573_v3 = vpop.f32.mrf.mxu0  ;;  %v814_v4 = vpop.f32.mrf.mxu1 }
 0x213   : > { %621 = vst [vmem:[%s291_s17] sm:$0xff] %v572_v1  ;;  %623 = vst [vmem:[%s291_s17 + $0x10] sm:$0xff] %v615_v2  ;;  %v574_v5 = vadd.f32 %v573_v3, %v395_v62 }
 0x214   : > { %v575_v6 = vpop.f32.mrf.mxu0  ;;  %v617_v7 = vpop.f32.mrf.mxu1 }
 0x215   : > { %622 = vst [vmem:[%s291_s17 + $0x8] sm:$0xff] %v574_v5  ;;  %v576_v8 = vadd.f32 %v575_v6, %v391_v60  ;;  %v618_v9 = vadd.f32 %v617_v7, %v399_v61 }
 0x216   : > { %v577_v10 = vpop.f32.mrf.mxu0  ;;  %v815_v11 = vpop.f32.mrf.mxu1 }
 0x217   : > { %624 = vst [vmem:[%s291_s17 + $0x18] sm:$0xff] %v576_v8  ;;  %626 = vst [vmem:[%s291_s17 + $0x28] sm:$0xff] %v618_v9  ;;  %v578_v12 = vadd.f32 %v577_v10, %v395_v62 }
 0x219   : > { %625 = vst [vmem:[%s291_s17 + $0x20] sm:$0xff] %v578_v12 }
 0x21a PF: > { %s15_s20 = sadd.s32 1, %s903_s20   ;;  %s1072_s18 = smov %s899_s19 }
 0x21b   : > { %p12_p5 = scmp.ge.s32.totalorder %s15_s20, 4   ;;  %s1073_s19 = smov %s1075_s21 }
 0x21d   :  { %14 = sbr.rel (!%p12_p5) target bundleno = 2 (0x2), region = 80 }

// kernel: _lambda_.12
= control target key start
LH: loop header
LB: loop body
LE: loop exit
PB: predicated region body
PF: predicated region fallthrough
CT: control target
= control target key end

     0   :  { %s1598_s24 = smov 0   ;;  %s1600_s25 = smov 0   ;;  %s1890_s0 = inlined_call_operand.vmem [shape: f32[32,128], index: 0, kind: input, shape index: {}, may-alias: {0,7}]   ;;  %s1891_s1 = inlined_call_operand.vmem [shape: f32[1,128], index: 1, kind: input, shape index: {}]   ;;  %s1892_s2 = inlined_call_operand.vmem [shape: f32[1,128], index: 2, kind: input, shape index: {}]   ;;  %s1893_s3 = inlined_call_operand.vmem [shape: bf16[128,512], index: 3, kind: input, shape index: {}]   ;;  %s1894_s4 = inlined_call_operand.vmem [shape: f32[1,512], index: 4, kind: input, shape index: {}]   ;;  %s1895_s5 = inlined_call_operand.vmem [shape: bf16[512,128], index: 5, kind: input, shape index: {}]   ;;  %s1896_s6 = inlined_call_operand.vmem [shape: f32[1,128], index: 6, kind: input, shape index: {}]   ;;  %s1897_s7 = inlined_call_operand.vmem [shape: f32[32,128], index: 7, kind: output, shape index: {}, may-alias: {0,7}]  }
   0x1   :  { %s1602_s26 = smov 0  }
   0x2 LB: > { %s29_s27 = sadd.s32 1, %s1551_s25  ;;  %p1279_p0 = scmp.ge.s32.totalorder %s1555_s26, 1  ;;  %s1555_s26 = sphi %s1602_s26, %s17_s26   ;;  %s1551_s25 = sphi %s1600_s25, %s1899_s25   ;;  %s1547_s24 = sphi %s1598_s24, %s1898_s24  }
   0x3   : > { %p31_p1 = scmp.ge.s32.totalorder %s29_s27, 2  ;;  %p282_p2 = scmp.lt.s32.totalorder %s1555_s26, 3 }
   0x5   : > { %s1901_s27 = smov (%p31_p1, %s29_s27), 0  ;;  %p283_p3 = pnand %p1279_p0, %p282_p2 }
   0x6   : > { %s1280_s28 = sshll.u32 (!%p283_p3), %s1547_s24, 1 }
   0x7   : > { %286 = sbr.rel (%p283_p3) target bundleno = 778 (0x30a), region = 48  ;;  %p329_p4 = scmp.lt.s32.totalorder (!%p283_p3), %s1280_s28, 3 }
   0xc   : > { %s1903_s28 = smov (!%p329_p4, %s1280_s28), 3  ;;  %v1432_v10 = vld [vmem:[%s1893_s3 + $0xe4] ss:$16 sps:$4 sm:$0xff]   ;;  %v1434_v11 = vld [vmem:[%s1893_s3 + $0xec] ss:$16 sps:$4 sm:$0xff]   ;;  %v1557_v42 = vmov 0  }
   0xd   : > { %s1281_s29 = sshll.u32 %s1903_s28, 3  ;;  %v1436_v12 = vld [vmem:[%s1893_s3 + $0xe0] ss:$16 sps:$4 sm:$0xff]   ;;  %v1437_v13 = vld [vmem:[%s1893_s3 + $0xe8] ss:$16 sps:$4 sm:$0xff]   ;;  %639 = vmatprep.subr.bf16.mxu0 %v1432_v10  ;;  %682 = vmatprep.subr.bf16.mxu1 %v1434_v11 }
   0xe   : > { %s332_s9 = scalar_lea.vmem %s1890_s0, %s1281_s29  ;;  %640 = vmatpush1.bf16.msra.mxu0 %v1436_v12  ;;  %683 = vmatpush1.bf16.msra.mxu1 %v1437_v13  ;;  %v1438_v14 = vld [vmem:[%s1893_s3 + $0xc4] ss:$16 sps:$4 sm:$0xff]   ;;  %v1440_v15 = vld [vmem:[%s1893_s3 + $0xcc] ss:$16 sps:$4 sm:$0xff]   ;;  %v1442_v16 = vld [vmem:[%s1893_s3 + $0xc0] ss:$16 sps:$4 sm:$0xff]   ;;  %s355_s22 = scalar_lea.vmem %s1897_s7, %s1281_s29 }
   0xf   : > { %v1624_v0 = vld [vmem:[%s332_s9] sm:$0xff]  ;;  %v1626_v1 = vld [vmem:[%s332_s9 + $0x8] sm:$0xff]  ;;  %641 = vmatprep.subr.bf16.mxu0 %v1438_v14  ;;  %684 = vmatprep.subr.bf16.mxu1 %v1440_v15  ;;  %v1481_v61 = vld [vmem:[%s1895_s5 + $0x78] sm:$0xff]  }
  0x10   : > { %368 = vadd.xlane.f32.xlu0 %v1624_v0  ;;  %v1443_v17 = vld [vmem:[%s1893_s3 + $0xc8] ss:$16 sps:$4 sm:$0xff]   ;;  %v1444_v18 = vld [vmem:[%s1893_s3 + $0xa4] ss:$16 sps:$4 sm:$0xff]   ;;  %v1446_v19 = vld [vmem:[%s1893_s3 + $0xac] ss:$16 sps:$4 sm:$0xff]   ;;  %671 = vmatprep.mubr.bf16.mxu0 %v1557_v42 }
  0x11   : > { %v1448_v20 = vld [vmem:[%s1893_s3 + $0xa0] ss:$16 sps:$4 sm:$0xff]   ;;  %v1449_v21 = vld [vmem:[%s1893_s3 + $0xa8] ss:$16 sps:$4 sm:$0xff]   ;;  %v1450_v22 = vld [vmem:[%s1893_s3 + $0x84] ss:$16 sps:$4 sm:$0xff]   ;;  %714 = vmatprep.mubr.bf16.mxu1 %v1557_v42 }
  0x12   : > { %642 = vmatpush1.bf16.msra.mxu0 %v1442_v16  ;;  %685 = vmatpush1.bf16.msra.mxu1 %v1443_v17  ;;  %v1452_v23 = vld [vmem:[%s1893_s3 + $0x8c] ss:$16 sps:$4 sm:$0xff]   ;;  %v1454_v24 = vld [vmem:[%s1893_s3 + $0x80] ss:$16 sps:$4 sm:$0xff]   ;;  %v1455_v25 = vld [vmem:[%s1893_s3 + $0x88] ss:$16 sps:$4 sm:$0xff]  }
  0x13   : > { %643 = vmatprep.subr.bf16.mxu0 %v1444_v18  ;;  %686 = vmatprep.subr.bf16.mxu1 %v1446_v19  ;;  %v1456_v26 = vld [vmem:[%s1893_s3 + $0x64] ss:$16 sps:$4 sm:$0xff]   ;;  %v1458_v27 = vld [vmem:[%s1893_s3 + $0x6c] ss:$16 sps:$4 sm:$0xff]   ;;  %v1460_v28 = vld [vmem:[%s1893_s3 + $0x60] ss:$16 sps:$4 sm:$0xff]  }
  0x14   : > { %370 = vadd.xlane.f32.xlu0 %v1626_v1  ;;  %v1461_v29 = vld [vmem:[%s1893_s3 + $0x68] ss:$16 sps:$4 sm:$0xff]   ;;  %v1462_v30 = vld [vmem:[%s1893_s3 + $0x44] ss:$16 sps:$4 sm:$0xff]   ;;  %v1464_v31 = vld [vmem:[%s1893_s3 + $0x4c] ss:$16 sps:$4 sm:$0xff]  }
  0x15   : > { %v1466_v32 = vld [vmem:[%s1893_s3 + $0x40] ss:$16 sps:$4 sm:$0xff]   ;;  %v1467_v33 = vld [vmem:[%s1893_s3 + $0x48] ss:$16 sps:$4 sm:$0xff]   ;;  %v1468_v34 = vld [vmem:[%s1893_s3 + $0x24] ss:$16 sps:$4 sm:$0xff]  }
  0x16   : > { %644 = vmatpush1.bf16.msra.mxu0 %v1448_v20  ;;  %687 = vmatpush1.bf16.msra.mxu1 %v1449_v21  ;;  %v1470_v35 = vld [vmem:[%s1893_s3 + $0x2c] ss:$16 sps:$4 sm:$0xff]   ;;  %v1472_v36 = vld [vmem:[%s1893_s3 + $0x20] ss:$16 sps:$4 sm:$0xff]   ;;  %v1473_v37 = vld [vmem:[%s1893_s3 + $0x28] ss:$16 sps:$4 sm:$0xff]  }
  0x17   : > { %645 = vmatprep.subr.bf16.mxu0 %v1450_v22  ;;  %688 = vmatprep.subr.bf16.mxu1 %v1452_v23  ;;  %v1474_v38 = vld [vmem:[%s1893_s3 + $0x4] ss:$16 sps:$4 sm:$0xff]   ;;  %v1476_v39 = vld [vmem:[%s1893_s3 + $0xc] ss:$16 sps:$4 sm:$0xff]   ;;  %v1478_v40 = vld [vmem:[%s1893_s3] ss:$16 sps:$4 sm:$0xff]  }
  0x18   : > { %v1479_v41 = vld [vmem:[%s1893_s3 + $0x8] ss:$16 sps:$4 sm:$0xff]   ;;  %v1284_v51 = vld [vmem:[%s1891_s1] ss:$0 sm:$0xff]  ;;  %v1501_v19 = vld [vmem:[%s1895_s5 + $0x50] sm:$0xff]  }
  0x19   : > { %v1285_v55 = vld [vmem:[%s1892_s2] ss:$0 sm:$0xff]  ;;  %v1482_v62 = vld [vmem:[%s1895_s5 + $0xf8] sm:$0xff]   ;;  %v1492_v10 = vld [vmem:[%s1895_s5 + $0xa8] sm:$0xff]  }
  0x1a   : > { %646 = vmatpush1.bf16.msra.mxu0 %v1454_v24  ;;  %689 = vmatpush1.bf16.msra.mxu1 %v1455_v25  ;;  %v1483_v63 = vld [vmem:[%s1895_s5 + $0x38] sm:$0xff]   ;;  %v1493_v11 = vld [vmem:[%s1895_s5 + $0x60] sm:$0xff]   ;;  %v1502_v20 = vld [vmem:[%s1895_s5 + $0xd0] sm:$0xff]  }
  0x1b   : > { %647 = vmatprep.subr.bf16.mxu0 %v1456_v26  ;;  %690 = vmatprep.subr.bf16.mxu1 %v1458_v27  ;;  %v1494_v12 = vld [vmem:[%s1895_s5 + $0xe0] sm:$0xff]   ;;  %v1497_v15 = vld [vmem:[%s1895_s5 + $0x58] sm:$0xff]   ;;  %v1503_v21 = vld [vmem:[%s1895_s5 + $0x10] sm:$0xff]  }
  0x1c   : > { %v1495_v13 = vld [vmem:[%s1895_s5 + $0x20] sm:$0xff]   ;;  %v1498_v16 = vld [vmem:[%s1895_s5 + $0xd8] sm:$0xff]   ;;  %v1504_v22 = vld [vmem:[%s1895_s5 + $0x90] sm:$0xff]  }
  0x1d   : > { %v1496_v14 = vld [vmem:[%s1895_s5 + $0xa0] sm:$0xff]   ;;  %v1499_v17 = vld [vmem:[%s1895_s5 + $0x18] sm:$0xff]   ;;  %v1505_v23 = vld [vmem:[%s1895_s5 + $0x48] sm:$0xff]  }
  0x1e   : > { %648 = vmatpush1.bf16.msra.mxu0 %v1460_v28  ;;  %691 = vmatpush1.bf16.msra.mxu1 %v1461_v29  ;;  %v1500_v18 = vld [vmem:[%s1895_s5 + $0x98] sm:$0xff]   ;;  %v1506_v24 = vld [vmem:[%s1895_s5 + $0xc8] sm:$0xff]   ;;  %v1509_v27 = vld [vmem:[%s1895_s5 + $0x40] sm:$0xff]  }
  0x1f   : > { %649 = vmatprep.subr.bf16.mxu0 %v1462_v30  ;;  %692 = vmatprep.subr.bf16.mxu1 %v1464_v31  ;;  %v1507_v25 = vld [vmem:[%s1895_s5 + $0x8] sm:$0xff]   ;;  %v1510_v28 = vld [vmem:[%s1895_s5 + $0xc0] sm:$0xff]   ;;  %v453_v31 = vlaneseq }
  0x20   : > { %v1508_v26 = vld [vmem:[%s1895_s5 + $0x88] sm:$0xff]   ;;  %v1511_v29 = vld [vmem:[%s1895_s5] sm:$0xff]  }
  0x21   : > { %v1512_v30 = vld [vmem:[%s1895_s5 + $0x80] sm:$0xff]  }
  0x22   : > { %650 = vmatpush1.bf16.msra.mxu0 %v1466_v32  ;;  %693 = vmatpush1.bf16.msra.mxu1 %v1467_v33  ;;  %v454_v32 = vshrl.u32 %v453_v31, 7 }
  0x23   : > { %651 = vmatprep.subr.bf16.mxu0 %v1468_v34  ;;  %694 = vmatprep.subr.bf16.mxu1 %v1470_v35  ;;  %v451_v35 = vld [vmem:[%s1894_s4] sm:$0xf] }
  0x24   : > { %v455_v33 = vsub.s32 0, %v454_v32  ;;  %v463_v34 = vsub.s32 2, %v454_v32 }
  0x26   : > { %652 = vmatpush1.bf16.msra.mxu0 %v1472_v36  ;;  %695 = vmatpush1.bf16.msra.mxu1 %v1473_v37  ;;  %v459_v36 = vsub.s32 1, %v454_v32  ;;  %v467_v37 = vsub.s32 3, %v454_v32 }
  0x27   : > { %653 = vmatprep.subr.bf16.mxu0 %v1474_v38  ;;  %696 = vmatprep.subr.bf16.mxu1 %v1476_v39  ;;  %v456_v38 = vrot.slane %v451_v35, %v455_v33  ;;  %v464_v39 = vrot.slane %v451_v35, %v463_v34 }
  0x2a   : > { %654 = vmatpush1.bf16.msra.mxu0 %v1478_v40  ;;  %697 = vmatpush1.bf16.msra.mxu1 %v1479_v41  ;;  %v460_v40 = vrot.slane %v451_v35, %v459_v36  ;;  %v468_v41 = vrot.slane %v451_v35, %v467_v37 }
  0x2b   : > { %1363 = vmatprep.subr.bf16.mxu0 %v1481_v61  ;;  %1385 = vmatprep.subr.bf16.mxu1 %v1482_v62 }
  0x99   : > { %v369_v2 = vpop.xlane.xlu0 %368 }
  0x9a   : > { %v373_v3 = vmul.f32 0.0078125, %v369_v2  ;;  %v1484_v2 = vld [vmem:[%s1895_s5 + $0xb8] sm:$0xff]  }
  0x9c   : > { %v1631_v4 = vsub.f32 %v1624_v0, %v373_v3  ;;  %v1485_v3 = vld [vmem:[%s1895_s5 + $0x70] sm:$0xff]  }
  0x9d   : > { %v371_v5 = vpop.xlane.xlu0 %370 }
  0x9e   : > { %v374_v6 = vmul.f32 0.0078125, %v371_v5  ;;  %v377_v7 = vmul.f32 %v1631_v4, %v1631_v4  ;;  %v1487_v5 = vld [vmem:[%s1895_s5 + $0x30] sm:$0xff]  }
  0xa0   : > { %v1636_v8 = vsub.f32 %v1626_v1, %v374_v6  ;;  %379 = vadd.xlane.f32.xlu1 %v377_v7  ;;  %v1488_v6 = vld [vmem:[%s1895_s5 + $0xb0] sm:$0xff]   ;;  %v1489_v7 = vld [vmem:[%s1895_s5 + $0x68] sm:$0xff]  }
  0xa2   : > { %v378_v9 = vmul.f32 %v1636_v8, %v1636_v8 }
  0xa4   : > { %381 = vadd.xlane.f32.xlu1 %v378_v9  ;;  %v1491_v9 = vld [vmem:[%s1895_s5 + $0x28] sm:$0xff]  }
 0x129   : > { %v380_v43 = vpop.xlane.xlu1 %379 }
 0x12a   : > { %v383_v44 = vmul.f32 0.0078125, %v380_v43 }
 0x12c   : > { %v385_v45 = vadd.f32 1e-05, %v383_v44 }
 0x12d   : > { %v382_v46 = vpop.xlane.xlu1 %381 }
 0x12e   : > { %1513 = vrsqrt.f32 %v385_v45  ;;  %v384_v47 = vmul.f32 0.0078125, %v382_v46 }
 0x130   : > { %v386_v48 = vadd.f32 1e-05, %v384_v47 }
 0x132   : > { %1515 = vrsqrt.f32 %v386_v48 }
 0x13b   : > { %v1514_v49 = vpop.eup %1513 }
 0x13c   : > { %v389_v50 = vmul.f32 %v1514_v49, %v1631_v4  ;;  %v1486_v4 = vld [vmem:[%s1895_s5 + $0xf0] sm:$0xff]  }
 0x13e   : > { %v397_v53 = vmul.f32 %v1284_v51, %v389_v50 }
 0x13f   : > { %v1516_v52 = vpop.eup %1515 }
 0x140   : > { %v390_v54 = vmul.f32 %v1516_v52, %v1636_v8  ;;  %v405_v57 = vadd.f32 %v1285_v55, %v397_v53  ;;  %v1490_v8 = vld [vmem:[%s1895_s5 + $0xe8] sm:$0xff]  }
 0x142   : > { %v398_v56 = vmul.f32 %v1284_v51, %v390_v54 }
 0x144   : > { %v406_v58 = vadd.f32 %v1285_v55, %v398_v56 }
 0x146   : > { %v1361_v59 = vpack.c.bf16 %v406_v58, %v405_v57 }
 0x148   : > { %1362 = vst [vmem:[#allocation3] sm:$0xff] %v1361_v59  }
 0x14f   : > { %v1480_v60 = vld [vmem:[#allocation3] sm:$0xff]  }
 0x150   : > { %672 = vmatmul.mubr.bf16.vlgmr.msra.gmra.mxu0 %v1480_v60  ;;  %715 = vmatmul.mubr.bf16.vlgmr.msra.gmra.mxu1 %v1480_v60 }
 0x151   : > { %1364 = vmatpush3.bf16.msra.mxu0 %v1483_v63  ;;  %1386 = vmatpush3.bf16.msra.mxu1 %v1484_v2 }
 0x152   : > { %1365 = vmatprep.subr.bf16.mxu0 %v1485_v3  ;;  %1387 = vmatprep.subr.bf16.mxu1 %v1486_v4 }
 0x155   : > { %1366 = vmatpush3.bf16.msra.mxu0 %v1487_v5  ;;  %1388 = vmatpush3.bf16.msra.mxu1 %v1488_v6 }
 0x156   : > { %1367 = vmatprep.subr.bf16.mxu0 %v1489_v7  ;;  %1389 = vmatprep.subr.bf16.mxu1 %v1490_v8 }
 0x159   : > { %1368 = vmatpush3.bf16.msra.mxu0 %v1491_v9  ;;  %1390 = vmatpush3.bf16.msra.mxu1 %v1492_v10 }
 0x15a   : > { %1369 = vmatprep.subr.bf16.mxu0 %v1493_v11  ;;  %1391 = vmatprep.subr.bf16.mxu1 %v1494_v12 }
 0x15d   : > { %1370 = vmatpush3.bf16.msra.mxu0 %v1495_v13  ;;  %1392 = vmatpush3.bf16.msra.mxu1 %v1496_v14 }
 0x15e   : > { %1371 = vmatprep.subr.bf16.mxu0 %v1497_v15  ;;  %1393 = vmatprep.subr.bf16.mxu1 %v1498_v16 }
 0x161   : > { %1372 = vmatpush3.bf16.msra.mxu0 %v1499_v17  ;;  %1394 = vmatpush3.bf16.msra.mxu1 %v1500_v18 }
 0x162   : > { %1373 = vmatprep.subr.bf16.mxu0 %v1501_v19  ;;  %1395 = vmatprep.subr.bf16.mxu1 %v1502_v20 }
 0x165   : > { %1374 = vmatpush3.bf16.msra.mxu0 %v1503_v21  ;;  %1396 = vmatpush3.bf16.msra.mxu1 %v1504_v22 }
 0x166   : > { %1375 = vmatprep.subr.bf16.mxu0 %v1505_v23  ;;  %1397 = vmatprep.subr.bf16.mxu1 %v1506_v24 }
 0x169   : > { %1376 = vmatpush3.bf16.msra.mxu0 %v1507_v25  ;;  %1398 = vmatpush3.bf16.msra.mxu1 %v1508_v26 }
 0x16a   : > { %1377 = vmatprep.subr.bf16.mxu0 %v1509_v27  ;;  %1399 = vmatprep.subr.bf16.mxu1 %v1510_v28 }
 0x16d   : > { %1378 = vmatpush3.bf16.msra.mxu0 %v1511_v29  ;;  %1400 = vmatpush3.bf16.msra.mxu1 %v1512_v30 }
 0x210   : > { %v673_v42 = vpop.f32.mrf.mxu0  ;;  %v716_v43 = vpop.f32.mrf.mxu1 }
 0x211   : > { %v1843_v44 = vadd.f32 %v673_v42, %v456_v38  ;;  %v1845_v45 = vadd.f32 %v716_v43, %v464_v39 }
 0x212   : > { %v675_v46 = vpop.f32.mrf.mxu0  ;;  %v718_v47 = vpop.f32.mrf.mxu1 }
 0x213   : > { %v733_v48 = vmul.f32 0.044715, %v1843_v44  ;;  %v735_v49 = vmul.f32 0.044715, %v1845_v45  ;;  %v676_v50 = vadd.f32 %v675_v46, %v460_v40  ;;  %v1849_v51 = vadd.f32 %v718_v47, %v468_v41 }
 0x214   : > { %v677_v52 = vpop.f32.mrf.mxu0  ;;  %v720_v53 = vpop.f32.mrf.mxu1  ;;  %v725_v46 = vmul.f32 0.5, %v1843_v44 }
 0x215   : > { %v741_v54 = vmul.f32 %v733_v48, %v1843_v44  ;;  %v743_v55 = vmul.f32 %v735_v49, %v1845_v45  ;;  %v734_v56 = vmul.f32 0.044715, %v676_v50  ;;  %v736_v57 = vmul.f32 0.044715, %v1849_v51 }
 0x216   : > { %v678_v58 = vadd.f32 %v677_v52, %v456_v38  ;;  %v1854_v59 = vadd.f32 %v720_v53, %v464_v39  ;;  %v679_v60 = vpop.f32.mrf.mxu0  ;;  %v722_v61 = vpop.f32.mrf.mxu1  ;;  %v726_v42 = vmul.f32 0.5, %v676_v50 }
 0x217   : > { %v749_v62 = vmul.f32 %v741_v54, %v1843_v44  ;;  %v751_v63 = vmul.f32 %v743_v55, %v1845_v45  ;;  %v742_v2 = vmul.f32 %v734_v56, %v676_v50  ;;  %v744_v3 = vmul.f32 %v736_v57, %v1849_v51 }
 0x218   : > { %v737_v4 = vmul.f32 0.044715, %v678_v58  ;;  %v739_v5 = vmul.f32 0.044715, %v1854_v59  ;;  %v680_v6 = vadd.f32 %v679_v60, %v460_v40  ;;  %v723_v7 = vadd.f32 %v722_v61, %v468_v41 }
 0x219   : > { %v757_v8 = vadd.f32 %v749_v62, %v1843_v44  ;;  %v759_v9 = vadd.f32 %v751_v63, %v1845_v45  ;;  %v750_v10 = vmul.f32 %v742_v2, %v676_v50  ;;  %v752_v11 = vmul.f32 %v744_v3, %v1849_v51 }
 0x21a   : > { %v745_v12 = vmul.f32 %v737_v4, %v678_v58  ;;  %v747_v13 = vmul.f32 %v739_v5, %v1854_v59  ;;  %v738_v14 = vmul.f32 0.044715, %v680_v6  ;;  %v740_v15 = vmul.f32 0.044715, %v723_v7 }
 0x21b   : > { %v765_v16 = vmul.f32 0.7978846, %v757_v8  ;;  %v767_v17 = vmul.f32 0.7978846, %v759_v9  ;;  %v758_v18 = vadd.f32 %v750_v10, %v676_v50  ;;  %v760_v24 = vadd.f32 %v752_v11, %v1849_v51 }
 0x21c   : > { %v753_v19 = vmul.f32 %v745_v12, %v678_v58  ;;  %v755_v20 = vmul.f32 %v747_v13, %v1854_v59  ;;  %v746_v21 = vmul.f32 %v738_v14, %v680_v6  ;;  %v748_v22 = vmul.f32 %v740_v15, %v723_v7 }
 0x21d   : > { %v766_v23 = vmul.f32 0.7978846, %v758_v18  ;;  %1517 = vtanh.f32 %v765_v16  ;;  %v768_v29 = vmul.f32 0.7978846, %v760_v24  ;;  %v729_v52 = vmul.f32 0.5, %v678_v58 }
 0x21e   : > { %v761_v25 = vadd.f32 %v753_v19, %v678_v58  ;;  %v763_v26 = vadd.f32 %v755_v20, %v1854_v59  ;;  %v754_v27 = vmul.f32 %v746_v21, %v680_v6  ;;  %1519 = vtanh.f32 %v767_v17  ;;  %v1353_v20 = vld [vmem:[%s1896_s6] ss:$0 sm:$0xff] }
 0x21f   : > { %v756_v28 = vmul.f32 %v748_v22, %v723_v7  ;;  %1521 = vtanh.f32 %v766_v23  ;;  %v730_v56 = vmul.f32 0.5, %v680_v6  ;;  %v731_v60 = vmul.f32 0.5, %v1854_v59 }
 0x220   : > { %v769_v30 = vmul.f32 0.7978846, %v761_v25  ;;  %v771_v31 = vmul.f32 0.7978846, %v763_v26  ;;  %v762_v32 = vadd.f32 %v754_v27, %v680_v6  ;;  %1523 = vtanh.f32 %v768_v29 }
 0x221   : > { %v764_v33 = vadd.f32 %v756_v28, %v723_v7  ;;  %v728_v62 = vmul.f32 0.5, %v1849_v51  ;;  %v732_v63 = vmul.f32 0.5, %v723_v7  ;;  %v727_v44 = vmul.f32 0.5, %v1845_v45 }
 0x222   : > { %1525 = vtanh.f32 %v769_v30  ;;  %v770_v34 = vmul.f32 0.7978846, %v762_v32 }
 0x223   : > { %1527 = vtanh.f32 %v771_v31  ;;  %v772_v35 = vmul.f32 0.7978846, %v764_v33 }
 0x224   : > { %1529 = vtanh.f32 %v770_v34 }
 0x225   : > { %1531 = vtanh.f32 %v772_v35 }
 0x22a   : > { %v1518_v36 = vpop.eup %1517 }
 0x22b   : > { %v1520_v37 = vpop.eup %1519  ;;  %v781_v53 = vadd.f32 1.0, %v1518_v36 }
 0x22c   : > { %v1522_v38 = vpop.eup %1521  ;;  %v783_v61 = vadd.f32 1.0, %v1520_v37 }
 0x22d   : > { %v1524_v39 = vpop.eup %1523  ;;  %v782_v43 = vadd.f32 1.0, %v1522_v38  ;;  %v789_v9 = vmul.f32 %v781_v53, %v725_v46 }
 0x22e   : > { %v784_v49 = vadd.f32 1.0, %v1524_v39  ;;  %v791_v11 = vmul.f32 %v783_v61, %v727_v44 }
 0x22f   : > { %v1526_v40 = vpop.eup %1525  ;;  %v790_v3 = vmul.f32 %v782_v43, %v726_v42 }
 0x230   : > { %v1528_v41 = vpop.eup %1527  ;;  %v785_v47 = vadd.f32 1.0, %v1526_v40  ;;  %v792_v8 = vmul.f32 %v784_v49, %v728_v62 }
 0x231   : > { %v1530_v48 = vpop.eup %1529  ;;  %v787_v54 = vadd.f32 1.0, %v1528_v41 }
 0x232   : > { %v1532_v55 = vpop.eup %1531  ;;  %v786_v57 = vadd.f32 1.0, %v1530_v48  ;;  %v793_v50 = vmul.f32 %v785_v47, %v729_v52 }
 0x233   : > { %v788_v2 = vadd.f32 1.0, %v1532_v55  ;;  %v795_v5 = vmul.f32 %v787_v54, %v731_v60 }
 0x234   : > { %v794_v4 = vmul.f32 %v786_v57, %v730_v56  ;;  %v799_v12 = vpack.c.bf16 %v793_v50, %v789_v9 }
 0x235   : > { %v796_v58 = vmul.f32 %v788_v2, %v732_v63  ;;  %v801_v59 = vpack.c.bf16 %v795_v5, %v791_v11 }
 0x236   : > { %v800_v10 = vpack.c.bf16 %v794_v4, %v790_v3 }
 0x237   : > { %v802_v6 = vpack.c.bf16 %v796_v58, %v792_v8 }
 0x238   : > { %1091 = vmatprep.mubr.bf16.mxu0 %v800_v10 }
 0x239   : > { %1132 = vmatprep.mubr.bf16.mxu1 %v802_v6  ;;  %1092 = vmatmul.mubr.bf16.vlgmr.msra.gmra.mxu0 %v799_v12 }
 0x23a   : > { %1133 = vmatmul.mubr.bf16.vlgmr.msra.gmra.mxu1 %v801_v59 }
 0x2f9   : > { %v1379_v51 = vpop.f32.mrf.mxu0 }
 0x2fa   : > { %v1401_v7 = vpop.f32.mrf.mxu1 }
 0x2fb   : > { %v1380_v13 = vpop.f32.mrf.mxu0 }
 0x2fc   : > { %v1381_v14 = vadd.f32 %v1380_v13, %v1379_v51  ;;  %v1402_v15 = vpop.f32.mrf.mxu1 }
 0x2fd   : > { %v1403_v45 = vadd.f32 %v1402_v15, %v1401_v7  ;;  %v1382_v16 = vpop.f32.mrf.mxu0 }
 0x2fe   : > { %v1404_v17 = vpop.f32.mrf.mxu1 }
 0x2ff   : > { %v1135_v18 = vadd.f32 %v1403_v45, %v1381_v14  ;;  %v1383_v19 = vpop.f32.mrf.mxu0 }
 0x300   : > { %v1384_v21 = vadd.f32 %v1383_v19, %v1382_v16  ;;  %v1405_v22 = vpop.f32.mrf.mxu1 }
 0x301   : > { %v1152_v23 = vadd.f32 %v1135_v18, %v1624_v0  ;;  %v1406_v24 = vadd.f32 %v1405_v22, %v1404_v17 }
 0x303   : > { %v1161_v25 = vadd.f32 %v1353_v20, %v1152_v23  ;;  %v1138_v26 = vadd.f32 %v1406_v24, %v1384_v21 }
 0x305   : > { %v1153_v27 = vadd.f32 %v1138_v26, %v1626_v1  ;;  %1163 = vst [vmem:[%s355_s22] sm:$0xff] %v1161_v25 }
 0x307   : > { %v1162_v28 = vadd.f32 %v1353_v20, %v1153_v27 }
 0x309   : > { %1164 = vst [vmem:[%s355_s22 + $0x8] sm:$0xff] %v1162_v28 }
 0x30a PF: > { %s17_s26 = sadd.s32 1, %s1555_s26   ;;  %s1898_s24 = smov %s1551_s25 }
 0x30b   : > { %p14_p5 = scmp.ge.s32.totalorder %s17_s26, 4   ;;  %s1899_s25 = smov %s1901_s27 }
 0x30d   :  { %16 = sbr.rel (!%p14_p5) target bundleno = 2 (0x2), region = 95 }

// kernel: _lambda_.17
= control target key start
LH: loop header
LB: loop body
LE: loop exit
PB: predicated region body
PF: predicated region fallthrough
CT: control target
= control target key end

     0   :  { %9 = vsyncpa [#allocation4], 0  ;;  %s1197_s0 = inlined_call_operand.vmem [shape: f32[32,128], index: 0, kind: input, shape index: {}]   ;;  %s1198_s1 = inlined_call_operand.vmem [shape: f32[1,128], index: 1, kind: input, shape index: {}]   ;;  %s1199_s2 = inlined_call_operand.vmem [shape: f32[1,128], index: 2, kind: input, shape index: {}]   ;;  %s1200_s3 = inlined_call_operand.vmem [shape: bf16[128,512], index: 3, kind: input, shape index: {}]   ;;  %s1201_s4 = inlined_call_operand.hbm [shape: f32[32,512], index: 4, kind: output, shape index: {}]  }
   0x1   :  { %11 = vsyncpa [#allocation4 + $0x1], 0  ;;  %s972_s15 = smov 0   ;;  %s974_s16 = smov 0  }
   0x2   :  { %s976_s17 = smov 0   ;;  %s978_s18 = smov 0  }
   0x3   :  { %s980_s19 = smov 0   ;;  %s982_s20 = smov 0  }
   0x4 LB: > { %s693_s21 = sadd.s32 4294967295, %s941_s20   ;;  %s694_s22 = sadd.s32 4294967294, %s941_s20   ;;  %s941_s20 = sphi %s982_s20, %s17_s20   ;;  %s937_s19 = sphi %s980_s19, %s1208_s19   ;;  %s933_s18 = sphi %s978_s18, %s1207_s18   ;;  %s929_s17 = sphi %s976_s17, %s1206_s17   ;;  %s925_s16 = sphi %s974_s16, %s1205_s16   ;;  %s921_s15 = sphi %s972_s15, %s1204_s15  }
   0x5   : > { %s29_s23 = sadd.s32 1, %s937_s19  ;;  %s132_s24 = sadd.s32 1, %s929_s17 }
   0x6   : > { %p31_p0 = scmp.ge.s32.totalorder %s29_s23, 2  ;;  %p142_p1 = scmp.ne.s32.totalorder %s929_s17, %s925_s16 }
   0x7   : > { %p143_p2 = scmp.eq.s32.totalorder %s693_s21, 1  ;;  %p148_p3 = scmp.ne.s32.totalorder %s925_s16, %s921_s15 }
   0x8   : > { %s1210_s23 = smov (%p31_p0, %s29_s23), 0  ;;  %p149_p5 = scmp.eq.s32.totalorder %s694_s22, 1 }
   0x9   : > { %p1012_p4 = por %p143_p2, %p142_p1  ;;  %s127_s26 = ssub.s32 %s937_s19, %s1210_s23 }
   0xa   : > { %p698_p6 = scmp.ge.s32.totalorder %s941_s20, 1  ;;  %p130_p7 = scmp.eq.s32.totalorder %s127_s26, 0 }
   0xb   : > { %p1019_p8 = por %p149_p5, %p148_p3  ;;  %p191_p9 = scmp.lt.s32.totalorder %s941_s20, 3 }
   0xc   : > { %s1025_s28 = scalar_select %p130_p7, %s929_s17, %s132_s24  }
   0xd   : > { %p192_p10 = pnand %p698_p6, %p191_p9 }
   0xe   : > { %s700_s29 = sshll.u32 (!%p192_p10), %s933_s18, 1  ;;  %s219_s12 = sand.u32 (!%p192_p10), 1, %s925_s16  }
   0xf   : > { %195 = sbr.rel (%p192_p10) target bundleno = 557 (0x22d), region = 36  ;;  %p223_p11 = scmp.lt.s32.totalorder (!%p192_p10), %s700_s29, 3 }
  0x10   : > { %s699_s13 = sshll.u32 (!%p192_p10), %s219_s12, 6  ;;  %s748_s22 = sshll.u32 (!%p192_p10), %s933_s18, 10 }
  0x11   : > { %s221_s14 = scalar_lea.vmem (!%p192_p10), [#allocation3], %s699_s13  ;;  %s1152_s18 = scalar_lea.sflag (!%p192_p10), [#allocation4], %s219_s12 }
  0x12   : > { %s605_s21 = sshll.u32 (!%p192_p10), %s221_s14, 4  ;;  %s944_s5 = smov (!%p192_p10), [#allocation3]   ;;  %s1145_s21 = int_to_ptr.vmem [resolvable:$true] %s605_s21 }
  0x13   : > { %s869_s6 = sshll.u32 (!%p192_p10), %s944_s5, 4  ;;  %s870_s6 = int_to_ptr.vmem [resolvable:$false] %s869_s6 }
  0x14   : > { %s1212_s29 = smov (!%p223_p11, %s700_s29), 3  ;;  %v812_v10 = vld [vmem:[%s1200_s3 + $0xe4] ss:$16 sps:$4 sm:$0xff]   ;;  %v814_v11 = vld [vmem:[%s1200_s3 + $0xec] ss:$16 sps:$4 sm:$0xff]   ;;  %v943_v42 = vmov 0   ;;  %p872_p1 = scmp.lt.s32.totalorder %s1145_s21, %s870_s6 }
  0x15   : > { %s701_s30 = sshll.u32 %s1212_s29, 3  ;;  %v816_v12 = vld [vmem:[%s1200_s3 + $0xe0] ss:$16 sps:$4 sm:$0xff]   ;;  %v817_v13 = vld [vmem:[%s1200_s3 + $0xe8] ss:$16 sps:$4 sm:$0xff]   ;;  %494 = vmatprep.subr.bf16.mxu0 %v812_v10  ;;  %537 = vmatprep.subr.bf16.mxu1 %v814_v11  ;;  %s1150_s29 = scalar_lea.hbm %s1201_s4, %s748_s22 }
  0x16   : > { %s226_s7 = scalar_lea.vmem %s1197_s0, %s701_s30  ;;  %495 = vmatpush1.bf16.msra.mxu0 %v816_v12  ;;  %538 = vmatpush1.bf16.msra.mxu1 %v817_v13  ;;  %v818_v14 = vld [vmem:[%s1200_s3 + $0xc4] ss:$16 sps:$4 sm:$0xff]   ;;  %v820_v15 = vld [vmem:[%s1200_s3 + $0xcc] ss:$16 sps:$4 sm:$0xff]   ;;  %v822_v16 = vld [vmem:[%s1200_s3 + $0xc0] ss:$16 sps:$4 sm:$0xff]  }
  0x17   : > { %v241_v0 = vld [vmem:[%s226_s7] sm:$0xff]  ;;  %v242_v1 = vld [vmem:[%s226_s7 + $0x8] sm:$0xff]  ;;  %496 = vmatprep.subr.bf16.mxu0 %v818_v14  ;;  %539 = vmatprep.subr.bf16.mxu1 %v820_v15  ;;  %s865_s30 = scalar_lea.vmem %s1145_s21, 1024  ;;  %s871_s7 = scalar_lea.vmem %s870_s6, 2048 }
  0x18   : > { %245 = vadd.xlane.f32.xlu0 %v241_v0  ;;  %v823_v17 = vld [vmem:[%s1200_s3 + $0xc8] ss:$16 sps:$4 sm:$0xff]   ;;  %v824_v18 = vld [vmem:[%s1200_s3 + $0xa4] ss:$16 sps:$4 sm:$0xff]   ;;  %v826_v19 = vld [vmem:[%s1200_s3 + $0xac] ss:$16 sps:$4 sm:$0xff]   ;;  %526 = vmatprep.mubr.bf16.mxu0 %v943_v42  ;;  %p866_p12 = scmp.ne.s32.totalorder %s1145_s21, %s865_s30  ;;  %p873_p2 = scmp.lt.s32.totalorder %s871_s7, %s865_s30 }
  0x19   : > { %v828_v20 = vld [vmem:[%s1200_s3 + $0xa0] ss:$16 sps:$4 sm:$0xff]   ;;  %v829_v21 = vld [vmem:[%s1200_s3 + $0xa8] ss:$16 sps:$4 sm:$0xff]   ;;  %v830_v22 = vld [vmem:[%s1200_s3 + $0x84] ss:$16 sps:$4 sm:$0xff]   ;;  %569 = vmatprep.mubr.bf16.mxu1 %v943_v42 }
  0x1a   : > { %497 = vmatpush1.bf16.msra.mxu0 %v822_v16  ;;  %540 = vmatpush1.bf16.msra.mxu1 %v823_v17  ;;  %v832_v23 = vld [vmem:[%s1200_s3 + $0x8c] ss:$16 sps:$4 sm:$0xff]   ;;  %v834_v24 = vld [vmem:[%s1200_s3 + $0x80] ss:$16 sps:$4 sm:$0xff]   ;;  %v835_v25 = vld [vmem:[%s1200_s3 + $0x88] ss:$16 sps:$4 sm:$0xff]   ;;  %p867_p13 = pnand %p866_p12, %p1012_p4  ;;  %p874_p3 = por %p873_p2, %p872_p1 }
  0x1b   : > { %498 = vmatprep.subr.bf16.mxu0 %v824_v18  ;;  %541 = vmatprep.subr.bf16.mxu1 %v826_v19  ;;  %v836_v26 = vld [vmem:[%s1200_s3 + $0x64] ss:$16 sps:$4 sm:$0xff]   ;;  %v838_v27 = vld [vmem:[%s1200_s3 + $0x6c] ss:$16 sps:$4 sm:$0xff]   ;;  %v840_v28 = vld [vmem:[%s1200_s3 + $0x60] ss:$16 sps:$4 sm:$0xff]  }
  0x1c   : > { %247 = vadd.xlane.f32.xlu0 %v242_v1  ;;  %v841_v29 = vld [vmem:[%s1200_s3 + $0x68] ss:$16 sps:$4 sm:$0xff]   ;;  %v842_v30 = vld [vmem:[%s1200_s3 + $0x44] ss:$16 sps:$4 sm:$0xff]   ;;  %v844_v31 = vld [vmem:[%s1200_s3 + $0x4c] ss:$16 sps:$4 sm:$0xff]   ;;  %p868_p0 = pneg %p867_p13 }
  0x1d   : > { %v846_v32 = vld [vmem:[%s1200_s3 + $0x40] ss:$16 sps:$4 sm:$0xff]   ;;  %v847_v33 = vld [vmem:[%s1200_s3 + $0x48] ss:$16 sps:$4 sm:$0xff]   ;;  %v848_v34 = vld [vmem:[%s1200_s3 + $0x24] ss:$16 sps:$4 sm:$0xff]  }
  0x1e   : > { %499 = vmatpush1.bf16.msra.mxu0 %v828_v20  ;;  %542 = vmatpush1.bf16.msra.mxu1 %v829_v21  ;;  %v850_v35 = vld [vmem:[%s1200_s3 + $0x2c] ss:$16 sps:$4 sm:$0xff]   ;;  %v852_v36 = vld [vmem:[%s1200_s3 + $0x20] ss:$16 sps:$4 sm:$0xff]   ;;  %v853_v37 = vld [vmem:[%s1200_s3 + $0x28] ss:$16 sps:$4 sm:$0xff]   ;;  %p875_p5 = pnand %p874_p3, %p868_p0 }
  0x1f   : > { %500 = vmatprep.subr.bf16.mxu0 %v830_v22  ;;  %543 = vmatprep.subr.bf16.mxu1 %v832_v23  ;;  %v854_v38 = vld [vmem:[%s1200_s3 + $0x4] ss:$16 sps:$4 sm:$0xff]   ;;  %v856_v39 = vld [vmem:[%s1200_s3 + $0xc] ss:$16 sps:$4 sm:$0xff]   ;;  %v858_v40 = vld [vmem:[%s1200_s3] ss:$16 sps:$4 sm:$0xff]  }
  0x20   : > { %v859_v41 = vld [vmem:[%s1200_s3 + $0x8] ss:$16 sps:$4 sm:$0xff]   ;;  %v702_v51 = vld [vmem:[%s1198_s1] ss:$0 sm:$0xff] }
  0x21   : > { %v703_v55 = vld [vmem:[%s1199_s2] ss:$0 sm:$0xff] }
  0x22   : > { %501 = vmatpush1.bf16.msra.mxu0 %v834_v24  ;;  %544 = vmatpush1.bf16.msra.mxu1 %v835_v25 }
  0x23   : > { %502 = vmatprep.subr.bf16.mxu0 %v836_v26  ;;  %545 = vmatprep.subr.bf16.mxu1 %v838_v27 }
  0x26   : > { %503 = vmatpush1.bf16.msra.mxu0 %v840_v28  ;;  %546 = vmatpush1.bf16.msra.mxu1 %v841_v29 }
  0x27   : > { %504 = vmatprep.subr.bf16.mxu0 %v842_v30  ;;  %547 = vmatprep.subr.bf16.mxu1 %v844_v31 }
  0x2a   : > { %505 = vmatpush1.bf16.msra.mxu0 %v846_v32  ;;  %548 = vmatpush1.bf16.msra.mxu1 %v847_v33 }
  0x2b   : > { %506 = vmatprep.subr.bf16.mxu0 %v848_v34  ;;  %549 = vmatprep.subr.bf16.mxu1 %v850_v35 }
  0x2e   : > { %507 = vmatpush1.bf16.msra.mxu0 %v852_v36  ;;  %550 = vmatpush1.bf16.msra.mxu1 %v853_v37 }
  0x2f   : > { %508 = vmatprep.subr.bf16.mxu0 %v854_v38  ;;  %551 = vmatprep.subr.bf16.mxu1 %v856_v39 }
  0x32   : > { %509 = vmatpush1.bf16.msra.mxu0 %v858_v40  ;;  %552 = vmatpush1.bf16.msra.mxu1 %v859_v41 }
  0xa1   : > { %v246_v2 = vpop.xlane.xlu0 %245 }
  0xa2   : > { %v250_v3 = vmul.f32 0.0078125, %v246_v2 }
  0xa4   : > { %v1031_v4 = vsub.f32 %v241_v0, %v250_v3 }
  0xa5   : > { %v248_v5 = vpop.xlane.xlu0 %247 }
  0xa6   : > { %v251_v6 = vmul.f32 0.0078125, %v248_v5  ;;  %v254_v7 = vmul.f32 %v1031_v4, %v1031_v4 }
  0xa8   : > { %v1035_v8 = vsub.f32 %v242_v1, %v251_v6  ;;  %256 = vadd.xlane.f32.xlu1 %v254_v7 }
  0xaa   : > { %v255_v9 = vmul.f32 %v1035_v8, %v1035_v8 }
  0xac   : > { %258 = vadd.xlane.f32.xlu1 %v255_v9 }
 0x131   : > { %v257_v43 = vpop.xlane.xlu1 %256 }
 0x132   : > { %v260_v44 = vmul.f32 0.0078125, %v257_v43 }
 0x134   : > { %v262_v45 = vadd.f32 1e-05, %v260_v44 }
 0x135   : > { %v259_v46 = vpop.xlane.xlu1 %258 }
 0x136   : > { %861 = vrsqrt.f32 %v262_v45  ;;  %v261_v47 = vmul.f32 0.0078125, %v259_v46 }
 0x138   : > { %v263_v48 = vadd.f32 1e-05, %v261_v47 }
 0x13a   : > { %863 = vrsqrt.f32 %v263_v48 }
 0x143   : > { %v862_v49 = vpop.eup %861 }
 0x144   : > { %v266_v50 = vmul.f32 %v862_v49, %v1031_v4 }
 0x146   : > { %v274_v53 = vmul.f32 %v702_v51, %v266_v50 }
 0x147   : > { %v864_v52 = vpop.eup %863 }
 0x148   : > { %v267_v54 = vmul.f32 %v864_v52, %v1035_v8  ;;  %v282_v57 = vadd.f32 %v703_v55, %v274_v53 }
 0x14a   : > { %v275_v56 = vmul.f32 %v702_v51, %v267_v54 }
 0x14c   : > { %v283_v58 = vadd.f32 %v703_v55, %v275_v56 }
 0x14e   : > { %v752_v59 = vpack.c.bf16 %v283_v58, %v282_v57 }
 0x150   : > { %753 = vst [vmem:[#allocation2] sm:$0xff] %v752_v59  }
 0x157   : > { %v860_v60 = vld [vmem:[#allocation2] sm:$0xff]  }
 0x158   : > { %527 = vmatmul.mubr.bf16.vlgmr.msra.gmra.mxu0 %v860_v60  ;;  %570 = vmatmul.mubr.bf16.vlgmr.msra.gmra.mxu1 %v860_v60 }
 0x218   : > { %v528_v61 = vpop.f32.mrf.mxu0  ;;  %v571_v62 = vpop.f32.mrf.mxu1 }
 0x219   : > { %580 = vst [vmem:[%s221_s14] sm:$0xff] %v528_v61  ;;  %582 = vst [vmem:[%s221_s14 + $0x10] sm:$0xff] %v571_v62 }
 0x21a   : > { %v530_v63 = vpop.f32.mrf.mxu0  ;;  %v573_v0 = vpop.f32.mrf.mxu1 }
 0x21b   : > { %581 = vst [vmem:[%s221_s14 + $0x8] sm:$0xff] %v530_v63  ;;  %583 = vst [vmem:[%s221_s14 + $0x18] sm:$0xff] %v573_v0 }
 0x21c   : > { %v532_v1 = vpop.f32.mrf.mxu0  ;;  %v575_v2 = vpop.f32.mrf.mxu1 }
 0x21d   : > { %584 = vst [vmem:[%s221_s14 + $0x20] sm:$0xff] %v532_v1  ;;  %586 = vst [vmem:[%s221_s14 + $0x30] sm:$0xff] %v575_v2 }
 0x21e   : > { %v534_v3 = vpop.f32.mrf.mxu0  ;;  %v577_v4 = vpop.f32.mrf.mxu1 }
 0x21f   : > { %585 = vst [vmem:[%s221_s14 + $0x28] sm:$0xff] %v534_v3  ;;  %587 = vst [vmem:[%s221_s14 + $0x38] sm:$0xff] %v577_v4 }
 0x220   : > { %878 = shalt.err (!%p875_p5)
}
 0x221   : > { %s879_s8 = scalar_lea.hbm %s1150_s29, 1024  ;;  %s883_s11 = scalar_lea.hbm %s1201_s4, 2048 }
 0x222   : > { %p880_p6 = scmp.ne.s32.totalorder %s1150_s29, %s879_s8  ;;  %p884_p10 = scmp.lt.s32.totalorder %s1150_s29, %s1201_s4 }
 0x223   : > { %p885_p11 = scmp.lt.s32.totalorder %s883_s11, %s879_s8 }
 0x224   : > { %p881_p7 = pnand %p880_p6, %p1012_p4 }
 0x225   : > { %p886_p12 = por %p885_p11, %p884_p10 }
 0x226   : > { %p882_p9 = pneg %p881_p7 }
 0x228   : > { %p887_p13 = pnand %p886_p12, %p882_p9 }
 0x22a   : > { %890 = shalt.err (!%p887_p13)
}
 0x22b   : > { %s945_s14 = smov 512   ;;  %s946_s22 = smov 32  }
 0x22c   : > { %754 = dma.vmem_to_hbm [thread:$0]  (%p1012_p4), %s1145_s21, 1024, %s1150_s29, %s1152_s18, %s945_s14, %s945_s14, %s946_s22  }
 0x22d PF: > { %p760_p0 = scmp.ge.s32.totalorder %s941_s20, 2  ;;  %s620_s24 = sand.u32 1, %s921_s15  }
 0x22e   : > { %s621_s26 = scalar_lea.sflag [#allocation4], %s620_s24 }
 0x22f   : > { %p757_p1 = pnand %p760_p0, %p1019_p8 }
 0x231   : > { %p758_p2 = pneg %p757_p1 }
 0x233   : > { %916 = dma.done.wait (%p758_p2), %s621_s26, 1024  }
 0x234   : > { %918 = vsyncadd (%p758_p2), %s621_s26, 4294966272  ;;  %s17_s20 = sadd.s32 1, %s941_s20   ;;  %s1204_s15 = smov %s925_s16 }
 0x235   : > { %p14_p3 = scmp.ge.s32.totalorder %s17_s20, 4   ;;  %s1205_s16 = smov %s929_s17 }
 0x236   : > { %s1206_s17 = smov %s1025_s28  ;;  %s1207_s18 = smov %s937_s19 }
 0x237   : > { %s1208_s19 = smov %s1210_s23  ;;  %16 = sbr.rel (!%p14_p3) target bundleno = 4 (0x4), region = 78 }
 0x23c   :  { %626 = vsyncpa [#allocation4], 1 }
 0x23d   :  { %628 = vsyncpa [#allocation4 + $0x1], 1 }

// kernel: _lambda_.10
= control target key start
LH: loop header
LB: loop body
LE: loop exit
PB: predicated region body
PF: predicated region fallthrough
CT: control target
= control target key end

     0   :  { %s2434_s12 = smov 0   ;;  %s2436_s13 = smov 0   ;;  %s2872_s0 = inlined_call_operand.vmem [shape: f32[2,16,384], index: 0, kind: input, shape index: {}, may-alias: {0,1,2}]   ;;  %s2873_s1 = inlined_call_operand.vmem [shape: f32[2,16,384], index: 1, kind: input, shape index: {}, may-alias: {0,1,2}]   ;;  %s2874_s2 = inlined_call_operand.vmem [shape: f32[2,16,384], index: 2, kind: input, shape index: {}, may-alias: {0,1,2}]   ;;  %s2875_s3 = inlined_call_operand.vmem [shape: f32[2,16,128], index: 3, kind: output, shape index: {}]  }
   0x1   :  { %s2438_s14 = smov 0   ;;  %s2440_s15 = smov 0  }
   0x2   :  { %s2442_s16 = smov 0  }
   0x3 LB: > { %s32_s17 = sadd.s32 1, %s2401_s15  ;;  %p48_p1 = scmp.ne.s32.totalorder %s2393_s13, %s2389_s12  ;;  %s2405_s16 = sphi %s2442_s16, %s13_s16   ;;  %s2401_s15 = sphi %s2440_s15, %s2880_s15   ;;  %s2397_s14 = sphi %s2438_s14, %s2879_s14   ;;  %s2393_s13 = sphi %s2436_s13, %s2878_s13   ;;  %s2389_s12 = sphi %s2434_s12, %s2877_s12  }
   0x4   : > { %p34_p0 = scmp.ge.s32.totalorder %s32_s17, 2  ;;  %p49_p2 = scmp.eq.s32.totalorder %s2405_s16, 0 }
   0x5   : > { %s41_s20 = sadd.s32 1, %s2393_s13  ;;  %p2153_p5 = scmp.ge.s32.totalorder %s2405_s16, 2 }
   0x6   : > { %s2882_s17 = smov (%p34_p0, %s32_s17), 0  ;;  %p2465_p3 = por %p49_p2, %p48_p1 }
   0x7   : > { %s36_s19 = ssub.s32 %s2401_s15, %s2882_s17  ;;  %166 = sbr.rel (%p2153_p5) target bundleno = 30 (0x1e), region = 16 }
   0x8   : > { %p39_p4 = scmp.eq.s32.totalorder %s36_s19, 0 }
   0xa   : > { %s2473_s21 = scalar_select %p39_p4, %s2393_s13, %s41_s20  }
   0xc   : > { %169 = sbr.rel (!%p2465_p3) target bundleno = 18 (0x12), region = 20  ;;  %s171_s22 = sand.u32 (%p2465_p3), 1, %s2393_s13  }
   0xd   : > { %s2265_s23 = smul.u32 (%p2465_p3), 48, %s2401_s15  ;;  %s2154_s24 = sshll.u32 (%p2465_p3), %s171_s22, 4 }
   0xe   : > { %s173_s28 = scalar_lea.vmem (%p2465_p3), [#allocation6], %s2154_s24 }
   0xf   : > { %s179_s27 = scalar_lea.vmem (%p2465_p3), %s2872_s0, %s2265_s23 }
  0x10   : > { %v210_v0 = vld [vmem:[%s179_s27] sm:$0xff] (%p2465_p3)  ;;  %v212_v1 = vld [vmem:[%s179_s27 + $0x18] sm:$0xff] (%p2465_p3) }
  0x11   : > { %211 = vst [vmem:[%s173_s28] sm:$0xff] %v210_v0  ;;  %213 = vst [vmem:[%s173_s28 + $0x8] sm:$0xff] %v212_v1 }
  0x12 PF: > { %219 = sbr.rel (!%p2465_p3) target bundleno = 24 (0x18), region = 58  ;;  %s221_s29 = sand.u32 (%p2465_p3), 1, %s2393_s13  }
  0x13   : > { %s2157_s30 = smul.u32 (%p2465_p3), 48, %s2401_s15  ;;  %s2156_s4 = sshll.u32 (%p2465_p3), %s221_s29, 4 }
  0x14   : > { %s223_s8 = scalar_lea.vmem (%p2465_p3), [#allocation7], %s2156_s4 }
  0x15   : > { %s2056_s7 = scalar_lea.vmem (%p2465_p3), %s2873_s1, %s2157_s30 }
  0x16   : > { %v2158_v2 = vld [vmem:[%s2056_s7 + $0x8] sm:$0xff] (%p2465_p3)  ;;  %v2159_v3 = vld [vmem:[%s2056_s7 + $0x20] sm:$0xff] (%p2465_p3) }
  0x17   : > { %264 = vst [vmem:[%s223_s8] sm:$0xff] %v2158_v2  ;;  %266 = vst [vmem:[%s223_s8 + $0x8] sm:$0xff] %v2159_v3 }
  0x18 PF: > { %272 = sbr.rel (!%p2465_p3) target bundleno = 30 (0x1e), region = 96  ;;  %s274_s9 = sand.u32 (%p2465_p3), 1, %s2393_s13  }
  0x19   : > { %s2161_s10 = smul.u32 (%p2465_p3), 48, %s2401_s15  ;;  %s2160_s11 = sshll.u32 (%p2465_p3), %s274_s9, 4 }
  0x1a   : > { %s276_s23 = scalar_lea.vmem (%p2465_p3), [#allocation8], %s2160_s11 }
  0x1b   : > { %s2064_s22 = scalar_lea.vmem (%p2465_p3), %s2874_s2, %s2161_s10 }
  0x1c   : > { %v2162_v4 = vld [vmem:[%s2064_s22 + $0x10] sm:$0xff] (%p2465_p3)  ;;  %v2163_v5 = vld [vmem:[%s2064_s22 + $0x28] sm:$0xff] (%p2465_p3) }
  0x1d   : > { %317 = vst [vmem:[%s276_s23] sm:$0xff] %v2162_v4  ;;  %319 = vst [vmem:[%s276_s23 + $0x8] sm:$0xff] %v2163_v5 }
  0x1e PF: > { %p2164_p6 = scmp.ge.s32.totalorder %s2405_s16, 1  ;;  %p324_p7 = scmp.lt.s32.totalorder %s2405_s16, 3 }
  0x20   : > { %p325_p8 = pnand %p2164_p6, %p324_p7 }
  0x21   : > { %s331_s18 = sand.u32 (!%p325_p8), 1, %s2389_s12   ;;  %s2411_s26 = smov (!%p325_p8), 96  }
  0x22   : > { %328 = sbr.rel (%p325_p8) target bundleno = 1446 (0x5a6), region = 134  ;;  %s2501_s24 = sshll.u32 (!%p325_p8), %s331_s18, 4 }
  0x23   : > { %s333_s12 = scalar_lea.vmem (!%p325_p8), [#allocation6], %s2501_s24  ;;  %s340_s25 = scalar_lea.vmem (!%p325_p8), [#allocation7], %s2501_s24 }
  0x24   : > { %s2412_s27 = smov (!%p325_p8), 32   ;;  %s347_s28 = scalar_lea.vmem (!%p325_p8), [#allocation8], %s2501_s24 }
  0x25   : > { %s2413_s29 = smov (!%p325_p8), 64   ;;  %p388_p9 = scmp.lt.s32.totalorder (!%p325_p8), %s2397_s14, 1 }
  0x27   : > { %vm419_vm0 = vcmask 261120   ;;  %v2407_v6 = vmov 0.0   ;;  %vm2408_vm1 = vmmov 0   ;;  %v428_v7 = vld [vmem:[%s333_s12] sm:$0xff]  ;;  %v429_v8 = vld [vmem:[%s333_s12 + $0x8] sm:$0xff]  ;;  %vm440_vm2 = vcmask 257024  }
  0x28   : > { %2217 = vmatprep.subr.bf16.mxu0 %v2407_v6  ;;  %420 = vst.msk [vmem:[#allocation5] sm:$0xff] %vm419_vm0, %v2407_v6  ;;  %421 = vst.msk [vmem:[#allocation5 + $0x8] sm:$0xff] %vm419_vm0, %v2407_v6  ;;  %2219 = vmatprep.mubr.msk.bf16.mxu0 %vm2408_vm1, %v2407_v6  ;;  %v474_v9 = vld [vmem:[%s340_s25] sm:$0xff]  ;;  %v430_v10 = vmul.f32 0.17677669, %v428_v7  ;;  %v475_v12 = vld [vmem:[%s340_s25 + $0x8] sm:$0xff]  ;;  %v479_v19 = vlaneseq }
  0x29   : > { %422 = vst.msk [vmem:[#allocation5 + $0x10] sm:$0xff] %vm419_vm0, %v2407_v6  ;;  %423 = vst.msk [vmem:[#allocation5 + $0x18] sm:$0xff] %vm419_vm0, %v2407_v6  ;;  %2223 = vmatprep.subr.bf16.mxu1 %v2407_v6  ;;  %2225 = vmatprep.mubr.msk.bf16.mxu1 %vm2408_vm1, %v2407_v6  ;;  %v431_v11 = vmul.f32 0.17677669, %v429_v8  ;;  %v2526_v13 = vpack.c.bf16 %v475_v12, %v474_v9  ;;  %vm402_vm3 = vcmask 7168   ;;  %v2409_v18 = vmov -inf  }
  0x2a   : > { %424 = vst.msk [vmem:[#allocation5 + $0x20] sm:$0xff] %vm419_vm0, %v2407_v6  ;;  %425 = vst.msk [vmem:[#allocation5 + $0x28] sm:$0xff] %vm419_vm0, %v2407_v6  ;;  %v2528_v14 = vpack.c.bf16 %v430_v10, %v430_v10  ;;  %v2566_v20 = vshrl.u32 %v479_v19, 7  ;;  %v2568_v21 = vand.u32 127, %v479_v19  ;;  %vm553_vm5 = vcmask 130048   ;;  %v476_v41 = vld [vmem:[%s347_s28] sm:$0xff] }
  0x2b   : > { %426 = vst.msk [vmem:[#allocation5 + $0x30] sm:$0xff] %vm419_vm0, %v2407_v6  ;;  %427 = vst.msk [vmem:[#allocation5 + $0x38] sm:$0xff] %vm419_vm0, %v2407_v6  ;;  %v2530_v15 = vpack.c.bf16 %v431_v11, %v431_v11  ;;  %v506_v16 = vsel %vm419_vm0, %v2526_v13, 0  ;;  %v2410_v31 = vmov 0   ;;  %v477_v42 = vld [vmem:[%s347_s28 + $0x8] sm:$0xff]  ;;  %s2884_s14 = smov (!%p388_p9, %s2397_s14), 1 }
  0x2c   : > { %441 = vst.msk [vmem:[#allocation2] sm:$0xf] %vm440_vm2, %v2528_v14  ;;  %2218 = vmatpush3.bf16.xpose.msra.mxu0 %v506_v16  ;;  %vm490_vm4 = vcmp.ge.s32.totalorder %v2566_v20, %v2568_v21  ;;  %v2573_v22 = vadd.s32 8, %v2566_v20  ;;  %2313 = vset.pattern.permute.xlu1 %v2410_v31  ;;  %v2615_v43 = vpack.c.bf16 %v477_v42, %v476_v41  ;;  %s2198_s30 = sshll.u32 %s2884_s14, 4  ;;  %vm1948_vm7 = vcmask 523520  }
  0x2d   : > { %442 = vst.msk [vmem:[#allocation2 + $0x4] sm:$0xf] %vm440_vm2, %v2530_v15  ;;  %2235 = vmatprep.subr.bf16.mxu0 %v2407_v6  ;;  %2314 = vset.pattern.permute.xlu0 %v2410_v31  ;;  %s2833_s6 = scalar_lea.vmem %s2875_s3, %s2198_s30  ;;  %vm1979_vm8 = vcmask 785920   ;;  %vm2010_vm9 = vcmask 1048320  }
  0x2e   : > { %403 = vst.msk [vmem:[#allocation3] sm:$0xff] %vm402_vm3, %v2409_v18  ;;  %404 = vst.msk [vmem:[#allocation3 + $0x8] sm:$0xff] %vm402_vm3, %v2409_v18  ;;  %vm491_vm6 = vcmp.ge.s32.totalorder %v2573_v22, %v2568_v21  ;;  %2224 = vmatpush3.bf16.msra.mxu1 %v2615_v43 }
  0x2f   : > { %405 = vst.msk [vmem:[#allocation3 + $0x10] sm:$0xff] %vm402_vm3, %v2409_v18  ;;  %406 = vst.msk [vmem:[#allocation3 + $0x18] sm:$0xff] %vm402_vm3, %v2409_v18  ;;  %2229 = vmatprep.subr.bf16.mxu1 %v2407_v6 }
  0x30   : > { %407 = vst.msk [vmem:[#allocation3 + $0x20] sm:$0xff] %vm402_vm3, %v2409_v18  ;;  %408 = vst.msk [vmem:[#allocation3 + $0x28] sm:$0xff] %vm402_vm3, %v2409_v18 }
  0x31   : > { %409 = vst.msk [vmem:[#allocation3 + $0x30] sm:$0xff] %vm402_vm3, %v2409_v18  ;;  %410 = vst.msk [vmem:[#allocation3 + $0x38] sm:$0xff] %vm402_vm3, %v2409_v18 }
  0x32   : > { %411 = vst.msk [vmem:[#allocation4] sm:$0xff] %vm402_vm3, %v2407_v6  ;;  %412 = vst.msk [vmem:[#allocation4 + $0x8] sm:$0xff] %vm402_vm3, %v2407_v6 }
  0x33   : > { %413 = vst.msk [vmem:[#allocation4 + $0x10] sm:$0xff] %vm402_vm3, %v2407_v6  ;;  %414 = vst.msk [vmem:[#allocation4 + $0x18] sm:$0xff] %vm402_vm3, %v2407_v6 }
  0x34   : > { %v2315_v17 = vld [vmem:[#allocation2] sm:$0xff]   ;;  %415 = vst.msk [vmem:[#allocation4 + $0x20] sm:$0xff] %vm402_vm3, %v2407_v6  ;;  %416 = vst.msk [vmem:[#allocation4 + $0x28] sm:$0xff] %vm402_vm3, %v2407_v6 }
  0x35   : > { %2220 = vmatmul.mubr.msk.bf16.vlgmr.msra.gmra.mxu0 %vm419_vm0, %v2315_v17  ;;  %417 = vst.msk [vmem:[#allocation4 + $0x30] sm:$0xff] %vm402_vm3, %v2407_v6  ;;  %418 = vst.msk [vmem:[#allocation4 + $0x38] sm:$0xff] %vm402_vm3, %v2407_v6  ;;  %v2589_v32 = vld [vmem:[#allocation3] sm:$0xff]  ;;  %v2594_v35 = vld [vmem:[#allocation3 + $0x8] sm:$0xff] }
  0x36   : > { %2237 = vmatprep.mubr.msk.bf16.mxu0 %vm2408_vm1, %v2407_v6  ;;  %v2701_v41 = vld [vmem:[#allocation3 + $0x10] sm:$0xff] }
  0xf5   : > { %v542_v23 = vpop.f32.mrf.mxu0 }
  0xf6   : > { %v549_v24 = vsel %vm490_vm4, %v542_v23, -1e+30 }
  0xf7   : > { %v2221_v25 = vpop.f32.mrf.mxu0  ;;  %v554_v26 = vsel %vm553_vm5, %v549_v24, -inf }
  0xf8   : > { %555 = vmax.xlane.f32.xlu0 %v554_v26 }
  0xf9   : > { %v545_v27 = vpop.f32.mrf.mxu0 }
  0xfa   : > { %v550_v28 = vsel %vm491_vm6, %v545_v27, -1e+30 }
  0xfb   : > { %v2222_v29 = vpop.f32.mrf.mxu0  ;;  %v557_v30 = vsel %vm553_vm5, %v550_v28, -inf }
  0xfc   : > { %558 = vmax.xlane.f32.xlu0 %v557_v30 }
 0x112   : > { %443 = vrot.lane.b32.xlu0 %v2528_v14, %s2411_s26 }
 0x116   : > { %463 = vrot.lane.b32.xlu0 %v2530_v15, %s2412_s27 }
 0x181   : > { %v556_v33 = vpop.xlane.xlu0 %555 }
 0x182   : > { %v2592_v34 = vmax.f32 %v2589_v32, %v556_v33 }
 0x184   : > { %v562_v36 = vsub.f32 %v2589_v32, %v2592_v34  ;;  %662 = vst.msk [vmem:[#allocation3] sm:$0xff] %vm402_vm3, %v2592_v34  ;;  %570 = vperm.xlu1 %2313, %v2592_v34  }
 0x185   : > { %v559_v37 = vpop.xlane.xlu0 %558 }
 0x186   : > { %v2602_v38 = vmax.f32 %v2594_v35, %v559_v37 }
 0x188   : > { %v563_v39 = vsub.f32 %v2594_v35, %v2602_v38  ;;  %663 = vst.msk [vmem:[#allocation3 + $0x8] sm:$0xff] %vm402_vm3, %v2602_v38  ;;  %575 = vperm.xlu1 %2313, %v2602_v38  }
 0x189   : > { %v444_v40 = vpop.permute.xlu0 %443 }
 0x18a   : > { %450 = vst.msk [vmem:[#allocation2 + $0x8] sm:$0xf] %vm440_vm2, %v444_v40 }
 0x18c   : > { %445 = vrot.lane.b32.xlu1 %v2530_v15, %s2411_s26 }
 0x18d   : > { %v464_v44 = vpop.permute.xlu0 %463 }
 0x18e   : > { %469 = vst.msk [vmem:[#allocation2 + $0x1c] sm:$0xf] %vm440_vm2, %v464_v44  ;;  %v2706_v44 = vld [vmem:[#allocation3 + $0x18] sm:$0xff] }
 0x190   : > { %673 = vrot.lane.b32.xlu1 %v2526_v13, %s2411_s26 }
 0x194   : > { %452 = vrot.lane.b32.xlu1 %v2528_v14, %s2413_s29 }
 0x198   : > { %454 = vrot.lane.b32.xlu1 %v2530_v15, %s2413_s29 }
 0x19c   : > { %850 = vrot.lane.b32.xlu1 %v2526_v13, %s2413_s29 }
 0x1a0   : > { %461 = vrot.lane.b32.xlu1 %v2528_v14, %s2412_s27 }
 0x1a4   : > { %1026 = vrot.lane.b32.xlu1 %v2526_v13, %s2412_s27 }
 0x1ff   : > { %v571_v45 = vpop.permute.xlu1 %570 }
 0x200   : > { %v578_v46 = vsub.f32 %v549_v24, %v571_v45 }
 0x202   : > { %v580_v47 = vmul.f32 1.442695, %v578_v46  ;;  %v2716_v46 = vld [vmem:[#allocation3 + $0x20] sm:$0xff] }
 0x203   : > { %v576_v48 = vpop.permute.xlu1 %575 }
 0x204   : > { %v579_v49 = vsub.f32 %v550_v28, %v576_v48  ;;  %2319 = vpow2.f32 %v580_v47 }
 0x206   : > { %v582_v50 = vmul.f32 1.442695, %v579_v49 }
 0x207   : > { %v446_v51 = vpop.permute.xlu1 %445 }
 0x208   : > { %2321 = vpow2.f32 %v582_v50  ;;  %451 = vst.msk [vmem:[#allocation2 + $0xc] sm:$0xf] %vm440_vm2, %v446_v51  ;;  %v2726_v50 = vld [vmem:[#allocation3 + $0x28] sm:$0xff] }
 0x20b   : > { %v674_v52 = vpop.permute.xlu1 %673 }
 0x20c   : > { %v679_v59 = vsel %vm419_vm0, %v674_v52, 0 }
 0x20f   : > { %v453_v53 = vpop.permute.xlu1 %452  ;;  %v2316_v62 = vld [vmem:[#allocation2 + $0x8] sm:$0xff]  }
 0x210   : > { %459 = vst.msk [vmem:[#allocation2 + $0x10] sm:$0xf] %vm440_vm2, %v453_v53 }
 0x211   : > { %v2632_v55 = vpop.eup %2319 }
 0x213   : > { %v455_v54 = vpop.permute.xlu1 %454 }
 0x214   : > { %460 = vst.msk [vmem:[#allocation2 + $0x14] sm:$0xf] %vm440_vm2, %v455_v54  ;;  %v2736_v54 = vld [vmem:[#allocation3 + $0x30] sm:$0xff] }
 0x215   : > { %v2635_v56 = vpop.eup %2321 }
 0x216   : > { %v613_v57 = vpack.c.bf16 %v2635_v56, %v2632_v55 }
 0x217   : > { %v851_v58 = vpop.permute.xlu1 %850 }
 0x218   : > { %2226 = vmatmul.mubr.msk.bf16.vlgmr.msra.gmra.mxu1 %vm553_vm5, %v613_v57  ;;  %v856_v61 = vsel %vm419_vm0, %v851_v58, 0 }
 0x219   : > { %2230 = vmatpush3.bf16.xpose.msra.mxu1 %v679_v59  ;;  %2231 = vmatprep.mubr.msk.bf16.mxu1 %vm2408_vm1, %v2407_v6 }
 0x21a   : > { %2241 = vmatprep.subr.bf16.mxu1 %v2407_v6 }
 0x21b   : > { %v462_v60 = vpop.permute.xlu1 %461  ;;  %v2317_v1 = vld [vmem:[#allocation2 + $0x10] sm:$0xff]  }
 0x21c   : > { %468 = vst.msk [vmem:[#allocation2 + $0x18] sm:$0xf] %vm440_vm2, %v462_v60  ;;  %v2746_v60 = vld [vmem:[#allocation3 + $0x38] sm:$0xff] }
 0x21f   : > { %v1027_v63 = vpop.permute.xlu1 %1026 }
 0x220   : > { %2232 = vmatmul.mubr.msk.bf16.vlgmr.msra.gmra.mxu1 %vm419_vm0, %v2316_v62  ;;  %v1032_v0 = vsel %vm419_vm0, %v1027_v63, 0 }
 0x221   : > { %2242 = vmatpush3.bf16.xpose.msra.mxu1 %v856_v61  ;;  %2243 = vmatprep.mubr.msk.bf16.mxu1 %vm2408_vm1, %v2407_v6 }
 0x222   : > { %2253 = vmatprep.subr.bf16.mxu1 %v2407_v6 }
 0x223   : > { %v2318_v2 = vld [vmem:[#allocation2 + $0x18] sm:$0xff]  }
 0x228   : > { %2244 = vmatmul.mubr.msk.bf16.vlgmr.msra.gmra.mxu1 %vm419_vm0, %v2317_v1  ;;  %v588_v1 = vsel %vm553_vm5, %v2632_v55, 0.0 }
 0x229   : > { %2254 = vmatpush3.bf16.xpose.msra.mxu1 %v1032_v0  ;;  %2255 = vmatprep.mubr.msk.bf16.mxu1 %vm2408_vm1, %v2407_v6 }
 0x230   : > { %2256 = vmatmul.mubr.msk.bf16.vlgmr.msra.gmra.mxu1 %vm419_vm0, %v2318_v2  ;;  %v591_v2 = vsel %vm553_vm5, %v2635_v56, 0.0 }
 0x2d8   : > { %v2655_v3 = vpop.f32.mrf.mxu1 }
 0x2da   : > { %v2227_v4 = vpop.f32.mrf.mxu1 }
 0x2dc   : > { %v2657_v5 = vpop.f32.mrf.mxu1 }
 0x2de   : > { %v2228_v7 = vpop.f32.mrf.mxu1 }
 0x2e0   : > { %v715_v8 = vpop.f32.mrf.mxu1 }
 0x2e1   : > { %v2662_v9 = vsel %vm490_vm4, %v715_v8, -1e+30 }
 0x2e2   : > { %v2233_v10 = vpop.f32.mrf.mxu1  ;;  %v727_v11 = vsel %vm553_vm5, %v2662_v9, -inf }
 0x2e3   : > { %728 = vmax.xlane.f32.xlu0 %v727_v11 }
 0x2e4   : > { %v718_v12 = vpop.f32.mrf.mxu1 }
 0x2e5   : > { %v2669_v13 = vsel %vm491_vm6, %v718_v12, -1e+30 }
 0x2e6   : > { %v2234_v14 = vpop.f32.mrf.mxu1  ;;  %v730_v15 = vsel %vm553_vm5, %v2669_v13, -inf }
 0x2e7   : > { %731 = vmax.xlane.f32.xlu1 %v730_v15 }
 0x2e8   : > { %v892_v16 = vpop.f32.mrf.mxu1 }
 0x2e9   : > { %v2676_v17 = vsel %vm490_vm4, %v892_v16, -1e+30 }
 0x2ea   : > { %v2245_v18 = vpop.f32.mrf.mxu1  ;;  %v904_v19 = vsel %vm553_vm5, %v2676_v17, -inf }
 0x2eb   : > { %905 = vmax.xlane.f32.xlu0 %v904_v19 }
 0x2ec   : > { %v895_v23 = vpop.f32.mrf.mxu1 }
 0x2ed   : > { %v2683_v24 = vsel %vm491_vm6, %v895_v23, -1e+30 }
 0x2ee   : > { %v2246_v25 = vpop.f32.mrf.mxu1  ;;  %v907_v26 = vsel %vm553_vm5, %v2683_v24, -inf }
 0x2ef   : > { %908 = vmax.xlane.f32.xlu0 %v907_v26 }
 0x2f0   : > { %v1068_v27 = vpop.f32.mrf.mxu1 }
 0x2f1   : > { %v2690_v28 = vsel %vm490_vm4, %v1068_v27, -1e+30 }
 0x2f2   : > { %v2257_v29 = vpop.f32.mrf.mxu1  ;;  %v1080_v30 = vsel %vm553_vm5, %v2690_v28, -inf }
 0x2f3   : > { %1081 = vmax.xlane.f32.xlu1 %v1080_v30 }
 0x2f4   : > { %v1071_v31 = vpop.f32.mrf.mxu1 }
 0x2f5   : > { %v2697_v33 = vsel %vm491_vm6, %v1071_v31, -1e+30 }
 0x2f6   : > { %v2258_v37 = vpop.f32.mrf.mxu1  ;;  %v1083_v40 = vsel %vm553_vm5, %v2697_v33, -inf }
 0x2f7   : > { %1084 = vmax.xlane.f32.xlu0 %v1083_v40 }
 0x36c   : > { %v729_v20 = vpop.xlane.xlu0 %728 }
 0x36d   : > { %v2704_v42 = vmax.f32 %v2701_v41, %v729_v20 }
 0x36f   : > { %v735_v45 = vsub.f32 %v2701_v41, %v2704_v42  ;;  %840 = vst.msk [vmem:[#allocation3 + $0x10] sm:$0xff] %vm402_vm3, %v2704_v42  ;;  %743 = vperm.xlu1 %2313, %v2704_v42  }
 0x370   : > { %v732_v21 = vpop.xlane.xlu1 %731 }
 0x371   : > { %v2714_v22 = vmax.f32 %v2706_v44, %v732_v21 }
 0x373   : > { %v736_v47 = vsub.f32 %v2706_v44, %v2714_v22  ;;  %841 = vst.msk [vmem:[#allocation3 + $0x18] sm:$0xff] %vm402_vm3, %v2714_v22  ;;  %748 = vperm.xlu0 %2314, %v2714_v22  }
 0x374   : > { %v906_v48 = vpop.xlane.xlu0 %905 }
 0x375   : > { %v2724_v49 = vmax.f32 %v2716_v46, %v906_v48  ;;  %v566_v48 = vmul.f32 1.442695, %v563_v39  ;;  %v584_v39 = vld [vmem:[#allocation4] sm:$0xff] }
 0x377   : > { %v912_v51 = vsub.f32 %v2716_v46, %v2724_v49  ;;  %1016 = vst.msk [vmem:[#allocation3 + $0x20] sm:$0xff] %vm402_vm3, %v2724_v49  ;;  %920 = vperm.xlu1 %2313, %v2724_v49  }
 0x378   : > { %v909_v52 = vpop.xlane.xlu0 %908 }
 0x379   : > { %v2734_v53 = vmax.f32 %v2726_v50, %v909_v52  ;;  %v914_v40 = vmul.f32 1.442695, %v912_v51 }
 0x37b   : > { %v913_v57 = vsub.f32 %v2726_v50, %v2734_v53  ;;  %1017 = vst.msk [vmem:[#allocation3 + $0x28] sm:$0xff] %vm402_vm3, %v2734_v53  ;;  %925 = vperm.xlu1 %2313, %v2734_v53  }
 0x37c   : > { %v1082_v58 = vpop.xlane.xlu1 %1081 }
 0x37d   : > { %v2744_v59 = vmax.f32 %v2736_v54, %v1082_v58  ;;  %v916_v21 = vmul.f32 1.442695, %v913_v57 }
 0x37f   : > { %v1088_v61 = vsub.f32 %v2736_v54, %v2744_v59  ;;  %1192 = vst.msk [vmem:[#allocation3 + $0x30] sm:$0xff] %vm402_vm3, %v2744_v59  ;;  %1096 = vperm.xlu1 %2313, %v2744_v59  }
 0x380   : > { %v1085_v62 = vpop.xlane.xlu0 %1084 }
 0x381   : > { %v2754_v63 = vmax.f32 %v2746_v60, %v1085_v62  ;;  %v1090_v50 = vmul.f32 1.442695, %v1088_v61 }
 0x383   : > { %v1089_v0 = vsub.f32 %v2746_v60, %v2754_v63  ;;  %1193 = vst.msk [vmem:[#allocation3 + $0x38] sm:$0xff] %vm402_vm3, %v2754_v63  ;;  %1101 = vperm.xlu1 %2313, %v2754_v63   ;;  %v585_v63 = vld [vmem:[#allocation4 + $0x8] sm:$0xff] }
 0x385   : > { %v1092_v35 = vmul.f32 1.442695, %v1089_v0 }
 0x387   : > { %789 = vrot.lane.b32.xlu1 %v2615_v43, %s2411_s26 }
 0x38b   : > { %965 = vrot.lane.b32.xlu1 %v2615_v43, %s2413_s29 }
 0x38f   : > { %1141 = vrot.lane.b32.xlu1 %v2615_v43, %s2412_s27 }
 0x392   : > { %589 = vadd.xlane.f32.xlu0 %v588_v1 }
 0x3b3   : > { %592 = vadd.xlane.f32.xlu1 %v591_v2 }
 0x3ea   : > { %v744_v4 = vpop.permute.xlu1 %743 }
 0x3eb   : > { %v751_v7 = vsub.f32 %v2662_v9, %v744_v4 }
 0x3ed   : > { %v753_v8 = vmul.f32 1.442695, %v751_v7 }
 0x3ee   : > { %v749_v10 = vpop.permute.xlu0 %748 }
 0x3ef   : > { %2323 = vpow2.f32 %v753_v8  ;;  %v752_v11 = vsub.f32 %v2669_v13, %v749_v10  ;;  %v758_v8 = vld [vmem:[#allocation4 + $0x10] sm:$0xff] }
 0x3f1   : > { %v755_v12 = vmul.f32 1.442695, %v752_v11 }
 0x3f2   : > { %v921_v14 = vpop.permute.xlu1 %920 }
 0x3f3   : > { %2325 = vpow2.f32 %v755_v12  ;;  %v928_v43 = vsub.f32 %v2676_v17, %v921_v14  ;;  %v759_v12 = vld [vmem:[#allocation4 + $0x18] sm:$0xff] }
 0x3f5   : > { %v930_v15 = vmul.f32 1.442695, %v928_v43 }
 0x3f6   : > { %v926_v55 = vpop.permute.xlu1 %925 }
 0x3f7   : > { %2327 = vpow2.f32 %v930_v15  ;;  %v929_v16 = vsub.f32 %v2683_v24, %v926_v55  ;;  %v564_v24 = vmul.f32 1.442695, %v562_v36  ;;  %v935_v55 = vld [vmem:[#allocation4 + $0x20] sm:$0xff] }
 0x3f9   : > { %v932_v56 = vmul.f32 1.442695, %v929_v16 }
 0x3fa   : > { %v1097_v18 = vpop.permute.xlu1 %1096 }
 0x3fb   : > { %2329 = vpow2.f32 %v932_v56  ;;  %v1104_v9 = vsub.f32 %v2690_v28, %v1097_v18  ;;  %v599_v56 = vld [vmem:[#allocation5] sm:$0xff] }
 0x3fc   : > { %v2324_v19 = vpop.eup %2323 }
 0x3fd   : > { %v1106_v23 = vmul.f32 1.442695, %v1104_v9  ;;  %v762_v25 = vsel %vm553_vm5, %v2324_v19, 0.0 }
 0x3fe   : > { %763 = vadd.xlane.f32.xlu0 %v762_v25  ;;  %v1102_v13 = vpop.permute.xlu1 %1101 }
 0x3ff   : > { %2331 = vpow2.f32 %v1106_v23  ;;  %v1105_v26 = vsub.f32 %v2697_v33, %v1102_v13  ;;  %v737_v33 = vmul.f32 1.442695, %v735_v45  ;;  %v936_v23 = vld [vmem:[#allocation4 + $0x28] sm:$0xff] }
 0x400   : > { %v2326_v17 = vpop.eup %2325 }
 0x401   : > { %v1108_v27 = vmul.f32 1.442695, %v1105_v26  ;;  %v765_v29 = vsel %vm553_vm5, %v2326_v17, 0.0  ;;  %v787_v31 = vpack.c.bf16 %v2326_v17, %v2324_v19 }
 0x402   : > { %v790_v30 = vpop.permute.xlu1 %789  ;;  %766 = vadd.xlane.f32.xlu1 %v765_v29 }
 0x403   : > { %2333 = vpow2.f32 %v1108_v27  ;;  %2236 = vmatpush3.bf16.msra.mxu0 %v790_v30  ;;  %v1111_v30 = vld [vmem:[#allocation4 + $0x30] sm:$0xff] }
 0x404   : > { %v2328_v28 = vpop.eup %2327  ;;  %2247 = vmatprep.subr.bf16.mxu0 %v2407_v6  ;;  %2335 = vpow2.f32 %v564_v24 }
 0x405   : > { %v939_v37 = vsel %vm553_vm5, %v2328_v28, 0.0  ;;  %2337 = vpow2.f32 %v737_v33 }
 0x406   : > { %2238 = vmatmul.mubr.msk.bf16.vlgmr.msra.gmra.mxu0 %vm553_vm5, %v787_v31  ;;  %940 = vadd.xlane.f32.xlu1 %v939_v37  ;;  %v966_v32 = vpop.permute.xlu1 %965  ;;  %2339 = vpow2.f32 %v914_v40 }
 0x407   : > { %2248 = vmatpush3.bf16.msra.mxu0 %v966_v32  ;;  %2249 = vmatprep.mubr.msk.bf16.mxu0 %vm2408_vm1, %v2407_v6  ;;  %2341 = vpow2.f32 %v916_v21  ;;  %v1112_v32 = vld [vmem:[#allocation4 + $0x38] sm:$0xff] }
 0x408   : > { %v2330_v34 = vpop.eup %2329  ;;  %2259 = vmatprep.subr.bf16.mxu0 %v2407_v6  ;;  %2343 = vpow2.f32 %v566_v48 }
 0x409   : > { %v942_v36 = vsel %vm553_vm5, %v2330_v34, 0.0  ;;  %v964_v20 = vpack.c.bf16 %v2330_v34, %v2328_v28  ;;  %2345 = vpow2.f32 %v1090_v50 }
 0x40a   : > { %943 = vadd.xlane.f32.xlu1 %v942_v36  ;;  %v1142_v42 = vpop.permute.xlu1 %1141 }
 0x40c   : > { %v2332_v41 = vpop.eup %2331 }
 0x40d   : > { %v1115_v45 = vsel %vm553_vm5, %v2332_v41, 0.0 }
 0x40e   : > { %2250 = vmatmul.mubr.msk.bf16.vlgmr.msra.gmra.mxu0 %vm553_vm5, %v964_v20  ;;  %1116 = vadd.xlane.f32.xlu1 %v1115_v45 }
 0x40f   : > { %2260 = vmatpush3.bf16.msra.mxu0 %v1142_v42  ;;  %2261 = vmatprep.mubr.msk.bf16.mxu0 %vm2408_vm1, %v2407_v6  ;;  %v739_v6 = vmul.f32 1.442695, %v736_v47  ;;  %v600_v42 = vld [vmem:[#allocation5 + $0x8] sm:$0xff] }
 0x410   : > { %v2334_v46 = vpop.eup %2333 }
 0x411   : > { %v1118_v49 = vsel %vm553_vm5, %v2334_v46, 0.0  ;;  %v2336_v51 = vpop.eup %2335  ;;  %v1140_v52 = vpack.c.bf16 %v2334_v46, %v2332_v41  ;;  %2347 = vpow2.f32 %v739_v6 }
 0x412   : > { %1119 = vadd.xlane.f32.xlu1 %v1118_v49  ;;  %v2338_v38 = vpop.eup %2337  ;;  %2349 = vpow2.f32 %v1092_v35  ;;  %v586_v53 = vmul.f32 %v2336_v51, %v584_v39 }
 0x413   : > { %v2340_v54 = vpop.eup %2339  ;;  %v760_v10 = vmul.f32 %v2338_v38, %v758_v8 }
 0x414   : > { %603 = vperm.xlu0 %2314, %v2336_v51   ;;  %v2342_v44 = vpop.eup %2341  ;;  %v937_v18 = vmul.f32 %v2340_v54, %v935_v55 }
 0x415   : > { %v2344_v22 = vpop.eup %2343  ;;  %v938_v27 = vmul.f32 %v2342_v44, %v936_v23 }
 0x416   : > { %2262 = vmatmul.mubr.msk.bf16.vlgmr.msra.gmra.mxu0 %vm553_vm5, %v1140_v52  ;;  %v2346_v47 = vpop.eup %2345  ;;  %v587_v0 = vmul.f32 %v2344_v22, %v585_v63 }
 0x417   : > { %v1113_v37 = vmul.f32 %v2346_v47, %v1111_v30 }
 0x418   : > { %777 = vperm.xlu0 %2314, %v2338_v38  }
 0x41b   : > { %v590_v57 = vpop.xlane.xlu0 %589 }
 0x41c   : > { %v594_v58 = vadd.f32 %v590_v57, %v586_v53  ;;  %954 = vperm.xlu0 %2314, %v2340_v54  }
 0x41e   : > { %597 = vst.msk [vmem:[#allocation4] sm:$0xff] %vm402_vm3, %v594_v58  ;;  %v2348_v60 = vpop.eup %2347 }
 0x41f   : > { %v2350_v61 = vpop.eup %2349  ;;  %v761_v43 = vmul.f32 %v2348_v60, %v759_v12 }
 0x420   : > { %959 = vperm.xlu0 %2314, %v2342_v44  }
 0x423   : > { %608 = vperm.xlu1 %2313, %v2344_v22   ;;  %v773_v22 = vld [vmem:[#allocation5 + $0x10] sm:$0xff] }
 0x424   : > { %1130 = vperm.xlu0 %2314, %v2346_v47  }
 0x425   : > { %v1899_v59 = vld [vmem:[#allocation4] sm:$0xff] }
 0x426   : > { %2351 = vrcp.f32 %v1899_v59  ;;  %v774_v59 = vld [vmem:[#allocation5 + $0x18] sm:$0xff] }
 0x427   : > { %782 = vperm.xlu1 %2313, %v2348_v60  }
 0x428   : > { %1135 = vperm.xlu0 %2314, %v2350_v61  }
 0x433   : > { %v2352_v62 = vpop.eup %2351 }
 0x434   : > { %1907 = vperm.xlu0 %2314, %v2352_v62  }
 0x43c   : > { %v593_v1 = vpop.xlane.xlu1 %592 }
 0x43d   : > { %v595_v2 = vadd.f32 %v593_v1, %v587_v0  ;;  %v950_v1 = vld [vmem:[#allocation5 + $0x20] sm:$0xff] }
 0x43f   : > { %598 = vst.msk [vmem:[#allocation4 + $0x8] sm:$0xff] %vm402_vm3, %v595_v2 }
 0x446   : > { %v1900_v4 = vld [vmem:[#allocation4 + $0x8] sm:$0xff] }
 0x447   : > { %2353 = vrcp.f32 %v1900_v4 }
 0x454   : > { %v2354_v7 = vpop.eup %2353 }
 0x455   : > { %1912 = vperm.xlu1 %2313, %v2354_v7  }
 0x487   : > { %v764_v11 = vpop.xlane.xlu0 %763 }
 0x488   : > { %v768_v14 = vadd.f32 %v764_v11, %v760_v10  ;;  %v951_v10 = vld [vmem:[#allocation5 + $0x28] sm:$0xff] }
 0x48a   : > { %770 = vst.msk [vmem:[#allocation4 + $0x10] sm:$0xff] %vm402_vm3, %v768_v14 }
 0x48b   : > { %v767_v15 = vpop.xlane.xlu1 %766 }
 0x48c   : > { %v769_v16 = vadd.f32 %v767_v15, %v761_v43 }
 0x48e   : > { %771 = vst.msk [vmem:[#allocation4 + $0x18] sm:$0xff] %vm402_vm3, %v769_v16 }
 0x48f   : > { %v941_v9 = vpop.xlane.xlu1 %940  ;;  %v604_v19 = vpop.permute.xlu0 %603 }
 0x490   : > { %v945_v25 = vadd.f32 %v941_v9, %v937_v18  ;;  %v611_v13 = vmul.f32 %v604_v19, %v599_v56  ;;  %v1126_v56 = vld [vmem:[#allocation5 + $0x30] sm:$0xff] }
 0x491   : > { %v1921_v26 = vld [vmem:[#allocation4 + $0x10] sm:$0xff] }
 0x492   : > { %947 = vst.msk [vmem:[#allocation4 + $0x20] sm:$0xff] %vm402_vm3, %v945_v25  ;;  %v658_v17 = vadd.f32 %v2655_v3, %v611_v13  ;;  %2355 = vrcp.f32 %v1921_v26  ;;  %v1114_v3 = vmul.f32 %v2350_v61, %v1112_v32  ;;  %v1127_v25 = vld [vmem:[#allocation5 + $0x38] sm:$0xff] }
 0x493   : > { %v944_v29 = vpop.xlane.xlu1 %943  ;;  %v778_v24 = vpop.permute.xlu0 %777 }
 0x494   : > { %660 = vst.msk [vmem:[#allocation5] sm:$0xff] %vm419_vm0, %v658_v17  ;;  %v946_v28 = vadd.f32 %v944_v29, %v938_v27  ;;  %v785_v47 = vmul.f32 %v778_v24, %v773_v22 }
 0x495   : > { %v1922_v31 = vld [vmem:[#allocation4 + $0x18] sm:$0xff] }
 0x496   : > { %948 = vst.msk [vmem:[#allocation4 + $0x28] sm:$0xff] %vm402_vm3, %v946_v28  ;;  %2357 = vrcp.f32 %v1922_v31 }
 0x497   : > { %v1117_v33 = vpop.xlane.xlu1 %1116  ;;  %v955_v36 = vpop.permute.xlu0 %954 }
 0x498   : > { %v1121_v34 = vadd.f32 %v1117_v33, %v1113_v37  ;;  %v962_v8 = vmul.f32 %v955_v36, %v950_v1 }
 0x499   : > { %v1952_v40 = vld [vmem:[#allocation4 + $0x20] sm:$0xff] }
 0x49a   : > { %1123 = vst.msk [vmem:[#allocation4 + $0x30] sm:$0xff] %vm402_vm3, %v1121_v34  ;;  %2359 = vrcp.f32 %v1952_v40 }
 0x49b   : > { %v1120_v41 = vpop.xlane.xlu1 %1119  ;;  %v960_v46 = vpop.permute.xlu0 %959 }
 0x49c   : > { %v1122_v20 = vadd.f32 %v1120_v41, %v1114_v3  ;;  %v963_v55 = vmul.f32 %v960_v46, %v951_v10 }
 0x49d   : > { %v1953_v45 = vld [vmem:[#allocation4 + $0x28] sm:$0xff] }
 0x49e   : > { %1124 = vst.msk [vmem:[#allocation4 + $0x38] sm:$0xff] %vm402_vm3, %v1122_v20  ;;  %2361 = vrcp.f32 %v1953_v45 }
 0x49f   : > { %v2356_v21 = vpop.eup %2355  ;;  %v609_v48 = vpop.permute.xlu1 %608 }
 0x4a0   : > { %v612_v49 = vmul.f32 %v609_v48, %v600_v42  ;;  %1930 = vperm.xlu0 %2314, %v2356_v21   ;;  %v1131_v6 = vpop.permute.xlu0 %1130 }
 0x4a1   : > { %v1983_v50 = vld [vmem:[#allocation4 + $0x30] sm:$0xff]  ;;  %v1138_v23 = vmul.f32 %v1131_v6, %v1126_v56 }
 0x4a2   : > { %v659_v51 = vadd.f32 %v2657_v5, %v612_v49  ;;  %2363 = vrcp.f32 %v1983_v50  ;;  %v1903_v5 = vld [vmem:[#allocation5] sm:$0xff] }
 0x4a3   : > { %v2358_v52 = vpop.eup %2357  ;;  %v783_v60 = vpop.permute.xlu1 %782 }
 0x4a4   : > { %661 = vst.msk [vmem:[#allocation5 + $0x8] sm:$0xff] %vm419_vm0, %v659_v51  ;;  %1935 = vperm.xlu1 %2313, %v2358_v52   ;;  %v1136_v53 = vpop.permute.xlu0 %1135  ;;  %v786_v0 = vmul.f32 %v783_v60, %v774_v59 }
 0x4a5   : > { %v1984_v35 = vld [vmem:[#allocation4 + $0x38] sm:$0xff]  ;;  %v1139_v27 = vmul.f32 %v1136_v53, %v1127_v25 }
 0x4a6   : > { %2365 = vrcp.f32 %v1984_v35 }
 0x4a7   : > { %v2360_v38 = vpop.eup %2359 }
 0x4a8   : > { %1961 = vperm.xlu0 %2314, %v2360_v38  }
 0x4ab   : > { %v2362_v39 = vpop.eup %2361  ;;  %v1904_v14 = vld [vmem:[#allocation5 + $0x8] sm:$0xff] }
 0x4ac   : > { %1966 = vperm.xlu1 %2313, %v2362_v39  }
 0x4af   : > { %v2364_v54 = vpop.eup %2363  ;;  %v1908_v57 = vpop.permute.xlu0 %1907 }
 0x4b0   : > { %v1915_v58 = vmul.f32 %v1908_v57, %v1903_v5  ;;  %1992 = vperm.xlu0 %2314, %v2364_v54  }
 0x4b2   : > { %1918 = vst.msk [vmem:[%s2833_s6] sm:$0xff] %vm419_vm0, %v1915_v58 }
 0x4b3   : > { %v2366_v44 = vpop.eup %2365 }
 0x4b4   : > { %1997 = vperm.xlu1 %2313, %v2366_v44  }
 0x4c6   : > { %v829_v61 = vpop.f32.mrf.mxu0 }
 0x4c7   : > { %v836_v62 = vadd.f32 %v829_v61, %v785_v47 }
 0x4c8   : > { %v2239_v63 = vpop.f32.mrf.mxu0 }
 0x4c9   : > { %838 = vst.msk [vmem:[#allocation5 + $0x10] sm:$0xff] %vm419_vm0, %v836_v62 }
 0x4ca   : > { %v832_v2 = vpop.f32.mrf.mxu0 }
 0x4cb   : > { %v837_v4 = vadd.f32 %v832_v2, %v786_v0 }
 0x4cc   : > { %v2240_v7 = vpop.f32.mrf.mxu0 }
 0x4cd   : > { %839 = vst.msk [vmem:[#allocation5 + $0x18] sm:$0xff] %vm419_vm0, %v837_v4 }
 0x4ce   : > { %v1005_v11 = vpop.f32.mrf.mxu0 }
 0x4cf   : > { %v1012_v12 = vadd.f32 %v1005_v11, %v962_v8 }
 0x4d0   : > { %v1913_v43 = vpop.permute.xlu1 %1912  ;;  %v2251_v15 = vpop.f32.mrf.mxu0  ;;  %v1926_v31 = vld [vmem:[#allocation5 + $0x10] sm:$0xff] }
 0x4d1   : > { %1014 = vst.msk [vmem:[#allocation5 + $0x20] sm:$0xff] %vm419_vm0, %v1012_v12  ;;  %v1916_v16 = vmul.f32 %v1913_v43, %v1904_v14 }
 0x4d2   : > { %v1008_v18 = vpop.f32.mrf.mxu0 }
 0x4d3   : > { %1919 = vst.msk [vmem:[%s2833_s6 + $0x8] sm:$0xff] %vm419_vm0, %v1916_v16  ;;  %v1013_v9 = vadd.f32 %v1008_v18, %v963_v55 }
 0x4d4   : > { %v2252_v19 = vpop.f32.mrf.mxu0  ;;  %v1927_v32 = vld [vmem:[#allocation5 + $0x18] sm:$0xff] }
 0x4d5   : > { %1015 = vst.msk [vmem:[#allocation5 + $0x28] sm:$0xff] %vm419_vm0, %v1013_v9 }
 0x4d6   : > { %v1181_v13 = vpop.f32.mrf.mxu0 }
 0x4d7   : > { %v1188_v26 = vadd.f32 %v1181_v13, %v1138_v23 }
 0x4d8   : > { %v2263_v17 = vpop.f32.mrf.mxu0  ;;  %v1957_v40 = vld [vmem:[#allocation5 + $0x20] sm:$0xff] }
 0x4d9   : > { %1190 = vst.msk [vmem:[#allocation5 + $0x30] sm:$0xff] %vm419_vm0, %v1188_v26 }
 0x4da   : > { %v1184_v29 = vpop.f32.mrf.mxu0 }
 0x4db   : > { %v1189_v24 = vadd.f32 %v1184_v29, %v1139_v27 }
 0x4dc   : > { %v2264_v30 = vpop.f32.mrf.mxu0  ;;  %v1958_v20 = vld [vmem:[#allocation5 + $0x28] sm:$0xff] }
 0x4dd   : > { %1191 = vst.msk [vmem:[#allocation5 + $0x38] sm:$0xff] %vm419_vm0, %v1189_v24 }
 0x4e0   : > { %v1988_v21 = vld [vmem:[#allocation5 + $0x30] sm:$0xff] }
 0x4e4   : > { %v1989_v49 = vld [vmem:[#allocation5 + $0x38] sm:$0xff] }
 0x51b   : > { %v1931_v28 = vpop.permute.xlu0 %1930 }
 0x51c   : > { %v1938_v37 = vmul.f32 %v1931_v28, %v1926_v31 }
 0x51e   : > { %1942 = vrot.lane.b32.xlu0 %v1938_v37, %s2412_s27 }
 0x51f   : > { %v1936_v33 = vpop.permute.xlu1 %1935 }
 0x520   : > { %v1939_v34 = vmul.f32 %v1936_v33, %v1927_v32 }
 0x522   : > { %1944 = vrot.lane.b32.xlu1 %v1939_v34, %s2412_s27 }
 0x523   : > { %v1962_v36 = vpop.permute.xlu0 %1961 }
 0x524   : > { %v1969_v3 = vmul.f32 %v1962_v36, %v1957_v40 }
 0x526   : > { %1973 = vrot.lane.b32.xlu0 %v1969_v3, %s2413_s29 }
 0x527   : > { %v1967_v41 = vpop.permute.xlu1 %1966 }
 0x528   : > { %v1970_v42 = vmul.f32 %v1967_v41, %v1958_v20 }
 0x52a   : > { %1975 = vrot.lane.b32.xlu1 %v1970_v42, %s2413_s29 }
 0x52b   : > { %v1993_v45 = vpop.permute.xlu0 %1992 }
 0x52c   : > { %v2000_v46 = vmul.f32 %v1993_v45, %v1988_v21 }
 0x52e   : > { %2004 = vrot.lane.b32.xlu0 %v2000_v46, %s2411_s26 }
 0x52f   : > { %v1998_v48 = vpop.permute.xlu1 %1997 }
 0x530   : > { %v2001_v50 = vmul.f32 %v1998_v48, %v1989_v49 }
 0x532   : > { %2006 = vrot.lane.b32.xlu1 %v2001_v50, %s2411_s26 }
 0x590   : > { %v1943_v51 = vpop.permute.xlu0 %1942 }
 0x591   : > { %1949 = vst.msk [vmem:[%s2833_s6] sm:$0xff] %vm1948_vm7, %v1943_v51 }
 0x594   : > { %v1945_v52 = vpop.permute.xlu1 %1944 }
 0x595   : > { %1950 = vst.msk [vmem:[%s2833_s6 + $0x8] sm:$0xff] %vm1948_vm7, %v1945_v52 }
 0x598   : > { %v1974_v6 = vpop.permute.xlu0 %1973 }
 0x599   : > { %1980 = vst.msk [vmem:[%s2833_s6] sm:$0xff] %vm1979_vm8, %v1974_v6 }
 0x59c   : > { %v1976_v35 = vpop.permute.xlu1 %1975 }
 0x59d   : > { %1981 = vst.msk [vmem:[%s2833_s6 + $0x8] sm:$0xff] %vm1979_vm8, %v1976_v35 }
 0x5a0   : > { %v2005_v38 = vpop.permute.xlu0 %2004 }
 0x5a1   : > { %2011 = vst.msk [vmem:[%s2833_s6] sm:$0xff] %vm2010_vm9, %v2005_v38 }
 0x5a4   : > { %v2007_v39 = vpop.permute.xlu1 %2006 }
 0x5a5   : > { %2012 = vst.msk [vmem:[%s2833_s6 + $0x8] sm:$0xff] %vm2010_vm9, %v2007_v39 }
 0x5a6 PF: > { %s13_s16 = sadd.s32 1, %s2405_s16   ;;  %s2877_s12 = smov %s2393_s13 }
 0x5a7   : > { %p10_p10 = scmp.ge.s32.totalorder %s13_s16, 4   ;;  %s2878_s13 = smov %s2473_s21 }
 0x5a8   : > { %s2879_s14 = smov %s2401_s15  ;;  %s2880_s15 = smov %s2882_s17 }
 0x5a9   :  { %12 = sbr.rel (!%p10_p10) target bundleno = 3 (0x3), region = 246 }

</bundles_post_ra>
